<compile_context>
chip_gen: v7x
topology: tpu7x:2x2x1
jax: 0.10.0
libtpu: 0.0.40
codegen_flags: <defaults>
</compile_context>

<pallas_src>
import jax
import jax.numpy as jnp
from jax.experimental import pallas as pl
from jax.experimental.pallas import tpu as pltpu


def _sigmoid(x):
    # tanh-form logistic: one EUP push, no f32 divide on the serial chain.
    return 0.5 * (1.0 + jnp.tanh(0.5 * x))


def decoder_greedy_kernel(feat_ref, emb_ref, w_ih_ref, w_hh_ref, b_ref,
                          w_out_ref, b_out_ref, ids_ref, vals_ref):
    B, E = feat_ref.shape
    V = emb_ref.shape[0]
    L = w_ih_ref.shape[0]
    H4 = w_ih_ref.shape[2]
    H = H4 // 4
    T = ids_ref.shape[1]

    # --- Hoisted loop invariants (issued once, live in vregs across the decode) ---
    w_ih = [w_ih_ref[l] for l in range(L)]                      # (E, 4H) bf16 each
    w_hh = [w_hh_ref[l] for l in range(L)]                      # (H, 4H) bf16 each
    gate_bias = [jnp.broadcast_to(b_ref[l], (B, H4)) for l in range(L)]
    emb_tbl = emb_ref[...]                                      # (V, E) bf16
    w_out = w_out_ref[...]                                      # (H, V) bf16
    out_bias = jnp.broadcast_to(b_out_ref[...], (B, V))
    col = jax.lax.broadcasted_iota(jnp.int32, (B, V), 1)
    tcol = jax.lax.broadcasted_iota(jnp.int32, (B, T), 1)

    # states = None -> zero-initialized (h, c); inputs = features.unsqueeze(1).
    # All recurrent state stays in vregs (no VMEM round trips).
    h = [jnp.zeros((B, H), jnp.float32) for _ in range(L)]
    c = [jnp.zeros((B, H), jnp.float32) for _ in range(L)]
    x = feat_ref[...].astype(jnp.bfloat16)                      # (B, E)

    ids_mat = jnp.zeros((B, T), jnp.int32)
    vals_mat = jnp.zeros((B, T), jnp.float32)

    # T is a small static int: full unroll -> cross-step scheduler visibility,
    # all indexing static.
    for t in range(T):
        layer_in = x
        for l in range(L):
            # Split matmuls: h @ W_hh depends only on h_t and can overlap the
            # previous step's argmax / embedding path.
            gates = (jnp.dot(layer_in, w_ih[l], preferred_element_type=jnp.float32)
                     + jnp.dot(h[l].astype(jnp.bfloat16), w_hh[l],
                               preferred_element_type=jnp.float32)
                     + gate_bias[l])
            # Activate only what each gate needs: sigmoid on [i,f] and [o], tanh on [g].
            if_g = _sigmoid(gates[:, 0:2 * H])
            i_g = if_g[:, 0:H]
            f_g = if_g[:, H:2 * H]
            g_g = jnp.tanh(gates[:, 2 * H:3 * H])
            o_g = _sigmoid(gates[:, 3 * H:4 * H])
            c[l] = f_g * c[l] + i_g * g_g
            h[l] = o_g * jnp.tanh(c[l])
            layer_in = h[l].astype(jnp.bfloat16)

        # outputs = linear(hiddens.squeeze(1)); value, predicted = outputs.max(1)
        logits = jnp.dot(layer_in, w_out, preferred_element_type=jnp.float32) + out_bias
        max_val = jnp.max(logits, axis=1, keepdims=True)                       # (B, 1)
        predicted = jnp.min(jnp.where(logits == max_val, col, V),
                            axis=1, keepdims=True).astype(jnp.int32)           # first argmax
        ids_mat = jnp.where(tcol == t, predicted, ids_mat)
        vals_mat = jnp.where(tcol == t, max_val, vals_mat)

        # inputs = embed(predicted): one-hot @ table (MXU gather; exact for bf16 emb).
        one_hot = (col == predicted).astype(jnp.bfloat16)                      # (B, V)
        x = jnp.dot(one_hot, emb_tbl,
                    preferred_element_type=jnp.float32).astype(jnp.bfloat16)   # (B, E)

    # Single lane-dense writeback at the end (PyTorch (B, T) layout directly).
    ids_ref[...] = ids_mat
    vals_ref[...] = vals_mat


def init_params(key, embed_size, hidden_size, vocab_size, num_layers):
    """Deterministic synthetic parameters matching the PyTorch module's shapes."""
    ks = jax.random.split(key, 4)
    bound = float(hidden_size) ** -0.5

    def u(k, shape):
        return jax.random.uniform(k, shape, jnp.float32, -bound, bound)

    emb = jax.random.normal(ks[0], (vocab_size, embed_size), jnp.float32)
    kk = jax.random.split(ks[1], 4 * num_layers)
    w_ih, w_hh, b_ih, b_hh = [], [], [], []
    for l in range(num_layers):
        in_dim = embed_size if l == 0 else hidden_size
        w_ih.append(u(kk[4 * l + 0], (4 * hidden_size, in_dim)))
        w_hh.append(u(kk[4 * l + 1], (4 * hidden_size, hidden_size)))
        b_ih.append(u(kk[4 * l + 2], (4 * hidden_size,)))
        b_hh.append(u(kk[4 * l + 3], (4 * hidden_size,)))
    w_lin = u(ks[2], (vocab_size, hidden_size))
    b_lin = u(ks[3], (vocab_size,))
    return dict(emb=emb, w_ih=w_ih, w_hh=w_hh, b_ih=b_ih, b_hh=b_hh,
                w_lin=w_lin, b_lin=b_lin)


def decoder_rnn_greedy(features, params, max_seq_length):
    """Pallas equivalent of DecoderRNN.forward(features) -> (sampled_ids, values)."""
    B, E = features.shape
    emb = params['emb']
    V = emb.shape[0]
    L = len(params['w_ih'])
    H = params['w_hh'][0].shape[1]
    H4 = 4 * H
    if L > 1:
        assert E == H, "stacked LSTM weights require embed_size == hidden_size"
    T = max_seq_length

    # Parameter prep (glue, plain JAX): pre-transpose so the kernel does x @ W,
    # fuse only the biases, cast weights to bf16 (MXU-native, half the VMEM).
    w_ih = jnp.stack([params['w_ih'][l].T for l in range(L)],
                     axis=0).astype(jnp.bfloat16)                              # (L, E, 4H)
    w_hh = jnp.stack([params['w_hh'][l].T for l in range(L)],
                     axis=0).astype(jnp.bfloat16)                              # (L, H, 4H)
    b = jnp.stack([(bi + bh)[None, :]
                   for bi, bh in zip(params['b_ih'], params['b_hh'])], axis=0)  # (L, 1, 4H) f32
    emb_bf16 = emb.astype(jnp.bfloat16)                                         # (V, E)
    w_out = params['w_lin'].T.astype(jnp.bfloat16)                              # (H, V)
    b_out = params['b_lin'][None, :]                                            # (1, V) f32

    ids, vals = pl.pallas_call(
        decoder_greedy_kernel,
        out_shape=(jax.ShapeDtypeStruct((B, T), jnp.int32),
                   jax.ShapeDtypeStruct((B, T), jnp.float32)),
        grid=(1,),   # single program: at small B a TC split only duplicates weight traffic
        in_specs=[
            pl.BlockSpec((B, E), lambda i: (0, 0)),           # features
            pl.BlockSpec((V, E), lambda i: (0, 0)),           # embedding table
            pl.BlockSpec((L, E, H4), lambda i: (0, 0, 0)),    # W_ih (pre-transposed)
            pl.BlockSpec((L, H, H4), lambda i: (0, 0, 0)),    # W_hh (pre-transposed)
            pl.BlockSpec((L, 1, H4), lambda i: (0, 0, 0)),    # fused LSTM bias
            pl.BlockSpec((H, V), lambda i: (0, 0)),           # output projection
            pl.BlockSpec((1, V), lambda i: (0, 0)),           # output bias
        ],
        out_specs=(pl.BlockSpec((B, T), lambda i: (0, 0)),
                   pl.BlockSpec((B, T), lambda i: (0, 0))),
        compiler_params=pltpu.CompilerParams(
            dimension_semantics=("arbitrary",)),
    )(features, emb_bf16, w_ih, w_hh, b, w_out, b_out)

    return ids, vals    # already (B, T), matches torch.stack(..., 1)


def reference_greedy(features, params, max_seq_length):
    """Pure-JAX reference mirroring the kernel's numerics (bf16 matmuls, split W_ih/W_hh,
    tanh-form sigmoid)."""
    B, _ = features.shape
    L = len(params['w_ih'])
    H = params['w_hh'][0].shape[1]
    emb = params['emb'].astype(jnp.bfloat16)
    w_ih = [params['w_ih'][l].T.astype(jnp.bfloat16) for l in range(L)]
    w_hh = [params['w_hh'][l].T.astype(jnp.bfloat16) for l in range(L)]
    bias = [params['b_ih'][l] + params['b_hh'][l] for l in range(L)]
    w_out = params['w_lin'].T.astype(jnp.bfloat16)
    b_out = params['b_lin']
    h = [jnp.zeros((B, H), jnp.float32) for _ in range(L)]
    c = [jnp.zeros((B, H), jnp.float32) for _ in range(L)]
    x = features.astype(jnp.bfloat16)
    ids, vals = [], []
    for _ in range(max_seq_length):
        layer_in = x
        for l in range(L):
            gates = (jnp.dot(layer_in, w_ih[l], preferred_element_type=jnp.float32)
                     + jnp.dot(h[l].astype(jnp.bfloat16), w_hh[l],
                               preferred_element_type=jnp.float32)
                     + bias[l])
            i_g = _sigmoid(gates[:, 0 * H:1 * H])
            f_g = _sigmoid(gates[:, 1 * H:2 * H])
            g_g = jnp.tanh(gates[:, 2 * H:3 * H])
            o_g = _sigmoid(gates[:, 3 * H:4 * H])
            c[l] = f_g * c[l] + i_g * g_g
            h[l] = o_g * jnp.tanh(c[l])
            layer_in = h[l].astype(jnp.bfloat16)
        logits = jnp.dot(layer_in, w_out, preferred_element_type=jnp.float32) + b_out
        vals.append(jnp.max(logits, axis=1))
        pred = jnp.argmax(logits, axis=1)
        ids.append(pred)
        x = emb[pred]
    return jnp.stack(ids, 1).astype(jnp.int32), jnp.stack(vals, 1)


if __name__ == "__main__":
    # Small shapes consistent with the module: embed_size == hidden_size == 32,
    # vocab_size = 128, num_layers = 2, batch = 16, max_seq_length = 8.
    B, E, H, V, L, T = 16, 32, 32, 128, 2, 8

    key = jax.random.PRNGKey(0)
    kp, kf = jax.random.split(key)
    params = init_params(kp, E, H, V, L)
    features = jax.random.normal(kf, (B, E), jnp.float32)

    sampled_ids, values = decoder_rnn_greedy(features, params, T)
    (sampled_ids, values) = jax.block_until_ready((sampled_ids, values))

    ref_ids, ref_vals = reference_greedy(features, params, T)
    assert sampled_ids.shape == (B, T) and values.shape == (B, T)
    assert sampled_ids.dtype == jnp.int32
    assert jnp.array_equal(sampled_ids, ref_ids), (sampled_ids, ref_ids)
    assert jnp.allclose(values, ref_vals, atol=2e-3, rtol=2e-3)

    print("KERNEL_OK")
</pallas_src>

<mosaic_0001>
module attributes {stable_mosaic.version = 11 : i64} {
  func.func @decoder_greedy_kernel(%arg0: i32, %arg1: memref<16x32xf32, #tpu.memory_space<vmem>>, %arg2: memref<128x32xbf16, #tpu.memory_space<vmem>>, %arg3: memref<2x32x128xbf16, #tpu.memory_space<vmem>>, %arg4: memref<2x32x128xbf16, #tpu.memory_space<vmem>>, %arg5: memref<2x1x128xf32, #tpu.memory_space<vmem>>, %arg6: memref<32x128xbf16, #tpu.memory_space<vmem>>, %arg7: memref<1x128xf32, #tpu.memory_space<vmem>>, %arg8: memref<16x8xi32, #tpu.memory_space<vmem>>, %arg9: memref<16x8xf32, #tpu.memory_space<vmem>>) attributes {dimension_semantics = [#tpu.dimension_semantics<arbitrary>], iteration_bounds = array<i64: 1>, scalar_prefetch = 0 : i64, scratch_operands = 0 : i64, tpu.core_type = #tpu.core_type<tc>, window_params = [{pipeline_mode = #tpu.pipeline_mode<synchronous>, transform_indices = @transform_0, window_bounds = array<i64: 16, 32>}, {pipeline_mode = #tpu.pipeline_mode<synchronous>, transform_indices = @transform_1, window_bounds = array<i64: 128, 32>}, {pipeline_mode = #tpu.pipeline_mode<synchronous>, transform_indices = @transform_2, window_bounds = array<i64: 2, 32, 128>}, {pipeline_mode = #tpu.pipeline_mode<synchronous>, transform_indices = @transform_3, window_bounds = array<i64: 2, 32, 128>}, {pipeline_mode = #tpu.pipeline_mode<synchronous>, transform_indices = @transform_4, window_bounds = array<i64: 2, 1, 128>}, {pipeline_mode = #tpu.pipeline_mode<synchronous>, transform_indices = @transform_5, window_bounds = array<i64: 32, 128>}, {pipeline_mode = #tpu.pipeline_mode<synchronous>, transform_indices = @transform_6, window_bounds = array<i64: 1, 128>}, {pipeline_mode = #tpu.pipeline_mode<synchronous>, transform_indices = @transform_7, window_bounds = array<i64: 16, 8>}, {pipeline_mode = #tpu.pipeline_mode<synchronous>, transform_indices = @transform_8, window_bounds = array<i64: 16, 8>}]} {
    %c0 = arith.constant 0 : index
    %c0_0 = arith.constant 0 : index
    %c0_1 = arith.constant 0 : index
    %0 = vector.load %arg3[%c0, %c0_0, %c0_1] : memref<2x32x128xbf16, #tpu.memory_space<vmem>>, vector<1x32x128xbf16>
    %1 = vector.shape_cast %0 : vector<1x32x128xbf16> to vector<32x128xbf16>
    %c1 = arith.constant 1 : index
    %c0_2 = arith.constant 0 : index
    %c0_3 = arith.constant 0 : index
    %2 = vector.load %arg3[%c1, %c0_2, %c0_3] : memref<2x32x128xbf16, #tpu.memory_space<vmem>>, vector<1x32x128xbf16>
    %3 = vector.shape_cast %2 : vector<1x32x128xbf16> to vector<32x128xbf16>
    %c0_4 = arith.constant 0 : index
    %c0_5 = arith.constant 0 : index
    %c0_6 = arith.constant 0 : index
    %4 = vector.load %arg4[%c0_4, %c0_5, %c0_6] : memref<2x32x128xbf16, #tpu.memory_space<vmem>>, vector<1x32x128xbf16>
    %5 = vector.shape_cast %4 : vector<1x32x128xbf16> to vector<32x128xbf16>
    %c1_7 = arith.constant 1 : index
    %c0_8 = arith.constant 0 : index
    %c0_9 = arith.constant 0 : index
    %6 = vector.load %arg4[%c1_7, %c0_8, %c0_9] : memref<2x32x128xbf16, #tpu.memory_space<vmem>>, vector<1x32x128xbf16>
    %7 = vector.shape_cast %6 : vector<1x32x128xbf16> to vector<32x128xbf16>
    %c0_10 = arith.constant 0 : index
    %c0_11 = arith.constant 0 : index
    %c0_12 = arith.constant 0 : index
    %8 = vector.load %arg5[%c0_10, %c0_11, %c0_12] : memref<2x1x128xf32, #tpu.memory_space<vmem>>, vector<1x1x128xf32>
    %9 = vector.shape_cast %8 : vector<1x1x128xf32> to vector<1x128xf32>
    %10 = vector.shape_cast %9 : vector<1x128xf32> to vector<1x128xf32>
    %11 = vector.broadcast %10 : vector<1x128xf32> to vector<16x128xf32>
    %c1_13 = arith.constant 1 : index
    %c0_14 = arith.constant 0 : index
    %c0_15 = arith.constant 0 : index
    %12 = vector.load %arg5[%c1_13, %c0_14, %c0_15] : memref<2x1x128xf32, #tpu.memory_space<vmem>>, vector<1x1x128xf32>
    %13 = vector.shape_cast %12 : vector<1x1x128xf32> to vector<1x128xf32>
    %14 = vector.shape_cast %13 : vector<1x128xf32> to vector<1x128xf32>
    %15 = vector.broadcast %14 : vector<1x128xf32> to vector<16x128xf32>
    %c0_16 = arith.constant 0 : index
    %c0_17 = arith.constant 0 : index
    %16 = vector.load %arg2[%c0_16, %c0_17] : memref<128x32xbf16, #tpu.memory_space<vmem>>, vector<128x32xbf16>
    %c0_18 = arith.constant 0 : index
    %c0_19 = arith.constant 0 : index
    %17 = vector.load %arg6[%c0_18, %c0_19] : memref<32x128xbf16, #tpu.memory_space<vmem>>, vector<32x128xbf16>
    %c0_20 = arith.constant 0 : index
    %c0_21 = arith.constant 0 : index
    %18 = vector.load %arg7[%c0_20, %c0_21] : memref<1x128xf32, #tpu.memory_space<vmem>>, vector<1x128xf32>
    %19 = vector.shape_cast %18 : vector<1x128xf32> to vector<1x128xf32>
    %20 = vector.broadcast %19 : vector<1x128xf32> to vector<16x128xf32>
    %21 = tpu.iota {dimensions = array<i32: 1>} : vector<16x128xi32>
    %22 = tpu.iota {dimensions = array<i32: 1>} : vector<16x8xi32>
    %cst = arith.constant 0.000000e+00 : f32
    %23 = vector.broadcast %cst : f32 to vector<16x32xf32>
    %cst_22 = arith.constant 0.000000e+00 : f32
    %24 = vector.broadcast %cst_22 : f32 to vector<16x32xf32>
    %cst_23 = arith.constant 0.000000e+00 : f32
    %25 = vector.broadcast %cst_23 : f32 to vector<16x32xf32>
    %cst_24 = arith.constant 0.000000e+00 : f32
    %26 = vector.broadcast %cst_24 : f32 to vector<16x32xf32>
    %c0_25 = arith.constant 0 : index
    %c0_26 = arith.constant 0 : index
    %27 = vector.load %arg1[%c0_25, %c0_26] : memref<16x32xf32, #tpu.memory_space<vmem>>, vector<16x32xf32>
    %28 = arith.truncf %27 : vector<16x32xf32> to vector<16x32xbf16>
    %c0_i32 = arith.constant 0 : i32
    %29 = vector.broadcast %c0_i32 : i32 to vector<16x8xi32>
    %cst_27 = arith.constant 0.000000e+00 : f32
    %30 = vector.broadcast %cst_27 : f32 to vector<16x8xf32>
    %cst_28 = arith.constant dense<0.000000e+00> : vector<16x128xf32>
    %31 = tpu.matmul %28, %1, %cst_28 {dimension_numbers = #tpu.dot_dimension_numbers<[1], [0], [0], [1], [0, 0, 1, 1], [], []>} : vector<16x32xbf16>, vector<32x128xbf16>, vector<16x128xf32> -> vector<16x128xf32>
    %32 = arith.truncf %23 : vector<16x32xf32> to vector<16x32xbf16>
    %cst_29 = arith.constant dense<0.000000e+00> : vector<16x128xf32>
    %33 = tpu.matmul %32, %5, %cst_29 {dimension_numbers = #tpu.dot_dimension_numbers<[1], [0], [0], [1], [0, 0, 1, 1], [], []>} : vector<16x32xbf16>, vector<32x128xbf16>, vector<16x128xf32> -> vector<16x128xf32>
    %34 = arith.addf %31, %33 : vector<16x128xf32>
    %35 = arith.addf %34, %11 : vector<16x128xf32>
    %36 = vector.extract_strided_slice %35 {offsets = [0, 0], sizes = [16, 64], strides = [1, 1]} : vector<16x128xf32> to vector<16x64xf32>
    %cst_30 = arith.constant 5.000000e-01 : f32
    %37 = vector.broadcast %cst_30 : f32 to vector<16x64xf32>
    %38 = arith.mulf %37, %36 : vector<16x64xf32>
    %39 = math.tanh %38 : vector<16x64xf32>
    %cst_31 = arith.constant 1.000000e+00 : f32
    %40 = vector.broadcast %cst_31 : f32 to vector<16x64xf32>
    %41 = arith.addf %40, %39 : vector<16x64xf32>
    %cst_32 = arith.constant 5.000000e-01 : f32
    %42 = vector.broadcast %cst_32 : f32 to vector<16x64xf32>
    %43 = arith.mulf %42, %41 : vector<16x64xf32>
    %44 = vector.extract_strided_slice %43 {offsets = [0, 0], sizes = [16, 32], strides = [1, 1]} : vector<16x64xf32> to vector<16x32xf32>
    %45 = vector.extract_strided_slice %43 {offsets = [0, 32], sizes = [16, 32], strides = [1, 1]} : vector<16x64xf32> to vector<16x32xf32>
    %46 = vector.extract_strided_slice %35 {offsets = [0, 64], sizes = [16, 32], strides = [1, 1]} : vector<16x128xf32> to vector<16x32xf32>
    %47 = math.tanh %46 : vector<16x32xf32>
    %48 = vector.extract_strided_slice %35 {offsets = [0, 96], sizes = [16, 32], strides = [1, 1]} : vector<16x128xf32> to vector<16x32xf32>
    %cst_33 = arith.constant 5.000000e-01 : f32
    %49 = vector.broadcast %cst_33 : f32 to vector<16x32xf32>
    %50 = arith.mulf %49, %48 : vector<16x32xf32>
    %51 = math.tanh %50 : vector<16x32xf32>
    %cst_34 = arith.constant 1.000000e+00 : f32
    %52 = vector.broadcast %cst_34 : f32 to vector<16x32xf32>
    %53 = arith.addf %52, %51 : vector<16x32xf32>
    %cst_35 = arith.constant 5.000000e-01 : f32
    %54 = vector.broadcast %cst_35 : f32 to vector<16x32xf32>
    %55 = arith.mulf %54, %53 : vector<16x32xf32>
    %56 = arith.mulf %45, %25 : vector<16x32xf32>
    %57 = arith.mulf %44, %47 : vector<16x32xf32>
    %58 = arith.addf %56, %57 : vector<16x32xf32>
    %59 = math.tanh %58 : vector<16x32xf32>
    %60 = arith.mulf %55, %59 : vector<16x32xf32>
    %61 = arith.truncf %60 : vector<16x32xf32> to vector<16x32xbf16>
    %cst_36 = arith.constant dense<0.000000e+00> : vector<16x128xf32>
    %62 = tpu.matmul %61, %3, %cst_36 {dimension_numbers = #tpu.dot_dimension_numbers<[1], [0], [0], [1], [0, 0, 1, 1], [], []>} : vector<16x32xbf16>, vector<32x128xbf16>, vector<16x128xf32> -> vector<16x128xf32>
    %63 = arith.truncf %24 : vector<16x32xf32> to vector<16x32xbf16>
    %cst_37 = arith.constant dense<0.000000e+00> : vector<16x128xf32>
    %64 = tpu.matmul %63, %7, %cst_37 {dimension_numbers = #tpu.dot_dimension_numbers<[1], [0], [0], [1], [0, 0, 1, 1], [], []>} : vector<16x32xbf16>, vector<32x128xbf16>, vector<16x128xf32> -> vector<16x128xf32>
    %65 = arith.addf %62, %64 : vector<16x128xf32>
    %66 = arith.addf %65, %15 : vector<16x128xf32>
    %67 = vector.extract_strided_slice %66 {offsets = [0, 0], sizes = [16, 64], strides = [1, 1]} : vector<16x128xf32> to vector<16x64xf32>
    %cst_38 = arith.constant 5.000000e-01 : f32
    %68 = vector.broadcast %cst_38 : f32 to vector<16x64xf32>
    %69 = arith.mulf %68, %67 : vector<16x64xf32>
    %70 = math.tanh %69 : vector<16x64xf32>
    %cst_39 = arith.constant 1.000000e+00 : f32
    %71 = vector.broadcast %cst_39 : f32 to vector<16x64xf32>
    %72 = arith.addf %71, %70 : vector<16x64xf32>
    %cst_40 = arith.constant 5.000000e-01 : f32
    %73 = vector.broadcast %cst_40 : f32 to vector<16x64xf32>
    %74 = arith.mulf %73, %72 : vector<16x64xf32>
    %75 = vector.extract_strided_slice %74 {offsets = [0, 0], sizes = [16, 32], strides = [1, 1]} : vector<16x64xf32> to vector<16x32xf32>
    %76 = vector.extract_strided_slice %74 {offsets = [0, 32], sizes = [16, 32], strides = [1, 1]} : vector<16x64xf32> to vector<16x32xf32>
    %77 = vector.extract_strided_slice %66 {offsets = [0, 64], sizes = [16, 32], strides = [1, 1]} : vector<16x128xf32> to vector<16x32xf32>
    %78 = math.tanh %77 : vector<16x32xf32>
    %79 = vector.extract_strided_slice %66 {offsets = [0, 96], sizes = [16, 32], strides = [1, 1]} : vector<16x128xf32> to vector<16x32xf32>
    %cst_41 = arith.constant 5.000000e-01 : f32
    %80 = vector.broadcast %cst_41 : f32 to vector<16x32xf32>
    %81 = arith.mulf %80, %79 : vector<16x32xf32>
    %82 = math.tanh %81 : vector<16x32xf32>
    %cst_42 = arith.constant 1.000000e+00 : f32
    %83 = vector.broadcast %cst_42 : f32 to vector<16x32xf32>
    %84 = arith.addf %83, %82 : vector<16x32xf32>
    %cst_43 = arith.constant 5.000000e-01 : f32
    %85 = vector.broadcast %cst_43 : f32 to vector<16x32xf32>
    %86 = arith.mulf %85, %84 : vector<16x32xf32>
    %87 = arith.mulf %76, %26 : vector<16x32xf32>
    %88 = arith.mulf %75, %78 : vector<16x32xf32>
    %89 = arith.addf %87, %88 : vector<16x32xf32>
    %90 = math.tanh %89 : vector<16x32xf32>
    %91 = arith.mulf %86, %90 : vector<16x32xf32>
    %92 = arith.truncf %91 : vector<16x32xf32> to vector<16x32xbf16>
    %cst_44 = arith.constant dense<0.000000e+00> : vector<16x128xf32>
    %93 = tpu.matmul %92, %17, %cst_44 {dimension_numbers = #tpu.dot_dimension_numbers<[1], [0], [0], [1], [0, 0, 1, 1], [], []>} : vector<16x32xbf16>, vector<32x128xbf16>, vector<16x128xf32> -> vector<16x128xf32>
    %94 = arith.addf %93, %20 : vector<16x128xf32>
    %cst_45 = arith.constant dense<0xFF800000> : vector<16xf32>
    %95 = vector.multi_reduction <maximumf>, %94, %cst_45 [1] : vector<16x128xf32> to vector<16xf32>
    %96 = vector.shape_cast %95 : vector<16xf32> to vector<16x1xf32>
    %97 = vector.broadcast %96 : vector<16x1xf32> to vector<16x128xf32>
    %98 = arith.cmpf oeq, %94, %97 : vector<16x128xf32>
    %c128_i32 = arith.constant 128 : i32
    %99 = vector.broadcast %c128_i32 : i32 to vector<16x128xi32>
    %100 = arith.select %98, %21, %99 : vector<16x128xi1>, vector<16x128xi32>
    %cst_46 = arith.constant dense<2147483647> : vector<16xi32>
    %101 = vector.multi_reduction <minsi>, %100, %cst_46 [1] : vector<16x128xi32> to vector<16xi32>
    %102 = vector.shape_cast %101 : vector<16xi32> to vector<16x1xi32>
    %c0_i32_47 = arith.constant 0 : i32
    %103 = vector.broadcast %c0_i32_47 : i32 to vector<16x8xi32>
    %104 = arith.cmpi eq, %22, %103 : vector<16x8xi32>
    %105 = vector.shape_cast %102 : vector<16x1xi32> to vector<16x1xi32>
    %106 = vector.broadcast %105 : vector<16x1xi32> to vector<16x8xi32>
    %107 = arith.select %104, %106, %29 : vector<16x8xi1>, vector<16x8xi32>
    %c0_i32_48 = arith.constant 0 : i32
    %108 = vector.broadcast %c0_i32_48 : i32 to vector<16x8xi32>
    %109 = arith.cmpi eq, %22, %108 : vector<16x8xi32>
    %110 = vector.shape_cast %96 : vector<16x1xf32> to vector<16x1xf32>
    %111 = vector.broadcast %110 : vector<16x1xf32> to vector<16x8xf32>
    %112 = arith.select %109, %111, %30 : vector<16x8xi1>, vector<16x8xf32>
    %113 = vector.broadcast %102 : vector<16x1xi32> to vector<16x128xi32>
    %114 = arith.cmpi eq, %21, %113 : vector<16x128xi32>
    %115 = arith.extui %114 : vector<16x128xi1> to vector<16x128xi32>
    %116 = arith.sitofp %115 : vector<16x128xi32> to vector<16x128xf32>
    %117 = arith.truncf %116 : vector<16x128xf32> to vector<16x128xbf16>
    %cst_49 = arith.constant dense<0.000000e+00> : vector<16x32xf32>
    %118 = tpu.matmul %117, %16, %cst_49 {dimension_numbers = #tpu.dot_dimension_numbers<[1], [0], [0], [1], [0, 0, 1, 1], [], []>} : vector<16x128xbf16>, vector<128x32xbf16>, vector<16x32xf32> -> vector<16x32xf32>
    %119 = arith.truncf %118 : vector<16x32xf32> to vector<16x32xbf16>
    %cst_50 = arith.constant dense<0.000000e+00> : vector<16x128xf32>
    %120 = tpu.matmul %119, %1, %cst_50 {dimension_numbers = #tpu.dot_dimension_numbers<[1], [0], [0], [1], [0, 0, 1, 1], [], []>} : vector<16x32xbf16>, vector<32x128xbf16>, vector<16x128xf32> -> vector<16x128xf32>
    %121 = arith.truncf %60 : vector<16x32xf32> to vector<16x32xbf16>
    %cst_51 = arith.constant dense<0.000000e+00> : vector<16x128xf32>
    %122 = tpu.matmul %121, %5, %cst_51 {dimension_numbers = #tpu.dot_dimension_numbers<[1], [0], [0], [1], [0, 0, 1, 1], [], []>} : vector<16x32xbf16>, vector<32x128xbf16>, vector<16x128xf32> -> vector<16x128xf32>
    %123 = arith.addf %120, %122 : vector<16x128xf32>
    %124 = arith.addf %123, %11 : vector<16x128xf32>
    %125 = vector.extract_strided_slice %124 {offsets = [0, 0], sizes = [16, 64], strides = [1, 1]} : vector<16x128xf32> to vector<16x64xf32>
    %cst_52 = arith.constant 5.000000e-01 : f32
    %126 = vector.broadcast %cst_52 : f32 to vector<16x64xf32>
    %127 = arith.mulf %126, %125 : vector<16x64xf32>
    %128 = math.tanh %127 : vector<16x64xf32>
    %cst_53 = arith.constant 1.000000e+00 : f32
    %129 = vector.broadcast %cst_53 : f32 to vector<16x64xf32>
    %130 = arith.addf %129, %128 : vector<16x64xf32>
    %cst_54 = arith.constant 5.000000e-01 : f32
    %131 = vector.broadcast %cst_54 : f32 to vector<16x64xf32>
    %132 = arith.mulf %131, %130 : vector<16x64xf32>
    %133 = vector.extract_strided_slice %132 {offsets = [0, 0], sizes = [16, 32], strides = [1, 1]} : vector<16x64xf32> to vector<16x32xf32>
    %134 = vector.extract_strided_slice %132 {offsets = [0, 32], sizes = [16, 32], strides = [1, 1]} : vector<16x64xf32> to vector<16x32xf32>
    %135 = vector.extract_strided_slice %124 {offsets = [0, 64], sizes = [16, 32], strides = [1, 1]} : vector<16x128xf32> to vector<16x32xf32>
    %136 = math.tanh %135 : vector<16x32xf32>
    %137 = vector.extract_strided_slice %124 {offsets = [0, 96], sizes = [16, 32], strides = [1, 1]} : vector<16x128xf32> to vector<16x32xf32>
    %cst_55 = arith.constant 5.000000e-01 : f32
    %138 = vector.broadcast %cst_55 : f32 to vector<16x32xf32>
    %139 = arith.mulf %138, %137 : vector<16x32xf32>
    %140 = math.tanh %139 : vector<16x32xf32>
    %cst_56 = arith.constant 1.000000e+00 : f32
    %141 = vector.broadcast %cst_56 : f32 to vector<16x32xf32>
    %142 = arith.addf %141, %140 : vector<16x32xf32>
    %cst_57 = arith.constant 5.000000e-01 : f32
    %143 = vector.broadcast %cst_57 : f32 to vector<16x32xf32>
    %144 = arith.mulf %143, %142 : vector<16x32xf32>
    %145 = arith.mulf %134, %58 : vector<16x32xf32>
    %146 = arith.mulf %133, %136 : vector<16x32xf32>
    %147 = arith.addf %145, %146 : vector<16x32xf32>
    %148 = math.tanh %147 : vector<16x32xf32>
    %149 = arith.mulf %144, %148 : vector<16x32xf32>
    %150 = arith.truncf %149 : vector<16x32xf32> to vector<16x32xbf16>
    %cst_58 = arith.constant dense<0.000000e+00> : vector<16x128xf32>
    %151 = tpu.matmul %150, %3, %cst_58 {dimension_numbers = #tpu.dot_dimension_numbers<[1], [0], [0], [1], [0, 0, 1, 1], [], []>} : vector<16x32xbf16>, vector<32x128xbf16>, vector<16x128xf32> -> vector<16x128xf32>
    %152 = arith.truncf %91 : vector<16x32xf32> to vector<16x32xbf16>
    %cst_59 = arith.constant dense<0.000000e+00> : vector<16x128xf32>
    %153 = tpu.matmul %152, %7, %cst_59 {dimension_numbers = #tpu.dot_dimension_numbers<[1], [0], [0], [1], [0, 0, 1, 1], [], []>} : vector<16x32xbf16>, vector<32x128xbf16>, vector<16x128xf32> -> vector<16x128xf32>
    %154 = arith.addf %151, %153 : vector<16x128xf32>
    %155 = arith.addf %154, %15 : vector<16x128xf32>
    %156 = vector.extract_strided_slice %155 {offsets = [0, 0], sizes = [16, 64], strides = [1, 1]} : vector<16x128xf32> to vector<16x64xf32>
    %cst_60 = arith.constant 5.000000e-01 : f32
    %157 = vector.broadcast %cst_60 : f32 to vector<16x64xf32>
    %158 = arith.mulf %157, %156 : vector<16x64xf32>
    %159 = math.tanh %158 : vector<16x64xf32>
    %cst_61 = arith.constant 1.000000e+00 : f32
    %160 = vector.broadcast %cst_61 : f32 to vector<16x64xf32>
    %161 = arith.addf %160, %159 : vector<16x64xf32>
    %cst_62 = arith.constant 5.000000e-01 : f32
    %162 = vector.broadcast %cst_62 : f32 to vector<16x64xf32>
    %163 = arith.mulf %162, %161 : vector<16x64xf32>
    %164 = vector.extract_strided_slice %163 {offsets = [0, 0], sizes = [16, 32], strides = [1, 1]} : vector<16x64xf32> to vector<16x32xf32>
    %165 = vector.extract_strided_slice %163 {offsets = [0, 32], sizes = [16, 32], strides = [1, 1]} : vector<16x64xf32> to vector<16x32xf32>
    %166 = vector.extract_strided_slice %155 {offsets = [0, 64], sizes = [16, 32], strides = [1, 1]} : vector<16x128xf32> to vector<16x32xf32>
    %167 = math.tanh %166 : vector<16x32xf32>
    %168 = vector.extract_strided_slice %155 {offsets = [0, 96], sizes = [16, 32], strides = [1, 1]} : vector<16x128xf32> to vector<16x32xf32>
    %cst_63 = arith.constant 5.000000e-01 : f32
    %169 = vector.broadcast %cst_63 : f32 to vector<16x32xf32>
    %170 = arith.mulf %169, %168 : vector<16x32xf32>
    %171 = math.tanh %170 : vector<16x32xf32>
    %cst_64 = arith.constant 1.000000e+00 : f32
    %172 = vector.broadcast %cst_64 : f32 to vector<16x32xf32>
    %173 = arith.addf %172, %171 : vector<16x32xf32>
    %cst_65 = arith.constant 5.000000e-01 : f32
    %174 = vector.broadcast %cst_65 : f32 to vector<16x32xf32>
    %175 = arith.mulf %174, %173 : vector<16x32xf32>
    %176 = arith.mulf %165, %89 : vector<16x32xf32>
    %177 = arith.mulf %164, %167 : vector<16x32xf32>
    %178 = arith.addf %176, %177 : vector<16x32xf32>
    %179 = math.tanh %178 : vector<16x32xf32>
    %180 = arith.mulf %175, %179 : vector<16x32xf32>
    %181 = arith.truncf %180 : vector<16x32xf32> to vector<16x32xbf16>
    %cst_66 = arith.constant dense<0.000000e+00> : vector<16x128xf32>
    %182 = tpu.matmul %181, %17, %cst_66 {dimension_numbers = #tpu.dot_dimension_numbers<[1], [0], [0], [1], [0, 0, 1, 1], [], []>} : vector<16x32xbf16>, vector<32x128xbf16>, vector<16x128xf32> -> vector<16x128xf32>
    %183 = arith.addf %182, %20 : vector<16x128xf32>
    %cst_67 = arith.constant dense<0xFF800000> : vector<16xf32>
    %184 = vector.multi_reduction <maximumf>, %183, %cst_67 [1] : vector<16x128xf32> to vector<16xf32>
    %185 = vector.shape_cast %184 : vector<16xf32> to vector<16x1xf32>
    %186 = vector.broadcast %185 : vector<16x1xf32> to vector<16x128xf32>
    %187 = arith.cmpf oeq, %183, %186 : vector<16x128xf32>
    %c128_i32_68 = arith.constant 128 : i32
    %188 = vector.broadcast %c128_i32_68 : i32 to vector<16x128xi32>
    %189 = arith.select %187, %21, %188 : vector<16x128xi1>, vector<16x128xi32>
    %cst_69 = arith.constant dense<2147483647> : vector<16xi32>
    %190 = vector.multi_reduction <minsi>, %189, %cst_69 [1] : vector<16x128xi32> to vector<16xi32>
    %191 = vector.shape_cast %190 : vector<16xi32> to vector<16x1xi32>
    %c1_i32 = arith.constant 1 : i32
    %192 = vector.broadcast %c1_i32 : i32 to vector<16x8xi32>
    %193 = arith.cmpi eq, %22, %192 : vector<16x8xi32>
    %194 = vector.shape_cast %191 : vector<16x1xi32> to vector<16x1xi32>
    %195 = vector.broadcast %194 : vector<16x1xi32> to vector<16x8xi32>
    %196 = arith.select %193, %195, %107 : vector<16x8xi1>, vector<16x8xi32>
    %c1_i32_70 = arith.constant 1 : i32
    %197 = vector.broadcast %c1_i32_70 : i32 to vector<16x8xi32>
    %198 = arith.cmpi eq, %22, %197 : vector<16x8xi32>
    %199 = vector.shape_cast %185 : vector<16x1xf32> to vector<16x1xf32>
    %200 = vector.broadcast %199 : vector<16x1xf32> to vector<16x8xf32>
    %201 = arith.select %198, %200, %112 : vector<16x8xi1>, vector<16x8xf32>
    %202 = vector.broadcast %191 : vector<16x1xi32> to vector<16x128xi32>
    %203 = arith.cmpi eq, %21, %202 : vector<16x128xi32>
    %204 = arith.extui %203 : vector<16x128xi1> to vector<16x128xi32>
    %205 = arith.sitofp %204 : vector<16x128xi32> to vector<16x128xf32>
    %206 = arith.truncf %205 : vector<16x128xf32> to vector<16x128xbf16>
    %cst_71 = arith.constant dense<0.000000e+00> : vector<16x32xf32>
    %207 = tpu.matmul %206, %16, %cst_71 {dimension_numbers = #tpu.dot_dimension_numbers<[1], [0], [0], [1], [0, 0, 1, 1], [], []>} : vector<16x128xbf16>, vector<128x32xbf16>, vector<16x32xf32> -> vector<16x32xf32>
    %208 = arith.truncf %207 : vector<16x32xf32> to vector<16x32xbf16>
    %cst_72 = arith.constant dense<0.000000e+00> : vector<16x128xf32>
    %209 = tpu.matmul %208, %1, %cst_72 {dimension_numbers = #tpu.dot_dimension_numbers<[1], [0], [0], [1], [0, 0, 1, 1], [], []>} : vector<16x32xbf16>, vector<32x128xbf16>, vector<16x128xf32> -> vector<16x128xf32>
    %210 = arith.truncf %149 : vector<16x32xf32> to vector<16x32xbf16>
    %cst_73 = arith.constant dense<0.000000e+00> : vector<16x128xf32>
    %211 = tpu.matmul %210, %5, %cst_73 {dimension_numbers = #tpu.dot_dimension_numbers<[1], [0], [0], [1], [0, 0, 1, 1], [], []>} : vector<16x32xbf16>, vector<32x128xbf16>, vector<16x128xf32> -> vector<16x128xf32>
    %212 = arith.addf %209, %211 : vector<16x128xf32>
    %213 = arith.addf %212, %11 : vector<16x128xf32>
    %214 = vector.extract_strided_slice %213 {offsets = [0, 0], sizes = [16, 64], strides = [1, 1]} : vector<16x128xf32> to vector<16x64xf32>
    %cst_74 = arith.constant 5.000000e-01 : f32
    %215 = vector.broadcast %cst_74 : f32 to vector<16x64xf32>
    %216 = arith.mulf %215, %214 : vector<16x64xf32>
    %217 = math.tanh %216 : vector<16x64xf32>
    %cst_75 = arith.constant 1.000000e+00 : f32
    %218 = vector.broadcast %cst_75 : f32 to vector<16x64xf32>
    %219 = arith.addf %218, %217 : vector<16x64xf32>
    %cst_76 = arith.constant 5.000000e-01 : f32
    %220 = vector.broadcast %cst_76 : f32 to vector<16x64xf32>
    %221 = arith.mulf %220, %219 : vector<16x64xf32>
    %222 = vector.extract_strided_slice %221 {offsets = [0, 0], sizes = [16, 32], strides = [1, 1]} : vector<16x64xf32> to vector<16x32xf32>
    %223 = vector.extract_strided_slice %221 {offsets = [0, 32], sizes = [16, 32], strides = [1, 1]} : vector<16x64xf32> to vector<16x32xf32>
    %224 = vector.extract_strided_slice %213 {offsets = [0, 64], sizes = [16, 32], strides = [1, 1]} : vector<16x128xf32> to vector<16x32xf32>
    %225 = math.tanh %224 : vector<16x32xf32>
    %226 = vector.extract_strided_slice %213 {offsets = [0, 96], sizes = [16, 32], strides = [1, 1]} : vector<16x128xf32> to vector<16x32xf32>
    %cst_77 = arith.constant 5.000000e-01 : f32
    %227 = vector.broadcast %cst_77 : f32 to vector<16x32xf32>
    %228 = arith.mulf %227, %226 : vector<16x32xf32>
    %229 = math.tanh %228 : vector<16x32xf32>
    %cst_78 = arith.constant 1.000000e+00 : f32
    %230 = vector.broadcast %cst_78 : f32 to vector<16x32xf32>
    %231 = arith.addf %230, %229 : vector<16x32xf32>
    %cst_79 = arith.constant 5.000000e-01 : f32
    %232 = vector.broadcast %cst_79 : f32 to vector<16x32xf32>
    %233 = arith.mulf %232, %231 : vector<16x32xf32>
    %234 = arith.mulf %223, %147 : vector<16x32xf32>
    %235 = arith.mulf %222, %225 : vector<16x32xf32>
    %236 = arith.addf %234, %235 : vector<16x32xf32>
    %237 = math.tanh %236 : vector<16x32xf32>
    %238 = arith.mulf %233, %237 : vector<16x32xf32>
    %239 = arith.truncf %238 : vector<16x32xf32> to vector<16x32xbf16>
    %cst_80 = arith.constant dense<0.000000e+00> : vector<16x128xf32>
    %240 = tpu.matmul %239, %3, %cst_80 {dimension_numbers = #tpu.dot_dimension_numbers<[1], [0], [0], [1], [0, 0, 1, 1], [], []>} : vector<16x32xbf16>, vector<32x128xbf16>, vector<16x128xf32> -> vector<16x128xf32>
    %241 = arith.truncf %180 : vector<16x32xf32> to vector<16x32xbf16>
    %cst_81 = arith.constant dense<0.000000e+00> : vector<16x128xf32>
    %242 = tpu.matmul %241, %7, %cst_81 {dimension_numbers = #tpu.dot_dimension_numbers<[1], [0], [0], [1], [0, 0, 1, 1], [], []>} : vector<16x32xbf16>, vector<32x128xbf16>, vector<16x128xf32> -> vector<16x128xf32>
    %243 = arith.addf %240, %242 : vector<16x128xf32>
    %244 = arith.addf %243, %15 : vector<16x128xf32>
    %245 = vector.extract_strided_slice %244 {offsets = [0, 0], sizes = [16, 64], strides = [1, 1]} : vector<16x128xf32> to vector<16x64xf32>
    %cst_82 = arith.constant 5.000000e-01 : f32
    %246 = vector.broadcast %cst_82 : f32 to vector<16x64xf32>
    %247 = arith.mulf %246, %245 : vector<16x64xf32>
    %248 = math.tanh %247 : vector<16x64xf32>
    %cst_83 = arith.constant 1.000000e+00 : f32
    %249 = vector.broadcast %cst_83 : f32 to vector<16x64xf32>
    %250 = arith.addf %249, %248 : vector<16x64xf32>
    %cst_84 = arith.constant 5.000000e-01 : f32
    %251 = vector.broadcast %cst_84 : f32 to vector<16x64xf32>
    %252 = arith.mulf %251, %250 : vector<16x64xf32>
    %253 = vector.extract_strided_slice %252 {offsets = [0, 0], sizes = [16, 32], strides = [1, 1]} : vector<16x64xf32> to vector<16x32xf32>
    %254 = vector.extract_strided_slice %252 {offsets = [0, 32], sizes = [16, 32], strides = [1, 1]} : vector<16x64xf32> to vector<16x32xf32>
    %255 = vector.extract_strided_slice %244 {offsets = [0, 64], sizes = [16, 32], strides = [1, 1]} : vector<16x128xf32> to vector<16x32xf32>
    %256 = math.tanh %255 : vector<16x32xf32>
    %257 = vector.extract_strided_slice %244 {offsets = [0, 96], sizes = [16, 32], strides = [1, 1]} : vector<16x128xf32> to vector<16x32xf32>
    %cst_85 = arith.constant 5.000000e-01 : f32
    %258 = vector.broadcast %cst_85 : f32 to vector<16x32xf32>
    %259 = arith.mulf %258, %257 : vector<16x32xf32>
    %260 = math.tanh %259 : vector<16x32xf32>
    %cst_86 = arith.constant 1.000000e+00 : f32
    %261 = vector.broadcast %cst_86 : f32 to vector<16x32xf32>
    %262 = arith.addf %261, %260 : vector<16x32xf32>
    %cst_87 = arith.constant 5.000000e-01 : f32
    %263 = vector.broadcast %cst_87 : f32 to vector<16x32xf32>
    %264 = arith.mulf %263, %262 : vector<16x32xf32>
    %265 = arith.mulf %254, %178 : vector<16x32xf32>
    %266 = arith.mulf %253, %256 : vector<16x32xf32>
    %267 = arith.addf %265, %266 : vector<16x32xf32>
    %268 = math.tanh %267 : vector<16x32xf32>
    %269 = arith.mulf %264, %268 : vector<16x32xf32>
    %270 = arith.truncf %269 : vector<16x32xf32> to vector<16x32xbf16>
    %cst_88 = arith.constant dense<0.000000e+00> : vector<16x128xf32>
    %271 = tpu.matmul %270, %17, %cst_88 {dimension_numbers = #tpu.dot_dimension_numbers<[1], [0], [0], [1], [0, 0, 1, 1], [], []>} : vector<16x32xbf16>, vector<32x128xbf16>, vector<16x128xf32> -> vector<16x128xf32>
    %272 = arith.addf %271, %20 : vector<16x128xf32>
    %cst_89 = arith.constant dense<0xFF800000> : vector<16xf32>
    %273 = vector.multi_reduction <maximumf>, %272, %cst_89 [1] : vector<16x128xf32> to vector<16xf32>
    %274 = vector.shape_cast %273 : vector<16xf32> to vector<16x1xf32>
    %275 = vector.broadcast %274 : vector<16x1xf32> to vector<16x128xf32>
    %276 = arith.cmpf oeq, %272, %275 : vector<16x128xf32>
    %c128_i32_90 = arith.constant 128 : i32
    %277 = vector.broadcast %c128_i32_90 : i32 to vector<16x128xi32>
    %278 = arith.select %276, %21, %277 : vector<16x128xi1>, vector<16x128xi32>
    %cst_91 = arith.constant dense<2147483647> : vector<16xi32>
    %279 = vector.multi_reduction <minsi>, %278, %cst_91 [1] : vector<16x128xi32> to vector<16xi32>
    %280 = vector.shape_cast %279 : vector<16xi32> to vector<16x1xi32>
    %c2_i32 = arith.constant 2 : i32
    %281 = vector.broadcast %c2_i32 : i32 to vector<16x8xi32>
    %282 = arith.cmpi eq, %22, %281 : vector<16x8xi32>
    %283 = vector.shape_cast %280 : vector<16x1xi32> to vector<16x1xi32>
    %284 = vector.broadcast %283 : vector<16x1xi32> to vector<16x8xi32>
    %285 = arith.select %282, %284, %196 : vector<16x8xi1>, vector<16x8xi32>
    %c2_i32_92 = arith.constant 2 : i32
    %286 = vector.broadcast %c2_i32_92 : i32 to vector<16x8xi32>
    %287 = arith.cmpi eq, %22, %286 : vector<16x8xi32>
    %288 = vector.shape_cast %274 : vector<16x1xf32> to vector<16x1xf32>
    %289 = vector.broadcast %288 : vector<16x1xf32> to vector<16x8xf32>
    %290 = arith.select %287, %289, %201 : vector<16x8xi1>, vector<16x8xf32>
    %291 = vector.broadcast %280 : vector<16x1xi32> to vector<16x128xi32>
    %292 = arith.cmpi eq, %21, %291 : vector<16x128xi32>
    %293 = arith.extui %292 : vector<16x128xi1> to vector<16x128xi32>
    %294 = arith.sitofp %293 : vector<16x128xi32> to vector<16x128xf32>
    %295 = arith.truncf %294 : vector<16x128xf32> to vector<16x128xbf16>
    %cst_93 = arith.constant dense<0.000000e+00> : vector<16x32xf32>
    %296 = tpu.matmul %295, %16, %cst_93 {dimension_numbers = #tpu.dot_dimension_numbers<[1], [0], [0], [1], [0, 0, 1, 1], [], []>} : vector<16x128xbf16>, vector<128x32xbf16>, vector<16x32xf32> -> vector<16x32xf32>
    %297 = arith.truncf %296 : vector<16x32xf32> to vector<16x32xbf16>
    %cst_94 = arith.constant dense<0.000000e+00> : vector<16x128xf32>
    %298 = tpu.matmul %297, %1, %cst_94 {dimension_numbers = #tpu.dot_dimension_numbers<[1], [0], [0], [1], [0, 0, 1, 1], [], []>} : vector<16x32xbf16>, vector<32x128xbf16>, vector<16x128xf32> -> vector<16x128xf32>
    %299 = arith.truncf %238 : vector<16x32xf32> to vector<16x32xbf16>
    %cst_95 = arith.constant dense<0.000000e+00> : vector<16x128xf32>
    %300 = tpu.matmul %299, %5, %cst_95 {dimension_numbers = #tpu.dot_dimension_numbers<[1], [0], [0], [1], [0, 0, 1, 1], [], []>} : vector<16x32xbf16>, vector<32x128xbf16>, vector<16x128xf32> -> vector<16x128xf32>
    %301 = arith.addf %298, %300 : vector<16x128xf32>
    %302 = arith.addf %301, %11 : vector<16x128xf32>
    %303 = vector.extract_strided_slice %302 {offsets = [0, 0], sizes = [16, 64], strides = [1, 1]} : vector<16x128xf32> to vector<16x64xf32>
    %cst_96 = arith.constant 5.000000e-01 : f32
    %304 = vector.broadcast %cst_96 : f32 to vector<16x64xf32>
    %305 = arith.mulf %304, %303 : vector<16x64xf32>
    %306 = math.tanh %305 : vector<16x64xf32>
    %cst_97 = arith.constant 1.000000e+00 : f32
    %307 = vector.broadcast %cst_97 : f32 to vector<16x64xf32>
    %308 = arith.addf %307, %306 : vector<16x64xf32>
    %cst_98 = arith.constant 5.000000e-01 : f32
    %309 = vector.broadcast %cst_98 : f32 to vector<16x64xf32>
    %310 = arith.mulf %309, %308 : vector<16x64xf32>
    %311 = vector.extract_strided_slice %310 {offsets = [0, 0], sizes = [16, 32], strides = [1, 1]} : vector<16x64xf32> to vector<16x32xf32>
    %312 = vector.extract_strided_slice %310 {offsets = [0, 32], sizes = [16, 32], strides = [1, 1]} : vector<16x64xf32> to vector<16x32xf32>
    %313 = vector.extract_strided_slice %302 {offsets = [0, 64], sizes = [16, 32], strides = [1, 1]} : vector<16x128xf32> to vector<16x32xf32>
    %314 = math.tanh %313 : vector<16x32xf32>
    %315 = vector.extract_strided_slice %302 {offsets = [0, 96], sizes = [16, 32], strides = [1, 1]} : vector<16x128xf32> to vector<16x32xf32>
    %cst_99 = arith.constant 5.000000e-01 : f32
    %316 = vector.broadcast %cst_99 : f32 to vector<16x32xf32>
    %317 = arith.mulf %316, %315 : vector<16x32xf32>
    %318 = math.tanh %317 : vector<16x32xf32>
    %cst_100 = arith.constant 1.000000e+00 : f32
    %319 = vector.broadcast %cst_100 : f32 to vector<16x32xf32>
    %320 = arith.addf %319, %318 : vector<16x32xf32>
    %cst_101 = arith.constant 5.000000e-01 : f32
    %321 = vector.broadcast %cst_101 : f32 to vector<16x32xf32>
    %322 = arith.mulf %321, %320 : vector<16x32xf32>
    %323 = arith.mulf %312, %236 : vector<16x32xf32>
    %324 = arith.mulf %311, %314 : vector<16x32xf32>
    %325 = arith.addf %323, %324 : vector<16x32xf32>
    %326 = math.tanh %325 : vector<16x32xf32>
    %327 = arith.mulf %322, %326 : vector<16x32xf32>
    %328 = arith.truncf %327 : vector<16x32xf32> to vector<16x32xbf16>
    %cst_102 = arith.constant dense<0.000000e+00> : vector<16x128xf32>
    %329 = tpu.matmul %328, %3, %cst_102 {dimension_numbers = #tpu.dot_dimension_numbers<[1], [0], [0], [1], [0, 0, 1, 1], [], []>} : vector<16x32xbf16>, vector<32x128xbf16>, vector<16x128xf32> -> vector<16x128xf32>
    %330 = arith.truncf %269 : vector<16x32xf32> to vector<16x32xbf16>
    %cst_103 = arith.constant dense<0.000000e+00> : vector<16x128xf32>
    %331 = tpu.matmul %330, %7, %cst_103 {dimension_numbers = #tpu.dot_dimension_numbers<[1], [0], [0], [1], [0, 0, 1, 1], [], []>} : vector<16x32xbf16>, vector<32x128xbf16>, vector<16x128xf32> -> vector<16x128xf32>
    %332 = arith.addf %329, %331 : vector<16x128xf32>
    %333 = arith.addf %332, %15 : vector<16x128xf32>
    %334 = vector.extract_strided_slice %333 {offsets = [0, 0], sizes = [16, 64], strides = [1, 1]} : vector<16x128xf32> to vector<16x64xf32>
    %cst_104 = arith.constant 5.000000e-01 : f32
    %335 = vector.broadcast %cst_104 : f32 to vector<16x64xf32>
    %336 = arith.mulf %335, %334 : vector<16x64xf32>
    %337 = math.tanh %336 : vector<16x64xf32>
    %cst_105 = arith.constant 1.000000e+00 : f32
    %338 = vector.broadcast %cst_105 : f32 to vector<16x64xf32>
    %339 = arith.addf %338, %337 : vector<16x64xf32>
    %cst_106 = arith.constant 5.000000e-01 : f32
    %340 = vector.broadcast %cst_106 : f32 to vector<16x64xf32>
    %341 = arith.mulf %340, %339 : vector<16x64xf32>
    %342 = vector.extract_strided_slice %341 {offsets = [0, 0], sizes = [16, 32], strides = [1, 1]} : vector<16x64xf32> to vector<16x32xf32>
    %343 = vector.extract_strided_slice %341 {offsets = [0, 32], sizes = [16, 32], strides = [1, 1]} : vector<16x64xf32> to vector<16x32xf32>
    %344 = vector.extract_strided_slice %333 {offsets = [0, 64], sizes = [16, 32], strides = [1, 1]} : vector<16x128xf32> to vector<16x32xf32>
    %345 = math.tanh %344 : vector<16x32xf32>
    %346 = vector.extract_strided_slice %333 {offsets = [0, 96], sizes = [16, 32], strides = [1, 1]} : vector<16x128xf32> to vector<16x32xf32>
    %cst_107 = arith.constant 5.000000e-01 : f32
    %347 = vector.broadcast %cst_107 : f32 to vector<16x32xf32>
    %348 = arith.mulf %347, %346 : vector<16x32xf32>
    %349 = math.tanh %348 : vector<16x32xf32>
    %cst_108 = arith.constant 1.000000e+00 : f32
    %350 = vector.broadcast %cst_108 : f32 to vector<16x32xf32>
    %351 = arith.addf %350, %349 : vector<16x32xf32>
    %cst_109 = arith.constant 5.000000e-01 : f32
    %352 = vector.broadcast %cst_109 : f32 to vector<16x32xf32>
    %353 = arith.mulf %352, %351 : vector<16x32xf32>
    %354 = arith.mulf %343, %267 : vector<16x32xf32>
    %355 = arith.mulf %342, %345 : vector<16x32xf32>
    %356 = arith.addf %354, %355 : vector<16x32xf32>
    %357 = math.tanh %356 : vector<16x32xf32>
    %358 = arith.mulf %353, %357 : vector<16x32xf32>
    %359 = arith.truncf %358 : vector<16x32xf32> to vector<16x32xbf16>
    %cst_110 = arith.constant dense<0.000000e+00> : vector<16x128xf32>
    %360 = tpu.matmul %359, %17, %cst_110 {dimension_numbers = #tpu.dot_dimension_numbers<[1], [0], [0], [1], [0, 0, 1, 1], [], []>} : vector<16x32xbf16>, vector<32x128xbf16>, vector<16x128xf32> -> vector<16x128xf32>
    %361 = arith.addf %360, %20 : vector<16x128xf32>
    %cst_111 = arith.constant dense<0xFF800000> : vector<16xf32>
    %362 = vector.multi_reduction <maximumf>, %361, %cst_111 [1] : vector<16x128xf32> to vector<16xf32>
    %363 = vector.shape_cast %362 : vector<16xf32> to vector<16x1xf32>
    %364 = vector.broadcast %363 : vector<16x1xf32> to vector<16x128xf32>
    %365 = arith.cmpf oeq, %361, %364 : vector<16x128xf32>
    %c128_i32_112 = arith.constant 128 : i32
    %366 = vector.broadcast %c128_i32_112 : i32 to vector<16x128xi32>
    %367 = arith.select %365, %21, %366 : vector<16x128xi1>, vector<16x128xi32>
    %cst_113 = arith.constant dense<2147483647> : vector<16xi32>
    %368 = vector.multi_reduction <minsi>, %367, %cst_113 [1] : vector<16x128xi32> to vector<16xi32>
    %369 = vector.shape_cast %368 : vector<16xi32> to vector<16x1xi32>
    %c3_i32 = arith.constant 3 : i32
    %370 = vector.broadcast %c3_i32 : i32 to vector<16x8xi32>
    %371 = arith.cmpi eq, %22, %370 : vector<16x8xi32>
    %372 = vector.shape_cast %369 : vector<16x1xi32> to vector<16x1xi32>
    %373 = vector.broadcast %372 : vector<16x1xi32> to vector<16x8xi32>
    %374 = arith.select %371, %373, %285 : vector<16x8xi1>, vector<16x8xi32>
    %c3_i32_114 = arith.constant 3 : i32
    %375 = vector.broadcast %c3_i32_114 : i32 to vector<16x8xi32>
    %376 = arith.cmpi eq, %22, %375 : vector<16x8xi32>
    %377 = vector.shape_cast %363 : vector<16x1xf32> to vector<16x1xf32>
    %378 = vector.broadcast %377 : vector<16x1xf32> to vector<16x8xf32>
    %379 = arith.select %376, %378, %290 : vector<16x8xi1>, vector<16x8xf32>
    %380 = vector.broadcast %369 : vector<16x1xi32> to vector<16x128xi32>
    %381 = arith.cmpi eq, %21, %380 : vector<16x128xi32>
    %382 = arith.extui %381 : vector<16x128xi1> to vector<16x128xi32>
    %383 = arith.sitofp %382 : vector<16x128xi32> to vector<16x128xf32>
    %384 = arith.truncf %383 : vector<16x128xf32> to vector<16x128xbf16>
    %cst_115 = arith.constant dense<0.000000e+00> : vector<16x32xf32>
    %385 = tpu.matmul %384, %16, %cst_115 {dimension_numbers = #tpu.dot_dimension_numbers<[1], [0], [0], [1], [0, 0, 1, 1], [], []>} : vector<16x128xbf16>, vector<128x32xbf16>, vector<16x32xf32> -> vector<16x32xf32>
    %386 = arith.truncf %385 : vector<16x32xf32> to vector<16x32xbf16>
    %cst_116 = arith.constant dense<0.000000e+00> : vector<16x128xf32>
    %387 = tpu.matmul %386, %1, %cst_116 {dimension_numbers = #tpu.dot_dimension_numbers<[1], [0], [0], [1], [0, 0, 1, 1], [], []>} : vector<16x32xbf16>, vector<32x128xbf16>, vector<16x128xf32> -> vector<16x128xf32>
    %388 = arith.truncf %327 : vector<16x32xf32> to vector<16x32xbf16>
    %cst_117 = arith.constant dense<0.000000e+00> : vector<16x128xf32>
    %389 = tpu.matmul %388, %5, %cst_117 {dimension_numbers = #tpu.dot_dimension_numbers<[1], [0], [0], [1], [0, 0, 1, 1], [], []>} : vector<16x32xbf16>, vector<32x128xbf16>, vector<16x128xf32> -> vector<16x128xf32>
    %390 = arith.addf %387, %389 : vector<16x128xf32>
    %391 = arith.addf %390, %11 : vector<16x128xf32>
    %392 = vector.extract_strided_slice %391 {offsets = [0, 0], sizes = [16, 64], strides = [1, 1]} : vector<16x128xf32> to vector<16x64xf32>
    %cst_118 = arith.constant 5.000000e-01 : f32
    %393 = vector.broadcast %cst_118 : f32 to vector<16x64xf32>
    %394 = arith.mulf %393, %392 : vector<16x64xf32>
    %395 = math.tanh %394 : vector<16x64xf32>
    %cst_119 = arith.constant 1.000000e+00 : f32
    %396 = vector.broadcast %cst_119 : f32 to vector<16x64xf32>
    %397 = arith.addf %396, %395 : vector<16x64xf32>
    %cst_120 = arith.constant 5.000000e-01 : f32
    %398 = vector.broadcast %cst_120 : f32 to vector<16x64xf32>
    %399 = arith.mulf %398, %397 : vector<16x64xf32>
    %400 = vector.extract_strided_slice %399 {offsets = [0, 0], sizes = [16, 32], strides = [1, 1]} : vector<16x64xf32> to vector<16x32xf32>
    %401 = vector.extract_strided_slice %399 {offsets = [0, 32], sizes = [16, 32], strides = [1, 1]} : vector<16x64xf32> to vector<16x32xf32>
    %402 = vector.extract_strided_slice %391 {offsets = [0, 64], sizes = [16, 32], strides = [1, 1]} : vector<16x128xf32> to vector<16x32xf32>
    %403 = math.tanh %402 : vector<16x32xf32>
    %404 = vector.extract_strided_slice %391 {offsets = [0, 96], sizes = [16, 32], strides = [1, 1]} : vector<16x128xf32> to vector<16x32xf32>
    %cst_121 = arith.constant 5.000000e-01 : f32
    %405 = vector.broadcast %cst_121 : f32 to vector<16x32xf32>
    %406 = arith.mulf %405, %404 : vector<16x32xf32>
    %407 = math.tanh %406 : vector<16x32xf32>
    %cst_122 = arith.constant 1.000000e+00 : f32
    %408 = vector.broadcast %cst_122 : f32 to vector<16x32xf32>
    %409 = arith.addf %408, %407 : vector<16x32xf32>
    %cst_123 = arith.constant 5.000000e-01 : f32
    %410 = vector.broadcast %cst_123 : f32 to vector<16x32xf32>
    %411 = arith.mulf %410, %409 : vector<16x32xf32>
    %412 = arith.mulf %401, %325 : vector<16x32xf32>
    %413 = arith.mulf %400, %403 : vector<16x32xf32>
    %414 = arith.addf %412, %413 : vector<16x32xf32>
    %415 = math.tanh %414 : vector<16x32xf32>
    %416 = arith.mulf %411, %415 : vector<16x32xf32>
    %417 = arith.truncf %416 : vector<16x32xf32> to vector<16x32xbf16>
    %cst_124 = arith.constant dense<0.000000e+00> : vector<16x128xf32>
    %418 = tpu.matmul %417, %3, %cst_124 {dimension_numbers = #tpu.dot_dimension_numbers<[1], [0], [0], [1], [0, 0, 1, 1], [], []>} : vector<16x32xbf16>, vector<32x128xbf16>, vector<16x128xf32> -> vector<16x128xf32>
    %419 = arith.truncf %358 : vector<16x32xf32> to vector<16x32xbf16>
    %cst_125 = arith.constant dense<0.000000e+00> : vector<16x128xf32>
    %420 = tpu.matmul %419, %7, %cst_125 {dimension_numbers = #tpu.dot_dimension_numbers<[1], [0], [0], [1], [0, 0, 1, 1], [], []>} : vector<16x32xbf16>, vector<32x128xbf16>, vector<16x128xf32> -> vector<16x128xf32>
    %421 = arith.addf %418, %420 : vector<16x128xf32>
    %422 = arith.addf %421, %15 : vector<16x128xf32>
    %423 = vector.extract_strided_slice %422 {offsets = [0, 0], sizes = [16, 64], strides = [1, 1]} : vector<16x128xf32> to vector<16x64xf32>
    %cst_126 = arith.constant 5.000000e-01 : f32
    %424 = vector.broadcast %cst_126 : f32 to vector<16x64xf32>
    %425 = arith.mulf %424, %423 : vector<16x64xf32>
    %426 = math.tanh %425 : vector<16x64xf32>
    %cst_127 = arith.constant 1.000000e+00 : f32
    %427 = vector.broadcast %cst_127 : f32 to vector<16x64xf32>
    %428 = arith.addf %427, %426 : vector<16x64xf32>
    %cst_128 = arith.constant 5.000000e-01 : f32
    %429 = vector.broadcast %cst_128 : f32 to vector<16x64xf32>
    %430 = arith.mulf %429, %428 : vector<16x64xf32>
    %431 = vector.extract_strided_slice %430 {offsets = [0, 0], sizes = [16, 32], strides = [1, 1]} : vector<16x64xf32> to vector<16x32xf32>
    %432 = vector.extract_strided_slice %430 {offsets = [0, 32], sizes = [16, 32], strides = [1, 1]} : vector<16x64xf32> to vector<16x32xf32>
    %433 = vector.extract_strided_slice %422 {offsets = [0, 64], sizes = [16, 32], strides = [1, 1]} : vector<16x128xf32> to vector<16x32xf32>
    %434 = math.tanh %433 : vector<16x32xf32>
    %435 = vector.extract_strided_slice %422 {offsets = [0, 96], sizes = [16, 32], strides = [1, 1]} : vector<16x128xf32> to vector<16x32xf32>
    %cst_129 = arith.constant 5.000000e-01 : f32
    %436 = vector.broadcast %cst_129 : f32 to vector<16x32xf32>
    %437 = arith.mulf %436, %435 : vector<16x32xf32>
    %438 = math.tanh %437 : vector<16x32xf32>
    %cst_130 = arith.constant 1.000000e+00 : f32
    %439 = vector.broadcast %cst_130 : f32 to vector<16x32xf32>
    %440 = arith.addf %439, %438 : vector<16x32xf32>
    %cst_131 = arith.constant 5.000000e-01 : f32
    %441 = vector.broadcast %cst_131 : f32 to vector<16x32xf32>
    %442 = arith.mulf %441, %440 : vector<16x32xf32>
    %443 = arith.mulf %432, %356 : vector<16x32xf32>
    %444 = arith.mulf %431, %434 : vector<16x32xf32>
    %445 = arith.addf %443, %444 : vector<16x32xf32>
    %446 = math.tanh %445 : vector<16x32xf32>
    %447 = arith.mulf %442, %446 : vector<16x32xf32>
    %448 = arith.truncf %447 : vector<16x32xf32> to vector<16x32xbf16>
    %cst_132 = arith.constant dense<0.000000e+00> : vector<16x128xf32>
    %449 = tpu.matmul %448, %17, %cst_132 {dimension_numbers = #tpu.dot_dimension_numbers<[1], [0], [0], [1], [0, 0, 1, 1], [], []>} : vector<16x32xbf16>, vector<32x128xbf16>, vector<16x128xf32> -> vector<16x128xf32>
    %450 = arith.addf %449, %20 : vector<16x128xf32>
    %cst_133 = arith.constant dense<0xFF800000> : vector<16xf32>
    %451 = vector.multi_reduction <maximumf>, %450, %cst_133 [1] : vector<16x128xf32> to vector<16xf32>
    %452 = vector.shape_cast %451 : vector<16xf32> to vector<16x1xf32>
    %453 = vector.broadcast %452 : vector<16x1xf32> to vector<16x128xf32>
    %454 = arith.cmpf oeq, %450, %453 : vector<16x128xf32>
    %c128_i32_134 = arith.constant 128 : i32
    %455 = vector.broadcast %c128_i32_134 : i32 to vector<16x128xi32>
    %456 = arith.select %454, %21, %455 : vector<16x128xi1>, vector<16x128xi32>
    %cst_135 = arith.constant dense<2147483647> : vector<16xi32>
    %457 = vector.multi_reduction <minsi>, %456, %cst_135 [1] : vector<16x128xi32> to vector<16xi32>
    %458 = vector.shape_cast %457 : vector<16xi32> to vector<16x1xi32>
    %c4_i32 = arith.constant 4 : i32
    %459 = vector.broadcast %c4_i32 : i32 to vector<16x8xi32>
    %460 = arith.cmpi eq, %22, %459 : vector<16x8xi32>
    %461 = vector.shape_cast %458 : vector<16x1xi32> to vector<16x1xi32>
    %462 = vector.broadcast %461 : vector<16x1xi32> to vector<16x8xi32>
    %463 = arith.select %460, %462, %374 : vector<16x8xi1>, vector<16x8xi32>
    %c4_i32_136 = arith.constant 4 : i32
    %464 = vector.broadcast %c4_i32_136 : i32 to vector<16x8xi32>
    %465 = arith.cmpi eq, %22, %464 : vector<16x8xi32>
    %466 = vector.shape_cast %452 : vector<16x1xf32> to vector<16x1xf32>
    %467 = vector.broadcast %466 : vector<16x1xf32> to vector<16x8xf32>
    %468 = arith.select %465, %467, %379 : vector<16x8xi1>, vector<16x8xf32>
    %469 = vector.broadcast %458 : vector<16x1xi32> to vector<16x128xi32>
    %470 = arith.cmpi eq, %21, %469 : vector<16x128xi32>
    %471 = arith.extui %470 : vector<16x128xi1> to vector<16x128xi32>
    %472 = arith.sitofp %471 : vector<16x128xi32> to vector<16x128xf32>
    %473 = arith.truncf %472 : vector<16x128xf32> to vector<16x128xbf16>
    %cst_137 = arith.constant dense<0.000000e+00> : vector<16x32xf32>
    %474 = tpu.matmul %473, %16, %cst_137 {dimension_numbers = #tpu.dot_dimension_numbers<[1], [0], [0], [1], [0, 0, 1, 1], [], []>} : vector<16x128xbf16>, vector<128x32xbf16>, vector<16x32xf32> -> vector<16x32xf32>
    %475 = arith.truncf %474 : vector<16x32xf32> to vector<16x32xbf16>
    %cst_138 = arith.constant dense<0.000000e+00> : vector<16x128xf32>
    %476 = tpu.matmul %475, %1, %cst_138 {dimension_numbers = #tpu.dot_dimension_numbers<[1], [0], [0], [1], [0, 0, 1, 1], [], []>} : vector<16x32xbf16>, vector<32x128xbf16>, vector<16x128xf32> -> vector<16x128xf32>
    %477 = arith.truncf %416 : vector<16x32xf32> to vector<16x32xbf16>
    %cst_139 = arith.constant dense<0.000000e+00> : vector<16x128xf32>
    %478 = tpu.matmul %477, %5, %cst_139 {dimension_numbers = #tpu.dot_dimension_numbers<[1], [0], [0], [1], [0, 0, 1, 1], [], []>} : vector<16x32xbf16>, vector<32x128xbf16>, vector<16x128xf32> -> vector<16x128xf32>
    %479 = arith.addf %476, %478 : vector<16x128xf32>
    %480 = arith.addf %479, %11 : vector<16x128xf32>
    %481 = vector.extract_strided_slice %480 {offsets = [0, 0], sizes = [16, 64], strides = [1, 1]} : vector<16x128xf32> to vector<16x64xf32>
    %cst_140 = arith.constant 5.000000e-01 : f32
    %482 = vector.broadcast %cst_140 : f32 to vector<16x64xf32>
    %483 = arith.mulf %482, %481 : vector<16x64xf32>
    %484 = math.tanh %483 : vector<16x64xf32>
    %cst_141 = arith.constant 1.000000e+00 : f32
    %485 = vector.broadcast %cst_141 : f32 to vector<16x64xf32>
    %486 = arith.addf %485, %484 : vector<16x64xf32>
    %cst_142 = arith.constant 5.000000e-01 : f32
    %487 = vector.broadcast %cst_142 : f32 to vector<16x64xf32>
    %488 = arith.mulf %487, %486 : vector<16x64xf32>
    %489 = vector.extract_strided_slice %488 {offsets = [0, 0], sizes = [16, 32], strides = [1, 1]} : vector<16x64xf32> to vector<16x32xf32>
    %490 = vector.extract_strided_slice %488 {offsets = [0, 32], sizes = [16, 32], strides = [1, 1]} : vector<16x64xf32> to vector<16x32xf32>
    %491 = vector.extract_strided_slice %480 {offsets = [0, 64], sizes = [16, 32], strides = [1, 1]} : vector<16x128xf32> to vector<16x32xf32>
    %492 = math.tanh %491 : vector<16x32xf32>
    %493 = vector.extract_strided_slice %480 {offsets = [0, 96], sizes = [16, 32], strides = [1, 1]} : vector<16x128xf32> to vector<16x32xf32>
    %cst_143 = arith.constant 5.000000e-01 : f32
    %494 = vector.broadcast %cst_143 : f32 to vector<16x32xf32>
    %495 = arith.mulf %494, %493 : vector<16x32xf32>
    %496 = math.tanh %495 : vector<16x32xf32>
    %cst_144 = arith.constant 1.000000e+00 : f32
    %497 = vector.broadcast %cst_144 : f32 to vector<16x32xf32>
    %498 = arith.addf %497, %496 : vector<16x32xf32>
    %cst_145 = arith.constant 5.000000e-01 : f32
    %499 = vector.broadcast %cst_145 : f32 to vector<16x32xf32>
    %500 = arith.mulf %499, %498 : vector<16x32xf32>
    %501 = arith.mulf %490, %414 : vector<16x32xf32>
    %502 = arith.mulf %489, %492 : vector<16x32xf32>
    %503 = arith.addf %501, %502 : vector<16x32xf32>
    %504 = math.tanh %503 : vector<16x32xf32>
    %505 = arith.mulf %500, %504 : vector<16x32xf32>
    %506 = arith.truncf %505 : vector<16x32xf32> to vector<16x32xbf16>
    %cst_146 = arith.constant dense<0.000000e+00> : vector<16x128xf32>
    %507 = tpu.matmul %506, %3, %cst_146 {dimension_numbers = #tpu.dot_dimension_numbers<[1], [0], [0], [1], [0, 0, 1, 1], [], []>} : vector<16x32xbf16>, vector<32x128xbf16>, vector<16x128xf32> -> vector<16x128xf32>
    %508 = arith.truncf %447 : vector<16x32xf32> to vector<16x32xbf16>
    %cst_147 = arith.constant dense<0.000000e+00> : vector<16x128xf32>
    %509 = tpu.matmul %508, %7, %cst_147 {dimension_numbers = #tpu.dot_dimension_numbers<[1], [0], [0], [1], [0, 0, 1, 1], [], []>} : vector<16x32xbf16>, vector<32x128xbf16>, vector<16x128xf32> -> vector<16x128xf32>
    %510 = arith.addf %507, %509 : vector<16x128xf32>
    %511 = arith.addf %510, %15 : vector<16x128xf32>
    %512 = vector.extract_strided_slice %511 {offsets = [0, 0], sizes = [16, 64], strides = [1, 1]} : vector<16x128xf32> to vector<16x64xf32>
    %cst_148 = arith.constant 5.000000e-01 : f32
    %513 = vector.broadcast %cst_148 : f32 to vector<16x64xf32>
    %514 = arith.mulf %513, %512 : vector<16x64xf32>
    %515 = math.tanh %514 : vector<16x64xf32>
    %cst_149 = arith.constant 1.000000e+00 : f32
    %516 = vector.broadcast %cst_149 : f32 to vector<16x64xf32>
    %517 = arith.addf %516, %515 : vector<16x64xf32>
    %cst_150 = arith.constant 5.000000e-01 : f32
    %518 = vector.broadcast %cst_150 : f32 to vector<16x64xf32>
    %519 = arith.mulf %518, %517 : vector<16x64xf32>
    %520 = vector.extract_strided_slice %519 {offsets = [0, 0], sizes = [16, 32], strides = [1, 1]} : vector<16x64xf32> to vector<16x32xf32>
    %521 = vector.extract_strided_slice %519 {offsets = [0, 32], sizes = [16, 32], strides = [1, 1]} : vector<16x64xf32> to vector<16x32xf32>
    %522 = vector.extract_strided_slice %511 {offsets = [0, 64], sizes = [16, 32], strides = [1, 1]} : vector<16x128xf32> to vector<16x32xf32>
    %523 = math.tanh %522 : vector<16x32xf32>
    %524 = vector.extract_strided_slice %511 {offsets = [0, 96], sizes = [16, 32], strides = [1, 1]} : vector<16x128xf32> to vector<16x32xf32>
    %cst_151 = arith.constant 5.000000e-01 : f32
    %525 = vector.broadcast %cst_151 : f32 to vector<16x32xf32>
    %526 = arith.mulf %525, %524 : vector<16x32xf32>
    %527 = math.tanh %526 : vector<16x32xf32>
    %cst_152 = arith.constant 1.000000e+00 : f32
    %528 = vector.broadcast %cst_152 : f32 to vector<16x32xf32>
    %529 = arith.addf %528, %527 : vector<16x32xf32>
    %cst_153 = arith.constant 5.000000e-01 : f32
    %530 = vector.broadcast %cst_153 : f32 to vector<16x32xf32>
    %531 = arith.mulf %530, %529 : vector<16x32xf32>
    %532 = arith.mulf %521, %445 : vector<16x32xf32>
    %533 = arith.mulf %520, %523 : vector<16x32xf32>
    %534 = arith.addf %532, %533 : vector<16x32xf32>
    %535 = math.tanh %534 : vector<16x32xf32>
    %536 = arith.mulf %531, %535 : vector<16x32xf32>
    %537 = arith.truncf %536 : vector<16x32xf32> to vector<16x32xbf16>
    %cst_154 = arith.constant dense<0.000000e+00> : vector<16x128xf32>
    %538 = tpu.matmul %537, %17, %cst_154 {dimension_numbers = #tpu.dot_dimension_numbers<[1], [0], [0], [1], [0, 0, 1, 1], [], []>} : vector<16x32xbf16>, vector<32x128xbf16>, vector<16x128xf32> -> vector<16x128xf32>
    %539 = arith.addf %538, %20 : vector<16x128xf32>
    %cst_155 = arith.constant dense<0xFF800000> : vector<16xf32>
    %540 = vector.multi_reduction <maximumf>, %539, %cst_155 [1] : vector<16x128xf32> to vector<16xf32>
    %541 = vector.shape_cast %540 : vector<16xf32> to vector<16x1xf32>
    %542 = vector.broadcast %541 : vector<16x1xf32> to vector<16x128xf32>
    %543 = arith.cmpf oeq, %539, %542 : vector<16x128xf32>
    %c128_i32_156 = arith.constant 128 : i32
    %544 = vector.broadcast %c128_i32_156 : i32 to vector<16x128xi32>
    %545 = arith.select %543, %21, %544 : vector<16x128xi1>, vector<16x128xi32>
    %cst_157 = arith.constant dense<2147483647> : vector<16xi32>
    %546 = vector.multi_reduction <minsi>, %545, %cst_157 [1] : vector<16x128xi32> to vector<16xi32>
    %547 = vector.shape_cast %546 : vector<16xi32> to vector<16x1xi32>
    %c5_i32 = arith.constant 5 : i32
    %548 = vector.broadcast %c5_i32 : i32 to vector<16x8xi32>
    %549 = arith.cmpi eq, %22, %548 : vector<16x8xi32>
    %550 = vector.shape_cast %547 : vector<16x1xi32> to vector<16x1xi32>
    %551 = vector.broadcast %550 : vector<16x1xi32> to vector<16x8xi32>
    %552 = arith.select %549, %551, %463 : vector<16x8xi1>, vector<16x8xi32>
    %c5_i32_158 = arith.constant 5 : i32
    %553 = vector.broadcast %c5_i32_158 : i32 to vector<16x8xi32>
    %554 = arith.cmpi eq, %22, %553 : vector<16x8xi32>
    %555 = vector.shape_cast %541 : vector<16x1xf32> to vector<16x1xf32>
    %556 = vector.broadcast %555 : vector<16x1xf32> to vector<16x8xf32>
    %557 = arith.select %554, %556, %468 : vector<16x8xi1>, vector<16x8xf32>
    %558 = vector.broadcast %547 : vector<16x1xi32> to vector<16x128xi32>
    %559 = arith.cmpi eq, %21, %558 : vector<16x128xi32>
    %560 = arith.extui %559 : vector<16x128xi1> to vector<16x128xi32>
    %561 = arith.sitofp %560 : vector<16x128xi32> to vector<16x128xf32>
    %562 = arith.truncf %561 : vector<16x128xf32> to vector<16x128xbf16>
    %cst_159 = arith.constant dense<0.000000e+00> : vector<16x32xf32>
    %563 = tpu.matmul %562, %16, %cst_159 {dimension_numbers = #tpu.dot_dimension_numbers<[1], [0], [0], [1], [0, 0, 1, 1], [], []>} : vector<16x128xbf16>, vector<128x32xbf16>, vector<16x32xf32> -> vector<16x32xf32>
    %564 = arith.truncf %563 : vector<16x32xf32> to vector<16x32xbf16>
    %cst_160 = arith.constant dense<0.000000e+00> : vector<16x128xf32>
    %565 = tpu.matmul %564, %1, %cst_160 {dimension_numbers = #tpu.dot_dimension_numbers<[1], [0], [0], [1], [0, 0, 1, 1], [], []>} : vector<16x32xbf16>, vector<32x128xbf16>, vector<16x128xf32> -> vector<16x128xf32>
    %566 = arith.truncf %505 : vector<16x32xf32> to vector<16x32xbf16>
    %cst_161 = arith.constant dense<0.000000e+00> : vector<16x128xf32>
    %567 = tpu.matmul %566, %5, %cst_161 {dimension_numbers = #tpu.dot_dimension_numbers<[1], [0], [0], [1], [0, 0, 1, 1], [], []>} : vector<16x32xbf16>, vector<32x128xbf16>, vector<16x128xf32> -> vector<16x128xf32>
    %568 = arith.addf %565, %567 : vector<16x128xf32>
    %569 = arith.addf %568, %11 : vector<16x128xf32>
    %570 = vector.extract_strided_slice %569 {offsets = [0, 0], sizes = [16, 64], strides = [1, 1]} : vector<16x128xf32> to vector<16x64xf32>
    %cst_162 = arith.constant 5.000000e-01 : f32
    %571 = vector.broadcast %cst_162 : f32 to vector<16x64xf32>
    %572 = arith.mulf %571, %570 : vector<16x64xf32>
    %573 = math.tanh %572 : vector<16x64xf32>
    %cst_163 = arith.constant 1.000000e+00 : f32
    %574 = vector.broadcast %cst_163 : f32 to vector<16x64xf32>
    %575 = arith.addf %574, %573 : vector<16x64xf32>
    %cst_164 = arith.constant 5.000000e-01 : f32
    %576 = vector.broadcast %cst_164 : f32 to vector<16x64xf32>
    %577 = arith.mulf %576, %575 : vector<16x64xf32>
    %578 = vector.extract_strided_slice %577 {offsets = [0, 0], sizes = [16, 32], strides = [1, 1]} : vector<16x64xf32> to vector<16x32xf32>
    %579 = vector.extract_strided_slice %577 {offsets = [0, 32], sizes = [16, 32], strides = [1, 1]} : vector<16x64xf32> to vector<16x32xf32>
    %580 = vector.extract_strided_slice %569 {offsets = [0, 64], sizes = [16, 32], strides = [1, 1]} : vector<16x128xf32> to vector<16x32xf32>
    %581 = math.tanh %580 : vector<16x32xf32>
    %582 = vector.extract_strided_slice %569 {offsets = [0, 96], sizes = [16, 32], strides = [1, 1]} : vector<16x128xf32> to vector<16x32xf32>
    %cst_165 = arith.constant 5.000000e-01 : f32
    %583 = vector.broadcast %cst_165 : f32 to vector<16x32xf32>
    %584 = arith.mulf %583, %582 : vector<16x32xf32>
    %585 = math.tanh %584 : vector<16x32xf32>
    %cst_166 = arith.constant 1.000000e+00 : f32
    %586 = vector.broadcast %cst_166 : f32 to vector<16x32xf32>
    %587 = arith.addf %586, %585 : vector<16x32xf32>
    %cst_167 = arith.constant 5.000000e-01 : f32
    %588 = vector.broadcast %cst_167 : f32 to vector<16x32xf32>
    %589 = arith.mulf %588, %587 : vector<16x32xf32>
    %590 = arith.mulf %579, %503 : vector<16x32xf32>
    %591 = arith.mulf %578, %581 : vector<16x32xf32>
    %592 = arith.addf %590, %591 : vector<16x32xf32>
    %593 = math.tanh %592 : vector<16x32xf32>
    %594 = arith.mulf %589, %593 : vector<16x32xf32>
    %595 = arith.truncf %594 : vector<16x32xf32> to vector<16x32xbf16>
    %cst_168 = arith.constant dense<0.000000e+00> : vector<16x128xf32>
    %596 = tpu.matmul %595, %3, %cst_168 {dimension_numbers = #tpu.dot_dimension_numbers<[1], [0], [0], [1], [0, 0, 1, 1], [], []>} : vector<16x32xbf16>, vector<32x128xbf16>, vector<16x128xf32> -> vector<16x128xf32>
    %597 = arith.truncf %536 : vector<16x32xf32> to vector<16x32xbf16>
    %cst_169 = arith.constant dense<0.000000e+00> : vector<16x128xf32>
    %598 = tpu.matmul %597, %7, %cst_169 {dimension_numbers = #tpu.dot_dimension_numbers<[1], [0], [0], [1], [0, 0, 1, 1], [], []>} : vector<16x32xbf16>, vector<32x128xbf16>, vector<16x128xf32> -> vector<16x128xf32>
    %599 = arith.addf %596, %598 : vector<16x128xf32>
    %600 = arith.addf %599, %15 : vector<16x128xf32>
    %601 = vector.extract_strided_slice %600 {offsets = [0, 0], sizes = [16, 64], strides = [1, 1]} : vector<16x128xf32> to vector<16x64xf32>
    %cst_170 = arith.constant 5.000000e-01 : f32
    %602 = vector.broadcast %cst_170 : f32 to vector<16x64xf32>
    %603 = arith.mulf %602, %601 : vector<16x64xf32>
    %604 = math.tanh %603 : vector<16x64xf32>
    %cst_171 = arith.constant 1.000000e+00 : f32
    %605 = vector.broadcast %cst_171 : f32 to vector<16x64xf32>
    %606 = arith.addf %605, %604 : vector<16x64xf32>
    %cst_172 = arith.constant 5.000000e-01 : f32
    %607 = vector.broadcast %cst_172 : f32 to vector<16x64xf32>
    %608 = arith.mulf %607, %606 : vector<16x64xf32>
    %609 = vector.extract_strided_slice %608 {offsets = [0, 0], sizes = [16, 32], strides = [1, 1]} : vector<16x64xf32> to vector<16x32xf32>
    %610 = vector.extract_strided_slice %608 {offsets = [0, 32], sizes = [16, 32], strides = [1, 1]} : vector<16x64xf32> to vector<16x32xf32>
    %611 = vector.extract_strided_slice %600 {offsets = [0, 64], sizes = [16, 32], strides = [1, 1]} : vector<16x128xf32> to vector<16x32xf32>
    %612 = math.tanh %611 : vector<16x32xf32>
    %613 = vector.extract_strided_slice %600 {offsets = [0, 96], sizes = [16, 32], strides = [1, 1]} : vector<16x128xf32> to vector<16x32xf32>
    %cst_173 = arith.constant 5.000000e-01 : f32
    %614 = vector.broadcast %cst_173 : f32 to vector<16x32xf32>
    %615 = arith.mulf %614, %613 : vector<16x32xf32>
    %616 = math.tanh %615 : vector<16x32xf32>
    %cst_174 = arith.constant 1.000000e+00 : f32
    %617 = vector.broadcast %cst_174 : f32 to vector<16x32xf32>
    %618 = arith.addf %617, %616 : vector<16x32xf32>
    %cst_175 = arith.constant 5.000000e-01 : f32
    %619 = vector.broadcast %cst_175 : f32 to vector<16x32xf32>
    %620 = arith.mulf %619, %618 : vector<16x32xf32>
    %621 = arith.mulf %610, %534 : vector<16x32xf32>
    %622 = arith.mulf %609, %612 : vector<16x32xf32>
    %623 = arith.addf %621, %622 : vector<16x32xf32>
    %624 = math.tanh %623 : vector<16x32xf32>
    %625 = arith.mulf %620, %624 : vector<16x32xf32>
    %626 = arith.truncf %625 : vector<16x32xf32> to vector<16x32xbf16>
    %cst_176 = arith.constant dense<0.000000e+00> : vector<16x128xf32>
    %627 = tpu.matmul %626, %17, %cst_176 {dimension_numbers = #tpu.dot_dimension_numbers<[1], [0], [0], [1], [0, 0, 1, 1], [], []>} : vector<16x32xbf16>, vector<32x128xbf16>, vector<16x128xf32> -> vector<16x128xf32>
    %628 = arith.addf %627, %20 : vector<16x128xf32>
    %cst_177 = arith.constant dense<0xFF800000> : vector<16xf32>
    %629 = vector.multi_reduction <maximumf>, %628, %cst_177 [1] : vector<16x128xf32> to vector<16xf32>
    %630 = vector.shape_cast %629 : vector<16xf32> to vector<16x1xf32>
    %631 = vector.broadcast %630 : vector<16x1xf32> to vector<16x128xf32>
    %632 = arith.cmpf oeq, %628, %631 : vector<16x128xf32>
    %c128_i32_178 = arith.constant 128 : i32
    %633 = vector.broadcast %c128_i32_178 : i32 to vector<16x128xi32>
    %634 = arith.select %632, %21, %633 : vector<16x128xi1>, vector<16x128xi32>
    %cst_179 = arith.constant dense<2147483647> : vector<16xi32>
    %635 = vector.multi_reduction <minsi>, %634, %cst_179 [1] : vector<16x128xi32> to vector<16xi32>
    %636 = vector.shape_cast %635 : vector<16xi32> to vector<16x1xi32>
    %c6_i32 = arith.constant 6 : i32
    %637 = vector.broadcast %c6_i32 : i32 to vector<16x8xi32>
    %638 = arith.cmpi eq, %22, %637 : vector<16x8xi32>
    %639 = vector.shape_cast %636 : vector<16x1xi32> to vector<16x1xi32>
    %640 = vector.broadcast %639 : vector<16x1xi32> to vector<16x8xi32>
    %641 = arith.select %638, %640, %552 : vector<16x8xi1>, vector<16x8xi32>
    %c6_i32_180 = arith.constant 6 : i32
    %642 = vector.broadcast %c6_i32_180 : i32 to vector<16x8xi32>
    %643 = arith.cmpi eq, %22, %642 : vector<16x8xi32>
    %644 = vector.shape_cast %630 : vector<16x1xf32> to vector<16x1xf32>
    %645 = vector.broadcast %644 : vector<16x1xf32> to vector<16x8xf32>
    %646 = arith.select %643, %645, %557 : vector<16x8xi1>, vector<16x8xf32>
    %647 = vector.broadcast %636 : vector<16x1xi32> to vector<16x128xi32>
    %648 = arith.cmpi eq, %21, %647 : vector<16x128xi32>
    %649 = arith.extui %648 : vector<16x128xi1> to vector<16x128xi32>
    %650 = arith.sitofp %649 : vector<16x128xi32> to vector<16x128xf32>
    %651 = arith.truncf %650 : vector<16x128xf32> to vector<16x128xbf16>
    %cst_181 = arith.constant dense<0.000000e+00> : vector<16x32xf32>
    %652 = tpu.matmul %651, %16, %cst_181 {dimension_numbers = #tpu.dot_dimension_numbers<[1], [0], [0], [1], [0, 0, 1, 1], [], []>} : vector<16x128xbf16>, vector<128x32xbf16>, vector<16x32xf32> -> vector<16x32xf32>
    %653 = arith.truncf %652 : vector<16x32xf32> to vector<16x32xbf16>
    %cst_182 = arith.constant dense<0.000000e+00> : vector<16x128xf32>
    %654 = tpu.matmul %653, %1, %cst_182 {dimension_numbers = #tpu.dot_dimension_numbers<[1], [0], [0], [1], [0, 0, 1, 1], [], []>} : vector<16x32xbf16>, vector<32x128xbf16>, vector<16x128xf32> -> vector<16x128xf32>
    %655 = arith.truncf %594 : vector<16x32xf32> to vector<16x32xbf16>
    %cst_183 = arith.constant dense<0.000000e+00> : vector<16x128xf32>
    %656 = tpu.matmul %655, %5, %cst_183 {dimension_numbers = #tpu.dot_dimension_numbers<[1], [0], [0], [1], [0, 0, 1, 1], [], []>} : vector<16x32xbf16>, vector<32x128xbf16>, vector<16x128xf32> -> vector<16x128xf32>
    %657 = arith.addf %654, %656 : vector<16x128xf32>
    %658 = arith.addf %657, %11 : vector<16x128xf32>
    %659 = vector.extract_strided_slice %658 {offsets = [0, 0], sizes = [16, 64], strides = [1, 1]} : vector<16x128xf32> to vector<16x64xf32>
    %cst_184 = arith.constant 5.000000e-01 : f32
    %660 = vector.broadcast %cst_184 : f32 to vector<16x64xf32>
    %661 = arith.mulf %660, %659 : vector<16x64xf32>
    %662 = math.tanh %661 : vector<16x64xf32>
    %cst_185 = arith.constant 1.000000e+00 : f32
    %663 = vector.broadcast %cst_185 : f32 to vector<16x64xf32>
    %664 = arith.addf %663, %662 : vector<16x64xf32>
    %cst_186 = arith.constant 5.000000e-01 : f32
    %665 = vector.broadcast %cst_186 : f32 to vector<16x64xf32>
    %666 = arith.mulf %665, %664 : vector<16x64xf32>
    %667 = vector.extract_strided_slice %666 {offsets = [0, 0], sizes = [16, 32], strides = [1, 1]} : vector<16x64xf32> to vector<16x32xf32>
    %668 = vector.extract_strided_slice %666 {offsets = [0, 32], sizes = [16, 32], strides = [1, 1]} : vector<16x64xf32> to vector<16x32xf32>
    %669 = vector.extract_strided_slice %658 {offsets = [0, 64], sizes = [16, 32], strides = [1, 1]} : vector<16x128xf32> to vector<16x32xf32>
    %670 = math.tanh %669 : vector<16x32xf32>
    %671 = vector.extract_strided_slice %658 {offsets = [0, 96], sizes = [16, 32], strides = [1, 1]} : vector<16x128xf32> to vector<16x32xf32>
    %cst_187 = arith.constant 5.000000e-01 : f32
    %672 = vector.broadcast %cst_187 : f32 to vector<16x32xf32>
    %673 = arith.mulf %672, %671 : vector<16x32xf32>
    %674 = math.tanh %673 : vector<16x32xf32>
    %cst_188 = arith.constant 1.000000e+00 : f32
    %675 = vector.broadcast %cst_188 : f32 to vector<16x32xf32>
    %676 = arith.addf %675, %674 : vector<16x32xf32>
    %cst_189 = arith.constant 5.000000e-01 : f32
    %677 = vector.broadcast %cst_189 : f32 to vector<16x32xf32>
    %678 = arith.mulf %677, %676 : vector<16x32xf32>
    %679 = arith.mulf %668, %592 : vector<16x32xf32>
    %680 = arith.mulf %667, %670 : vector<16x32xf32>
    %681 = arith.addf %679, %680 : vector<16x32xf32>
    %682 = math.tanh %681 : vector<16x32xf32>
    %683 = arith.mulf %678, %682 : vector<16x32xf32>
    %684 = arith.truncf %683 : vector<16x32xf32> to vector<16x32xbf16>
    %cst_190 = arith.constant dense<0.000000e+00> : vector<16x128xf32>
    %685 = tpu.matmul %684, %3, %cst_190 {dimension_numbers = #tpu.dot_dimension_numbers<[1], [0], [0], [1], [0, 0, 1, 1], [], []>} : vector<16x32xbf16>, vector<32x128xbf16>, vector<16x128xf32> -> vector<16x128xf32>
    %686 = arith.truncf %625 : vector<16x32xf32> to vector<16x32xbf16>
    %cst_191 = arith.constant dense<0.000000e+00> : vector<16x128xf32>
    %687 = tpu.matmul %686, %7, %cst_191 {dimension_numbers = #tpu.dot_dimension_numbers<[1], [0], [0], [1], [0, 0, 1, 1], [], []>} : vector<16x32xbf16>, vector<32x128xbf16>, vector<16x128xf32> -> vector<16x128xf32>
    %688 = arith.addf %685, %687 : vector<16x128xf32>
    %689 = arith.addf %688, %15 : vector<16x128xf32>
    %690 = vector.extract_strided_slice %689 {offsets = [0, 0], sizes = [16, 64], strides = [1, 1]} : vector<16x128xf32> to vector<16x64xf32>
    %cst_192 = arith.constant 5.000000e-01 : f32
    %691 = vector.broadcast %cst_192 : f32 to vector<16x64xf32>
    %692 = arith.mulf %691, %690 : vector<16x64xf32>
    %693 = math.tanh %692 : vector<16x64xf32>
    %cst_193 = arith.constant 1.000000e+00 : f32
    %694 = vector.broadcast %cst_193 : f32 to vector<16x64xf32>
    %695 = arith.addf %694, %693 : vector<16x64xf32>
    %cst_194 = arith.constant 5.000000e-01 : f32
    %696 = vector.broadcast %cst_194 : f32 to vector<16x64xf32>
    %697 = arith.mulf %696, %695 : vector<16x64xf32>
    %698 = vector.extract_strided_slice %697 {offsets = [0, 0], sizes = [16, 32], strides = [1, 1]} : vector<16x64xf32> to vector<16x32xf32>
    %699 = vector.extract_strided_slice %697 {offsets = [0, 32], sizes = [16, 32], strides = [1, 1]} : vector<16x64xf32> to vector<16x32xf32>
    %700 = vector.extract_strided_slice %689 {offsets = [0, 64], sizes = [16, 32], strides = [1, 1]} : vector<16x128xf32> to vector<16x32xf32>
    %701 = math.tanh %700 : vector<16x32xf32>
    %702 = vector.extract_strided_slice %689 {offsets = [0, 96], sizes = [16, 32], strides = [1, 1]} : vector<16x128xf32> to vector<16x32xf32>
    %cst_195 = arith.constant 5.000000e-01 : f32
    %703 = vector.broadcast %cst_195 : f32 to vector<16x32xf32>
    %704 = arith.mulf %703, %702 : vector<16x32xf32>
    %705 = math.tanh %704 : vector<16x32xf32>
    %cst_196 = arith.constant 1.000000e+00 : f32
    %706 = vector.broadcast %cst_196 : f32 to vector<16x32xf32>
    %707 = arith.addf %706, %705 : vector<16x32xf32>
    %cst_197 = arith.constant 5.000000e-01 : f32
    %708 = vector.broadcast %cst_197 : f32 to vector<16x32xf32>
    %709 = arith.mulf %708, %707 : vector<16x32xf32>
    %710 = arith.mulf %699, %623 : vector<16x32xf32>
    %711 = arith.mulf %698, %701 : vector<16x32xf32>
    %712 = arith.addf %710, %711 : vector<16x32xf32>
    %713 = math.tanh %712 : vector<16x32xf32>
    %714 = arith.mulf %709, %713 : vector<16x32xf32>
    %715 = arith.truncf %714 : vector<16x32xf32> to vector<16x32xbf16>
    %cst_198 = arith.constant dense<0.000000e+00> : vector<16x128xf32>
    %716 = tpu.matmul %715, %17, %cst_198 {dimension_numbers = #tpu.dot_dimension_numbers<[1], [0], [0], [1], [0, 0, 1, 1], [], []>} : vector<16x32xbf16>, vector<32x128xbf16>, vector<16x128xf32> -> vector<16x128xf32>
    %717 = arith.addf %716, %20 : vector<16x128xf32>
    %cst_199 = arith.constant dense<0xFF800000> : vector<16xf32>
    %718 = vector.multi_reduction <maximumf>, %717, %cst_199 [1] : vector<16x128xf32> to vector<16xf32>
    %719 = vector.shape_cast %718 : vector<16xf32> to vector<16x1xf32>
    %720 = vector.broadcast %719 : vector<16x1xf32> to vector<16x128xf32>
    %721 = arith.cmpf oeq, %717, %720 : vector<16x128xf32>
    %c128_i32_200 = arith.constant 128 : i32
    %722 = vector.broadcast %c128_i32_200 : i32 to vector<16x128xi32>
    %723 = arith.select %721, %21, %722 : vector<16x128xi1>, vector<16x128xi32>
    %cst_201 = arith.constant dense<2147483647> : vector<16xi32>
    %724 = vector.multi_reduction <minsi>, %723, %cst_201 [1] : vector<16x128xi32> to vector<16xi32>
    %725 = vector.shape_cast %724 : vector<16xi32> to vector<16x1xi32>
    %c7_i32 = arith.constant 7 : i32
    %726 = vector.broadcast %c7_i32 : i32 to vector<16x8xi32>
    %727 = arith.cmpi eq, %22, %726 : vector<16x8xi32>
    %728 = vector.shape_cast %725 : vector<16x1xi32> to vector<16x1xi32>
    %729 = vector.broadcast %728 : vector<16x1xi32> to vector<16x8xi32>
    %730 = arith.select %727, %729, %641 : vector<16x8xi1>, vector<16x8xi32>
    %c7_i32_202 = arith.constant 7 : i32
    %731 = vector.broadcast %c7_i32_202 : i32 to vector<16x8xi32>
    %732 = arith.cmpi eq, %22, %731 : vector<16x8xi32>
    %733 = vector.shape_cast %719 : vector<16x1xf32> to vector<16x1xf32>
    %734 = vector.broadcast %733 : vector<16x1xf32> to vector<16x8xf32>
    %735 = arith.select %732, %734, %646 : vector<16x8xi1>, vector<16x8xf32>
    %c0_203 = arith.constant 0 : index
    %c0_204 = arith.constant 0 : index
    %736 = vector.load %arg8[%c0_203, %c0_204] : memref<16x8xi32, #tpu.memory_space<vmem>>, vector<16x8xi32>
    tpu.vector_store %arg8[%c0_203, %c0_204], %730 {strides = array<i32>} : memref<16x8xi32, #tpu.memory_space<vmem>>, vector<16x8xi32>,
    %c0_205 = arith.constant 0 : index
    %c0_206 = arith.constant 0 : index
    %737 = vector.load %arg9[%c0_205, %c0_206] : memref<16x8xf32, #tpu.memory_space<vmem>>, vector<16x8xf32>
    tpu.vector_store %arg9[%c0_205, %c0_206], %735 {strides = array<i32>} : memref<16x8xf32, #tpu.memory_space<vmem>>, vector<16x8xf32>,
    return
  }
  func.func @transform_0(%arg0: i32) -> (i32, i32) {
    %c0_i32 = arith.constant 0 : i32
    %c0_i32_0 = arith.constant 0 : i32
    %c0_i32_1 = arith.constant 0 : i32
    return %c0_i32, %c0_i32_0 : i32, i32
  }
  func.func @transform_1(%arg0: i32) -> (i32, i32) {
    %c0_i32 = arith.constant 0 : i32
    %c0_i32_0 = arith.constant 0 : i32
    %c0_i32_1 = arith.constant 0 : i32
    return %c0_i32, %c0_i32_0 : i32, i32
  }
  func.func @transform_2(%arg0: i32) -> (i32, i32, i32) {
    %c0_i32 = arith.constant 0 : i32
    %c0_i32_0 = arith.constant 0 : i32
    %c0_i32_1 = arith.constant 0 : i32
    %c0_i32_2 = arith.constant 0 : i32
    return %c0_i32, %c0_i32_0, %c0_i32_1 : i32, i32, i32
  }
  func.func @transform_3(%arg0: i32) -> (i32, i32, i32) {
    %c0_i32 = arith.constant 0 : i32
    %c0_i32_0 = arith.constant 0 : i32
    %c0_i32_1 = arith.constant 0 : i32
    %c0_i32_2 = arith.constant 0 : i32
    return %c0_i32, %c0_i32_0, %c0_i32_1 : i32, i32, i32
  }
  func.func @transform_4(%arg0: i32) -> (i32, i32, i32) {
    %c0_i32 = arith.constant 0 : i32
    %c0_i32_0 = arith.constant 0 : i32
    %c0_i32_1 = arith.constant 0 : i32
    %c0_i32_2 = arith.constant 0 : i32
    return %c0_i32, %c0_i32_0, %c0_i32_1 : i32, i32, i32
  }
  func.func @transform_5(%arg0: i32) -> (i32, i32) {
    %c0_i32 = arith.constant 0 : i32
    %c0_i32_0 = arith.constant 0 : i32
    %c0_i32_1 = arith.constant 0 : i32
    return %c0_i32, %c0_i32_0 : i32, i32
  }
  func.func @transform_6(%arg0: i32) -> (i32, i32) {
    %c0_i32 = arith.constant 0 : i32
    %c0_i32_0 = arith.constant 0 : i32
    %c0_i32_1 = arith.constant 0 : i32
    return %c0_i32, %c0_i32_0 : i32, i32
  }
  func.func @transform_7(%arg0: i32) -> (i32, i32) {
    %c0_i32 = arith.constant 0 : i32
    %c0_i32_0 = arith.constant 0 : i32
    %c0_i32_1 = arith.constant 0 : i32
    return %c0_i32, %c0_i32_0 : i32, i32
  }
  func.func @transform_8(%arg0: i32) -> (i32, i32) {
    %c0_i32 = arith.constant 0 : i32
    %c0_i32_0 = arith.constant 0 : i32
    %c0_i32_1 = arith.constant 0 : i32
    return %c0_i32, %c0_i32_0 : i32, i32
  }
}

</mosaic_0001>

<bundles_post_ra>
// kernel: tpu_custom_call.1
= control target key start
LH: loop header
LB: loop body
LE: loop exit
PB: predicated region body
PF: predicated region fallthrough
CT: control target
= control target key end

     0   :  { %v4399_v0 = vmov 0.0   ;;  %vm4400_vm0 = vmmov 0   ;;  %vm106_vm1 = vcmask 261120   ;;  %v4401_v8 = vmov 0   ;;  %s4402_s18 = smov 64   ;;  %s4403_s19 = smov 32   ;;  %s5774_s3 = inlined_call_operand.vmem [shape: bf16[2,32,128], index: 3, kind: input, shape index: {}]   ;;  %s5775_s2 = inlined_call_operand.vmem [shape: bf16[2,32,128], index: 2, kind: input, shape index: {}]   ;;  %s5776_s0 = inlined_call_operand.vmem [shape: f32[16,32], index: 0, kind: input, shape index: {}]   ;;  %s5777_s4 = inlined_call_operand.vmem [shape: f32[2,1,128], index: 4, kind: input, shape index: {}]   ;;  %s5778_s5 = inlined_call_operand.vmem [shape: bf16[32,128], index: 5, kind: input, shape index: {}]   ;;  %s5779_s6 = inlined_call_operand.vmem [shape: f32[1,128], index: 6, kind: input, shape index: {}]   ;;  %s5780_s1 = inlined_call_operand.vmem [shape: bf16[128,32], index: 1, kind: input, shape index: {}]   ;;  %s5781_s8 = inlined_call_operand.vmem [shape: f32[16,8], index: 8, kind: output, shape index: {1}]   ;;  %s5782_s7 = inlined_call_operand.vmem [shape: s32[16,8], index: 7, kind: output, shape index: {0}]  }
   0x1   :  { %3681 = vmatprep.subr.bf16.mxu0 %v4399_v0  ;;  %3689 = vmatprep.subr.bf16.mxu1 %v4399_v0  ;;  %v4455_v1 = vld [vmem:[%s5774_s3] sm:$0xff]   ;;  %v4470_v3 = vld [vmem:[%s5774_s3 + $0x8] sm:$0xff]   ;;  %v4516_v42 = vld [vmem:[%s5774_s3 + $0x10] sm:$0xff]  }
   0x2   :  { %v4460_v2 = vld [vmem:[%s5775_s2] sm:$0xff]   ;;  %3685 = vmatprep.mubr.msk.bf16.mxu0 %vm4400_vm0, %v4399_v0  ;;  %3693 = vmatprep.mubr.msk.bf16.mxu1 %vm4400_vm0, %v4399_v0  ;;  %v4477_v4 = vld [vmem:[%s5775_s2 + $0x8] sm:$0xff]   ;;  %v4521_v43 = vld [vmem:[%s5775_s2 + $0x10] sm:$0xff]  }
   0x3   :  { %3682 = vmatpush3.bf16.msra.mxu0 %v4455_v1  ;;  %3690 = vmatpush3.bf16.msra.mxu1 %v4460_v2  ;;  %v91_v5 = vld [vmem:[%s5776_s0] sm:$0xff]  ;;  %v92_v6 = vld [vmem:[%s5776_s0 + $0x8] sm:$0xff]  ;;  %v4528_v44 = vld [vmem:[%s5774_s3 + $0x18] sm:$0xff]  }
   0x4   :  { %3683 = vmatprep.subr.bf16.mxu0 %v4399_v0  ;;  %3691 = vmatprep.subr.bf16.mxu1 %v4399_v0  ;;  %v93_v7 = vpack.c.bf16 %v92_v6, %v91_v5  ;;  %v4499_v10 = vld [vmem:[%s5777_s4] ss:$0 sm:$0xff]  ;;  %v4533_v45 = vld [vmem:[%s5775_s2 + $0x18] sm:$0xff]   ;;  %v4556_v58 = vld [vmem:[%s5777_s4 + $0x1] ss:$0 sm:$0xff] }
   0x7   :  { %3684 = vmatpush3.bf16.msra.mxu0 %v4470_v3  ;;  %3692 = vmatpush3.bf16.msra.mxu1 %v4477_v4 }
   0x8   :  { %3697 = vmatprep.subr.bf16.mxu0 %v4399_v0  ;;  %3705 = vmatprep.subr.bf16.mxu1 %v4399_v0 }
   0xa   :  { %3686 = vmatmul.mubr.bf16.vlgmr.msra.gmra.mrb[0].mxu0 %v4401_v8  ;;  %3694 = vmatmul.mubr.msk.bf16.vlgmr.msra.gmra.mrb[0].mxu1 %vm106_vm1, %v93_v7 }
   0xb   :  { %3701 = vmatprep.mubr.msk.bf16.mxu0 %vm4400_vm0, %v4399_v0  ;;  %3709 = vmatprep.mubr.msk.bf16.mxu1 %vm4400_vm0, %v4399_v0 }
   0xc   :  { %3698 = vmatpush3.bf16.msra.mxu0 %v4516_v42  ;;  %3706 = vmatpush3.bf16.msra.mxu1 %v4521_v43 }
   0xd   :  { %3699 = vmatprep.subr.bf16.mxu0 %v4399_v0  ;;  %3707 = vmatprep.subr.bf16.mxu1 %v4399_v0 }
  0x10   :  { %3700 = vmatpush3.bf16.msra.mxu0 %v4528_v44  ;;  %3708 = vmatpush3.bf16.msra.mxu1 %v4533_v45 }
  0x11   :  { %3713 = vmatprep.subr.bf16.mxu0 %v4399_v0  ;;  %3721 = vmatprep.subr.bf16.mxu1 %v4399_v0 }
  0x13   :  { %3702 = vmatmul.mubr.bf16.vlgmr.msra.gmra.mrb[4].mxu0 %v4401_v8 }
  0x14   :  { %3717 = vmatprep.mubr.msk.bf16.mxu0 %vm4400_vm0, %v4399_v0 }
  0xdd   :  { %v144_v9 = vpop.f32.mrb[0].mxu0  ;;  %v200_v11 = vpop.f32.mrb[0].mxu1 }
  0xde   :  { %v3687_v12 = vpop.f32.mrb[1].mxu0  ;;  %v201_v13 = vadd.f32 %v200_v11, %v144_v9  ;;  %v3695_v14 = vpop.f32.mrb[1].mxu1 }
  0xdf   :  { %v147_v15 = vpop.f32.mrb[2].mxu0  ;;  %v203_v16 = vpop.f32.mrb[2].mxu1 }
  0xe0   :  { %v3688_v17 = vpop.f32.mrb[3].mxu0  ;;  %v207_v18 = vadd.f32 %v4499_v10, %v201_v13  ;;  %v204_v19 = vadd.f32 %v203_v16, %v147_v15  ;;  %v3696_v20 = vpop.f32.mrb[3].mxu1 }
  0xe2   :  { %4165 = vtanh.f32 %v207_v18  ;;  %v208_v21 = vadd.f32 %v4499_v10, %v204_v19  ;;  %v209_v24 = vmul.f32 0.5, %v207_v18 }
  0xe4   :  { %4167 = vtanh.f32 %v208_v21  ;;  %v210_v25 = vmul.f32 0.5, %v208_v21 }
  0xe5   :  { %4169 = vtanh.f32 %v209_v24 }
  0xe6   :  { %4171 = vtanh.f32 %v210_v25  ;;  %v300_v53 = vpop.f32.mrb[4].mxu0 }
  0xe7   :  { %v3703_v54 = vpop.f32.mrb[5].mxu0 }
  0xe8   :  { %v303_v55 = vpop.f32.mrb[6].mxu0 }
  0xe9   :  { %v3704_v56 = vpop.f32.mrb[7].mxu0 }
  0xea   :  { %v89_v56 = vlaneseq }
  0xec   :  { %v4166_v22 = vpop.eup %4165 }
  0xed   :  { %223 = vrot.lane.b32.xlu0 %v4166_v22, %s4402_s18 }
  0xee   :  { %v4168_v23 = vpop.eup %4167 }
  0xef   :  { %v4170_v26 = vpop.eup %4169 }
  0xf0   :  { %v213_v27 = vadd.f32 1.0, %v4170_v26  ;;  %v4172_v28 = vpop.eup %4171 }
  0xf1   :  { %225 = vrot.lane.b32.xlu0 %v4168_v23, %s4402_s18  ;;  %v214_v30 = vadd.f32 1.0, %v4172_v28 }
  0xf2   :  { %v215_v29 = vmul.f32 0.5, %v213_v27 }
  0xf3   :  { %v216_v33 = vmul.f32 0.5, %v214_v30  ;;  %v4579_v30 = vld [vmem:[%s5778_s5 + $0x8] sm:$0xff]  }
  0xf4   :  { %v219_v36 = vmul.f32 0.0, %v215_v29 }
  0xf5   :  { %v220_v39 = vmul.f32 0.0, %v216_v33 }
 0x15f   :  { %v224_v31 = vpop.permute.xlu0 %223 }
 0x160   :  { %v229_v32 = vmul.f32 %v224_v31, %v215_v29 }
 0x162   :  { %233 = vrot.lane.b32.xlu1 %v229_v32, %s4403_s19 }
 0x163   :  { %v226_v34 = vpop.permute.xlu0 %225 }
 0x164   :  { %v230_v35 = vmul.f32 %v226_v34, %v216_v33 }
 0x166   :  { %235 = vrot.lane.b32.xlu1 %v230_v35, %s4403_s19 }
 0x1d4   :  { %v234_v37 = vpop.permute.xlu1 %233 }
 0x1d5   :  { %v4507_v38 = vadd.f32 %v234_v37, %v219_v36 }
 0x1d7   :  { %4173 = vtanh.f32 %v4507_v38 }
 0x1d8   :  { %v236_v40 = vpop.permute.xlu1 %235 }
 0x1d9   :  { %v4510_v41 = vadd.f32 %v236_v40, %v220_v39  ;;  %v4608_v40 = vld [vmem:[%s5779_s6] ss:$0 sm:$0xff] }
 0x1db   :  { %4175 = vtanh.f32 %v4510_v41 }
 0x1e1   :  { %v4174_v46 = vpop.eup %4173 }
 0x1e2   :  { %245 = vrot.lane.b32.xlu0 %v4174_v46, %s4402_s18 }
 0x1e5   :  { %v4176_v47 = vpop.eup %4175 }
 0x1e6   :  { %247 = vrot.lane.b32.xlu1 %v4176_v47, %s4402_s18 }
 0x254   :  { %v246_v48 = vpop.permute.xlu0 %245 }
 0x255   :  { %v251_v50 = vmul.f32 %v246_v48, %v215_v29  ;;  %v4573_v29 = vld [vmem:[%s5778_s5] sm:$0xff]  }
 0x256   :  { %3714 = vmatpush3.bf16.msra.mxu0 %v4573_v29 }
 0x257   :  { %3715 = vmatprep.subr.bf16.mxu0 %v4399_v0 }
 0x258   :  { %v248_v49 = vpop.permute.xlu1 %247 }
 0x259   :  { %v252_v51 = vmul.f32 %v248_v49, %v216_v33 }
 0x25a   :  { %3716 = vmatpush3.bf16.msra.mxu0 %v4579_v30 }
 0x25b   :  { %v253_v52 = vpack.c.bf16 %v252_v51, %v251_v50  ;;  %3741 = vmatprep.subr.bf16.mxu0 %v4399_v0 }
 0x25d   :  { %308 = vrot.lane.b32.xlu0 %v253_v52, %s4403_s19 }
 0x2cf   :  { %v4547_v57 = vpop.permute.xlu0 %308 }
 0x2d0   :  { %3710 = vmatmul.mubr.msk.bf16.vlgmr.msra.gmra.mrb[4].mxu1 %vm106_vm1, %v4547_v57 }
 0x2d1   :  { %3737 = vmatprep.mubr.msk.bf16.mxu1 %vm4400_vm0, %v4399_v0 }
 0x3a3   :  { %v359_v59 = vpop.f32.mrb[4].mxu1 }
 0x3a4   :  { %v360_v60 = vadd.f32 %v359_v59, %v300_v53  ;;  %v3711_v61 = vpop.f32.mrb[5].mxu1 }
 0x3a5   :  { %v362_v62 = vpop.f32.mrb[6].mxu1 }
 0x3a6   :  { %v366_v63 = vadd.f32 %v4556_v58, %v360_v60  ;;  %v363_v5 = vadd.f32 %v362_v62, %v303_v55  ;;  %v3712_v6 = vpop.f32.mrb[7].mxu1 }
 0x3a8   :  { %4177 = vtanh.f32 %v366_v63  ;;  %v367_v7 = vadd.f32 %v4556_v58, %v363_v5  ;;  %v368_v11 = vmul.f32 0.5, %v366_v63 }
 0x3aa   :  { %4179 = vtanh.f32 %v367_v7  ;;  %v369_v12 = vmul.f32 0.5, %v367_v7 }
 0x3ab   :  { %4181 = vtanh.f32 %v368_v11  ;;  %v4641_v11 = vld [vmem:[%s5780_s1 + $0x10] sm:$0xff]  }
 0x3ac   :  { %4183 = vtanh.f32 %v369_v12  ;;  %v4649_v12 = vld [vmem:[%s5780_s1 + $0x18] sm:$0xff]  }
 0x3b2   :  { %v4178_v8 = vpop.eup %4177 }
 0x3b3   :  { %382 = vrot.lane.b32.xlu1 %v4178_v8, %s4402_s18  ;;  %v4629_v8 = vld [vmem:[%s5780_s1] sm:$0xff]  }
 0x3b4   :  { %v4180_v9 = vpop.eup %4179  ;;  %3722 = vmatpush3.bf16.msra.mxu1 %v4629_v8 }
 0x3b5   :  { %384 = vrot.lane.b32.xlu0 %v4180_v9, %s4402_s18  ;;  %v4182_v13 = vpop.eup %4181  ;;  %v4635_v9 = vld [vmem:[%s5780_s1 + $0x8] sm:$0xff]   ;;  %3723 = vmatprep.subr.bf16.mxu1 %v4399_v0 }
 0x3b6   :  { %v4184_v14 = vpop.eup %4183  ;;  %v372_v15 = vadd.f32 1.0, %v4182_v13  ;;  %v4656_v13 = vld [vmem:[%s5780_s1 + $0x20] sm:$0xff]  }
 0x3b7   :  { %v373_v16 = vadd.f32 1.0, %v4184_v14  ;;  %v4663_v14 = vld [vmem:[%s5780_s1 + $0x28] sm:$0xff]  }
 0x3b8   :  { %v374_v17 = vmul.f32 0.5, %v372_v15  ;;  %3724 = vmatpush3.bf16.msra.mxu1 %v4635_v9 }
 0x3b9   :  { %v375_v20 = vmul.f32 0.5, %v373_v16  ;;  %3725 = vmatprep.subr.bf16.mxu1 %v4399_v0 }
 0x3ba   :  { %v378_v23 = vmul.f32 0.0, %v374_v17 }
 0x3bb   :  { %v379_v26 = vmul.f32 0.0, %v375_v20 }
 0x3bc   :  { %3726 = vmatpush3.bf16.msra.mxu1 %v4641_v11 }
 0x3bd   :  { %3727 = vmatprep.subr.bf16.mxu1 %v4399_v0 }
 0x3c0   :  { %3728 = vmatpush3.bf16.msra.mxu1 %v4649_v12 }
 0x3c1   :  { %3729 = vmatprep.subr.bf16.mxu1 %v4399_v0 }
 0x3c4   :  { %3730 = vmatpush3.bf16.msra.mxu1 %v4656_v13 }
 0x3c5   :  { %3731 = vmatprep.subr.bf16.mxu1 %v4399_v0 }
 0x3c8   :  { %3732 = vmatpush3.bf16.msra.mxu1 %v4663_v14 }
 0x3c9   :  { %3733 = vmatprep.subr.bf16.mxu1 %v4399_v0 }
 0x425   :  { %v383_v18 = vpop.permute.xlu1 %382 }
 0x426   :  { %v388_v19 = vmul.f32 %v383_v18, %v374_v17 }
 0x427   :  { %v385_v21 = vpop.permute.xlu0 %384 }
 0x428   :  { %392 = vrot.lane.b32.xlu1 %v388_v19, %s4403_s19  ;;  %v389_v22 = vmul.f32 %v385_v21, %v375_v20 }
 0x42a   :  { %394 = vrot.lane.b32.xlu0 %v389_v22, %s4403_s19 }
 0x49a   :  { %v393_v24 = vpop.permute.xlu1 %392 }
 0x49b   :  { %v4564_v25 = vadd.f32 %v393_v24, %v378_v23  ;;  %v4671_v23 = vld [vmem:[%s5780_s1 + $0x30] sm:$0xff]   ;;  %v4678_v24 = vld [vmem:[%s5780_s1 + $0x38] sm:$0xff]  }
 0x49c   :  { %v395_v27 = vpop.permute.xlu0 %394  ;;  %3734 = vmatpush3.bf16.msra.mxu1 %v4671_v23 }
 0x49d   :  { %4185 = vtanh.f32 %v4564_v25  ;;  %v4567_v28 = vadd.f32 %v395_v27, %v379_v26  ;;  %3735 = vmatprep.subr.bf16.mxu1 %v4399_v0 }
 0x49f   :  { %4187 = vtanh.f32 %v4567_v28 }
 0x4a0   :  { %3736 = vmatpush3.bf16.msra.mxu1 %v4678_v24 }
 0x4a1   :  { %3773 = vmatprep.subr.bf16.mxu1 %v4399_v0 }
 0x4a7   :  { %v4186_v31 = vpop.eup %4185 }
 0x4a8   :  { %404 = vrot.lane.b32.xlu1 %v4186_v31, %s4402_s18 }
 0x4a9   :  { %v4188_v32 = vpop.eup %4187 }
 0x4aa   :  { %406 = vrot.lane.b32.xlu0 %v4188_v32, %s4402_s18 }
 0x51a   :  { %v405_v33 = vpop.permute.xlu1 %404 }
 0x51b   :  { %v410_v35 = vmul.f32 %v405_v33, %v374_v17 }
 0x51c   :  { %v407_v34 = vpop.permute.xlu0 %406 }
 0x51d   :  { %v411_v36 = vmul.f32 %v407_v34, %v375_v20 }
 0x51f   :  { %v412_v37 = vpack.c.bf16 %v411_v36, %v410_v35 }
 0x521   :  { %414 = vrot.lane.b32.xlu1 %v412_v37, %s4403_s19 }
 0x593   :  { %v4587_v39 = vpop.permute.xlu1 %414 }
 0x594   :  { %3718 = vmatmul.mubr.msk.bf16.vlgmr.msra.gmra.mrb[8].mxu0 %vm106_vm1, %v4587_v39 }
 0x595   :  { %3742 = vmatpush3.bf16.msra.mxu0 %v4455_v1  ;;  %3745 = vmatprep.mubr.msk.bf16.mxu0 %vm4400_vm0, %v4399_v0 }
 0x596   :  { %3743 = vmatprep.subr.bf16.mxu0 %v4399_v0 }
 0x599   :  { %3744 = vmatpush3.bf16.msra.mxu0 %v4470_v3 }
 0x59a   :  { %3749 = vmatprep.subr.bf16.mxu0 %v4399_v0 }
 0x59c   :  { %3746 = vmatmul.mubr.msk.bf16.vlgmr.msra.gmra.mrb[12].mxu0 %vm106_vm1, %v4547_v57  ;;  %v4616_v57 = vand.u32 127, %v89_v56 }
 0x59d   :  { %3750 = vmatpush3.bf16.msra.mxu0 %v4460_v2  ;;  %3753 = vmatprep.mubr.msk.bf16.mxu0 %vm4400_vm0, %v4399_v0 }
 0x59e   :  { %3751 = vmatprep.subr.bf16.mxu0 %v4399_v0  ;;  %vm508_vm13 = vcmp.eq.s32.totalorder %v4616_v57, 0  ;;  %vm960_vm14 = vcmp.eq.s32.totalorder %v4616_v57, 1 }
 0x5a1   :  { %3752 = vmatpush3.bf16.msra.mxu0 %v4477_v4 }
 0x5a2   :  { %3757 = vmatprep.subr.bf16.mxu0 %v4399_v0 }
 0x667   :  { %v465_v46 = vpop.f32.mrb[8].mxu0 }
 0x668   :  { %v466_v47 = vadd.f32 %v4608_v40, %v465_v46  ;;  %v3719_v48 = vpop.f32.mrb[9].mxu0 }
 0x669   :  { %v468_v49 = vpop.f32.mrb[10].mxu0 }
 0x66a   :  { %v469_v50 = vadd.f32 %v4608_v40, %v468_v49  ;;  %472 = vmax.xlane.f32.xlu0 %v466_v47  ;;  %v3720_v51 = vpop.f32.mrb[11].mxu0 }
 0x66c   :  { %474 = vmax.xlane.f32.xlu1 %v469_v50 }
 0x66f   :  { %v4612_v52 = vpop.f32.mrb[12].mxu0 }
 0x670   :  { %v3747_v53 = vpop.f32.mrb[13].mxu0 }
 0x671   :  { %v4614_v54 = vpop.f32.mrb[14].mxu0 }
 0x672   :  { %v3748_v55 = vpop.f32.mrb[15].mxu0 }
 0x6f7   :  { %v4618_v59 = vpop.xlane.xlu0 %472 }
 0x6f8   :  { %vm476_vm2 = vcmp.eq.f32.partialorder %v466_v47, %v4618_v59  ;;  %v4404_v47 = vmov 1.0|1.0  }
 0x6f9   :  { %v4621_v60 = vpop.xlane.xlu1 %474  ;;  %v478_v61 = vsel %vm476_vm2, %v4616_v57, 128 }
 0x6fa   :  { %vm477_vm3 = vcmp.eq.f32.partialorder %v469_v50, %v4621_v60  ;;  %v481_v62 = vshra.s32 %v478_v61, 16  ;;  %v480_v15 = vand.u32 65535, %v478_v61 }
 0x6fb   :  { %v479_v63 = vsel %vm477_vm3, %v4616_v57, 128 }
 0x6fc   :  { %v483_v5 = vcvt.s32.f32 %v481_v62  ;;  %v495_v6 = vshra.s32 %v479_v63, 16  ;;  %v482_v17 = vcvt.s32.f32 %v480_v15  ;;  %v494_v18 = vand.u32 65535, %v479_v63 }
 0x6fe   :  { %484 = vmin.xlane.f32.xlu0 %v483_v5  ;;  %v497_v7 = vcvt.s32.f32 %v495_v6  ;;  %v496_v21 = vcvt.s32.f32 %v494_v18 }
 0x702   :  { %498 = vmin.xlane.f32.xlu0 %v497_v7 }
 0x78b   :  { %v485_v16 = vpop.xlane.xlu0 %484 }
 0x78c   :  { %vm486_vm4 = vcmp.eq.f32.partialorder %v483_v5, %v485_v16  ;;  %v491_v26 = vcvt.f32.s32 %v485_v16 }
 0x78d   :  { %v487_v19 = vsel %vm486_vm4, %v482_v17, inf }
 0x78e   :  { %488 = vmin.xlane.f32.xlu1 %v487_v19  ;;  %v492_v33 = vshll.u32 %v491_v26, 16 }
 0x78f   :  { %v499_v20 = vpop.xlane.xlu0 %498 }
 0x790   :  { %vm500_vm5 = vcmp.eq.f32.partialorder %v497_v7, %v499_v20  ;;  %v505_v31 = vcvt.f32.s32 %v499_v20 }
 0x791   :  { %v501_v22 = vsel %vm500_vm5, %v496_v21, inf }
 0x792   :  { %502 = vmin.xlane.f32.xlu0 %v501_v22  ;;  %v506_v35 = vshll.u32 %v505_v31, 16 }
 0x81b   :  { %v489_v27 = vpop.xlane.xlu1 %488 }
 0x81c   :  { %v490_v32 = vcvt.f32.s32 %v489_v27 }
 0x81e   :  { %v4682_v36 = vadd.s32 %v492_v33, %v490_v32 }
 0x81f   :  { %v503_v34 = vpop.xlane.xlu0 %502 }
 0x820   :  { %v504_v37 = vcvt.f32.s32 %v503_v34  ;;  %vm513_vm6 = vcmp.eq.s32.totalorder %v4616_v57, %v4682_v36 }
 0x822   :  { %v4684_v46 = vadd.s32 %v506_v35, %v504_v37 }
 0x824   :  { %vm514_vm7 = vcmp.eq.s32.totalorder %v4616_v57, %v4684_v46 }
 0x825   :  { %vm3437_vm8 = vmpackc.low %vm514_vm7, %vm513_vm6 }
 0x826   :  { %3738 = vmatmul.mubr.msk.bf16.vlgmr.msra.gmra.mrb[8].mxu1 %vm3437_vm8, %v4404_v47  ;;  %vm1364_vm8 = vcmp.eq.s32.totalorder %v4616_v57, 2 }
 0x827   :  { %3774 = vmatpush3.bf16.msra.mxu1 %v4573_v29  ;;  %3777 = vmatprep.mubr.msk.bf16.mxu1 %vm4400_vm0, %v4399_v0 }
 0x828   :  { %3775 = vmatprep.subr.bf16.mxu1 %v4399_v0 }
 0x82b   :  { %3776 = vmatpush3.bf16.msra.mxu1 %v4579_v30 }
 0x82c   :  { %3801 = vmatprep.subr.bf16.mxu1 %v4399_v0 }
 0x8f9   :  { %v602_v48 = vpop.f32.mrb[8].mxu1 }
 0x8fa   :  { %v3739_v49 = vpop.f32.mrb[9].mxu1 }
 0x8fb   :  { %v605_v50 = vpop.f32.mrb[10].mxu1 }
 0x8fc   :  { %v609_v51 = vpack.c.bf16 %v605_v50, %v602_v48  ;;  %v3740_v53 = vpop.f32.mrb[11].mxu1 }
 0x8fe   :  { %3754 = vmatmul.mubr.msk.bf16.vlgmr.msra.gmra.mrb[16].mxu0 %vm106_vm1, %v609_v51 }
 0x8ff   :  { %3758 = vmatpush3.bf16.msra.mxu0 %v4516_v42  ;;  %3761 = vmatprep.mubr.msk.bf16.mxu0 %vm4400_vm0, %v4399_v0 }
 0x900   :  { %3759 = vmatprep.subr.bf16.mxu0 %v4399_v0 }
 0x903   :  { %3760 = vmatpush3.bf16.msra.mxu0 %v4528_v44 }
 0x904   :  { %3765 = vmatprep.subr.bf16.mxu0 %v4399_v0 }
 0x906   :  { %3762 = vmatmul.mubr.msk.bf16.vlgmr.msra.gmra.mrb[20].mxu0 %vm106_vm1, %v4587_v39 }
 0x907   :  { %3766 = vmatpush3.bf16.msra.mxu0 %v4521_v43  ;;  %3769 = vmatprep.mubr.msk.bf16.mxu0 %vm4400_vm0, %v4399_v0 }
 0x908   :  { %3767 = vmatprep.subr.bf16.mxu0 %v4399_v0 }
 0x90b   :  { %3768 = vmatpush3.bf16.msra.mxu0 %v4533_v45 }
 0x90c   :  { %3781 = vmatprep.subr.bf16.mxu0 %v4399_v0 }
 0x9d1   :  { %v688_v55 = vpop.f32.mrb[16].mxu0 }
 0x9d2   :  { %v689_v56 = vadd.f32 %v688_v55, %v4612_v52  ;;  %v3755_v61 = vpop.f32.mrb[17].mxu0 }
 0x9d3   :  { %v691_v62 = vpop.f32.mrb[18].mxu0 }
 0x9d4   :  { %v695_v63 = vadd.f32 %v4499_v10, %v689_v56  ;;  %v692_v39 = vadd.f32 %v691_v62, %v4614_v54  ;;  %v3756_v5 = vpop.f32.mrb[19].mxu0 }
 0x9d6   :  { %4189 = vtanh.f32 %v695_v63  ;;  %v696_v6 = vadd.f32 %v4499_v10, %v692_v39  ;;  %v697_v19 = vmul.f32 0.5, %v695_v63 }
 0x9d8   :  { %4191 = vtanh.f32 %v696_v6  ;;  %v698_v20 = vmul.f32 0.5, %v696_v6 }
 0x9d9   :  { %v776_v7 = vpop.f32.mrb[20].mxu0  ;;  %4193 = vtanh.f32 %v697_v19 }
 0x9da   :  { %v3763_v15 = vpop.f32.mrb[21].mxu0  ;;  %4195 = vtanh.f32 %v698_v20 }
 0x9db   :  { %v4716_v16 = vpop.f32.mrb[22].mxu0 }
 0x9dc   :  { %v3764_v17 = vpop.f32.mrb[23].mxu0 }
 0x9e0   :  { %v4190_v18 = vpop.eup %4189 }
 0x9e1   :  { %711 = vrot.lane.b32.xlu1 %v4190_v18, %s4402_s18 }
 0x9e2   :  { %v4192_v52 = vpop.eup %4191 }
 0x9e3   :  { %713 = vrot.lane.b32.xlu0 %v4192_v52, %s4402_s18  ;;  %v4194_v54 = vpop.eup %4193 }
 0x9e4   :  { %v701_v21 = vadd.f32 1.0, %v4194_v54  ;;  %v4196_v22 = vpop.eup %4195 }
 0x9e5   :  { %v702_v27 = vadd.f32 1.0, %v4196_v22 }
 0x9e6   :  { %v703_v26 = vmul.f32 0.5, %v701_v21 }
 0x9e7   :  { %v704_v34 = vmul.f32 0.5, %v702_v27 }
 0x9e8   :  { %v707_v37 = vmul.f32 %v703_v26, %v4507_v38 }
 0x9e9   :  { %v708_v50 = vmul.f32 %v704_v34, %v4510_v41 }
 0xa53   :  { %v712_v31 = vpop.permute.xlu1 %711 }
 0xa54   :  { %v717_v32 = vmul.f32 %v712_v31, %v703_v26 }
 0xa55   :  { %v714_v33 = vpop.permute.xlu0 %713 }
 0xa56   :  { %721 = vrot.lane.b32.xlu1 %v717_v32, %s4403_s19  ;;  %v718_v35 = vmul.f32 %v714_v33, %v704_v34 }
 0xa5a   :  { %723 = vrot.lane.b32.xlu1 %v718_v35, %s4403_s19 }
 0xac8   :  { %v722_v48 = vpop.permute.xlu1 %721 }
 0xac9   :  { %v4723_v49 = vadd.f32 %v722_v48, %v707_v37 }
 0xacb   :  { %4197 = vtanh.f32 %v4723_v49 }
 0xacc   :  { %v724_v51 = vpop.permute.xlu1 %723 }
 0xacd   :  { %v4727_v53 = vadd.f32 %v724_v51, %v708_v50 }
 0xacf   :  { %4199 = vtanh.f32 %v4727_v53 }
 0xad5   :  { %v4198_v55 = vpop.eup %4197 }
 0xad6   :  { %733 = vrot.lane.b32.xlu0 %v4198_v55, %s4402_s18 }
 0xad9   :  { %v4200_v56 = vpop.eup %4199 }
 0xada   :  { %735 = vrot.lane.b32.xlu1 %v4200_v56, %s4402_s18 }
 0xb48   :  { %v734_v61 = vpop.permute.xlu0 %733 }
 0xb49   :  { %v739_v62 = vmul.f32 %v734_v61, %v703_v26 }
 0xb4c   :  { %v736_v38 = vpop.permute.xlu1 %735 }
 0xb4d   :  { %v740_v63 = vmul.f32 %v736_v38, %v704_v34 }
 0xb4f   :  { %v741_v39 = vpack.c.bf16 %v740_v63, %v739_v62 }
 0xb51   :  { %784 = vrot.lane.b32.xlu0 %v741_v39, %s4403_s19 }
 0xbc3   :  { %v4733_v5 = vpop.permute.xlu0 %784 }
 0xbc4   :  { %3770 = vmatmul.mubr.msk.bf16.vlgmr.msra.gmra.mrb[24].mxu0 %vm106_vm1, %v4733_v5 }
 0xbc5   :  { %3782 = vmatpush3.bf16.msra.mxu0 %v4629_v8  ;;  %3797 = vmatprep.mubr.msk.bf16.mxu0 %vm4400_vm0, %v4399_v0 }
 0xbc6   :  { %3783 = vmatprep.subr.bf16.mxu0 %v4399_v0 }
 0xbc9   :  { %3784 = vmatpush3.bf16.msra.mxu0 %v4635_v9 }
 0xbca   :  { %3785 = vmatprep.subr.bf16.mxu0 %v4399_v0 }
 0xbcd   :  { %3786 = vmatpush3.bf16.msra.mxu0 %v4641_v11 }
 0xbce   :  { %3787 = vmatprep.subr.bf16.mxu0 %v4399_v0 }
 0xbd1   :  { %3788 = vmatpush3.bf16.msra.mxu0 %v4649_v12 }
 0xbd2   :  { %3789 = vmatprep.subr.bf16.mxu0 %v4399_v0 }
 0xbd5   :  { %3790 = vmatpush3.bf16.msra.mxu0 %v4656_v13 }
 0xbd6   :  { %3791 = vmatprep.subr.bf16.mxu0 %v4399_v0 }
 0xbd9   :  { %3792 = vmatpush3.bf16.msra.mxu0 %v4663_v14 }
 0xbda   :  { %3793 = vmatprep.subr.bf16.mxu0 %v4399_v0 }
 0xbdd   :  { %3794 = vmatpush3.bf16.msra.mxu0 %v4671_v23 }
 0xbde   :  { %3795 = vmatprep.subr.bf16.mxu0 %v4399_v0 }
 0xbe1   :  { %3796 = vmatpush3.bf16.msra.mxu0 %v4678_v24 }
 0xbe2   :  { %3833 = vmatprep.subr.bf16.mxu0 %v4399_v0 }
 0xc97   :  { %v823_v41 = vpop.f32.mrb[24].mxu0 }
 0xc98   :  { %v824_v6 = vadd.f32 %v823_v41, %v776_v7  ;;  %v3771_v15 = vpop.f32.mrb[25].mxu0 }
 0xc99   :  { %v826_v17 = vpop.f32.mrb[26].mxu0 }
 0xc9a   :  { %v830_v18 = vadd.f32 %v4556_v58, %v824_v6  ;;  %v827_v52 = vadd.f32 %v826_v17, %v4716_v16  ;;  %v3772_v19 = vpop.f32.mrb[27].mxu0 }
 0xc9c   :  { %4201 = vtanh.f32 %v830_v18  ;;  %v831_v20 = vadd.f32 %v4556_v58, %v827_v52  ;;  %v832_v22 = vmul.f32 0.5, %v830_v18 }
 0xc9e   :  { %4203 = vtanh.f32 %v831_v20  ;;  %v833_v26 = vmul.f32 0.5, %v831_v20 }
 0xc9f   :  { %4205 = vtanh.f32 %v832_v22 }
 0xca0   :  { %4207 = vtanh.f32 %v833_v26 }
 0xca6   :  { %v4202_v54 = vpop.eup %4201 }
 0xca7   :  { %846 = vrot.lane.b32.xlu1 %v4202_v54, %s4402_s18 }
 0xca8   :  { %v4204_v21 = vpop.eup %4203 }
 0xca9   :  { %848 = vrot.lane.b32.xlu0 %v4204_v21, %s4402_s18  ;;  %v4206_v7 = vpop.eup %4205 }
 0xcaa   :  { %v4208_v27 = vpop.eup %4207  ;;  %v836_v31 = vadd.f32 1.0, %v4206_v7 }
 0xcab   :  { %v837_v32 = vadd.f32 1.0, %v4208_v27 }
 0xcac   :  { %v838_v16 = vmul.f32 0.5, %v836_v31 }
 0xcad   :  { %v839_v35 = vmul.f32 0.5, %v837_v32 }
 0xcae   :  { %v842_v50 = vmul.f32 %v838_v16, %v4564_v25 }
 0xcaf   :  { %v843_v56 = vmul.f32 %v839_v35, %v4567_v28 }
 0xd19   :  { %v847_v33 = vpop.permute.xlu1 %846 }
 0xd1a   :  { %v852_v34 = vmul.f32 %v847_v33, %v838_v16 }
 0xd1b   :  { %v849_v37 = vpop.permute.xlu0 %848 }
 0xd1c   :  { %856 = vrot.lane.b32.xlu1 %v852_v34, %s4403_s19  ;;  %v853_v48 = vmul.f32 %v849_v37, %v839_v35 }
 0xd1e   :  { %858 = vrot.lane.b32.xlu0 %v853_v48, %s4403_s19 }
 0xd8e   :  { %v857_v51 = vpop.permute.xlu1 %856 }
 0xd8f   :  { %v4763_v55 = vadd.f32 %v857_v51, %v842_v50 }
 0xd90   :  { %v859_v61 = vpop.permute.xlu0 %858 }
 0xd91   :  { %4209 = vtanh.f32 %v4763_v55  ;;  %v4767_v38 = vadd.f32 %v859_v61, %v843_v56 }
 0xd93   :  { %4211 = vtanh.f32 %v4767_v38 }
 0xd9b   :  { %v4210_v62 = vpop.eup %4209 }
 0xd9c   :  { %868 = vrot.lane.b32.xlu1 %v4210_v62, %s4402_s18 }
 0xd9d   :  { %v4212_v63 = vpop.eup %4211 }
 0xd9e   :  { %870 = vrot.lane.b32.xlu0 %v4212_v63, %s4402_s18 }
 0xe0e   :  { %v869_v39 = vpop.permute.xlu1 %868 }
 0xe0f   :  { %v874_v41 = vmul.f32 %v869_v39, %v838_v16 }
 0xe10   :  { %v871_v25 = vpop.permute.xlu0 %870 }
 0xe11   :  { %v875_v6 = vmul.f32 %v871_v25, %v839_v35 }
 0xe13   :  { %v876_v15 = vpack.c.bf16 %v875_v6, %v874_v41  ;;  %v509_v41 = vsel %vm508_vm13, %v4682_v36, 0 }
 0xe15   :  { %878 = vrot.lane.b32.xlu1 %v876_v15, %s4403_s19 }
 0xe87   :  { %v4773_v28 = vpop.permute.xlu1 %878 }
 0xe88   :  { %3778 = vmatmul.mubr.msk.bf16.vlgmr.msra.gmra.mrb[12].mxu1 %vm106_vm1, %v4773_v28 }
 0xe89   :  { %3802 = vmatpush3.bf16.msra.mxu1 %v4455_v1  ;;  %3805 = vmatprep.mubr.msk.bf16.mxu1 %vm4400_vm0, %v4399_v0 }
 0xe8a   :  { %3803 = vmatprep.subr.bf16.mxu1 %v4399_v0 }
 0xe8d   :  { %3804 = vmatpush3.bf16.msra.mxu1 %v4470_v3 }
 0xe8e   :  { %3809 = vmatprep.subr.bf16.mxu1 %v4399_v0 }
 0xe90   :  { %3806 = vmatmul.mubr.msk.bf16.vlgmr.msra.gmra.mrb[16].mxu1 %vm106_vm1, %v4733_v5 }
 0xe91   :  { %3810 = vmatpush3.bf16.msra.mxu1 %v4460_v2  ;;  %3813 = vmatprep.mubr.msk.bf16.mxu1 %vm4400_vm0, %v4399_v0 }
 0xe92   :  { %3811 = vmatprep.subr.bf16.mxu1 %v4399_v0 }
 0xe95   :  { %3812 = vmatpush3.bf16.msra.mxu1 %v4477_v4 }
 0xe96   :  { %3817 = vmatprep.subr.bf16.mxu1 %v4399_v0 }
 0xf5b   :  { %v917_v1 = vpop.f32.mrb[12].mxu1 }
 0xf5c   :  { %v918_v17 = vadd.f32 %v4608_v40, %v917_v1  ;;  %v3779_v3 = vpop.f32.mrb[13].mxu1 }
 0xf5d   :  { %v920_v18 = vpop.f32.mrb[14].mxu1 }
 0xf5e   :  { %v921_v52 = vadd.f32 %v4608_v40, %v920_v18  ;;  %924 = vmax.xlane.f32.xlu0 %v918_v17  ;;  %v3780_v5 = vpop.f32.mrb[15].mxu1  ;;  %v510_v18 = vsel %vm508_vm13, %v4684_v46, 0 }
 0xf60   :  { %926 = vmax.xlane.f32.xlu1 %v921_v52 }
 0xf63   :  { %v4793_v2 = vpop.f32.mrb[16].mxu1 }
 0xf64   :  { %v3807_v19 = vpop.f32.mrb[17].mxu1 }
 0xf65   :  { %v4795_v20 = vpop.f32.mrb[18].mxu1 }
 0xf66   :  { %v3808_v54 = vpop.f32.mrb[19].mxu1 }
 0xfeb   :  { %v4797_v21 = vpop.xlane.xlu0 %924 }
 0xfec   :  { %vm928_vm9 = vcmp.eq.f32.partialorder %v918_v17, %v4797_v21 }
 0xfed   :  { %v4800_v4 = vpop.xlane.xlu1 %926  ;;  %v930_v22 = vsel %vm928_vm9, %v4616_v57, 128 }
 0xfee   :  { %vm929_vm10 = vcmp.eq.f32.partialorder %v921_v52, %v4800_v4  ;;  %v933_v26 = vshra.s32 %v930_v22, 16  ;;  %v932_v16 = vand.u32 65535, %v930_v22 }
 0xfef   :  { %v931_v7 = vsel %vm929_vm10, %v4616_v57, 128 }
 0xff0   :  { %v935_v27 = vcvt.s32.f32 %v933_v26  ;;  %v947_v31 = vshra.s32 %v931_v7, 16  ;;  %v934_v34 = vcvt.s32.f32 %v932_v16  ;;  %v946_v35 = vand.u32 65535, %v931_v7 }
 0xff2   :  { %936 = vmin.xlane.f32.xlu0 %v935_v27  ;;  %v949_v32 = vcvt.s32.f32 %v947_v31  ;;  %v948_v50 = vcvt.s32.f32 %v946_v35 }
 0xff6   :  { %950 = vmin.xlane.f32.xlu0 %v949_v32 }
0x107f   :  { %v937_v33 = vpop.xlane.xlu0 %936 }
0x1080   :  { %vm938_vm11 = vcmp.eq.f32.partialorder %v935_v27, %v937_v33  ;;  %v943_v56 = vcvt.f32.s32 %v937_v33 }
0x1081   :  { %v939_v37 = vsel %vm938_vm11, %v934_v34, inf }
0x1082   :  { %940 = vmin.xlane.f32.xlu1 %v939_v37  ;;  %v944_v62 = vshll.u32 %v943_v56, 16 }
0x1083   :  { %v951_v48 = vpop.xlane.xlu0 %950 }
0x1084   :  { %vm952_vm12 = vcmp.eq.f32.partialorder %v949_v32, %v951_v48  ;;  %v957_v63 = vcvt.f32.s32 %v951_v48 }
0x1085   :  { %v953_v51 = vsel %vm952_vm12, %v948_v50, inf }
0x1086   :  { %954 = vmin.xlane.f32.xlu0 %v953_v51  ;;  %v958_v15 = vshll.u32 %v957_v63, 16 }
0x110f   :  { %v941_v61 = vpop.xlane.xlu1 %940 }
0x1110   :  { %v942_v39 = vcvt.f32.s32 %v941_v61 }
0x1112   :  { %v945_v25 = vadd.s32 %v944_v62, %v942_v39 }
0x1113   :  { %v955_v6 = vpop.xlane.xlu0 %954 }
0x1114   :  { %v4812_v1 = vsel %vm960_vm14, %v945_v25, %v509_v41  ;;  %v956_v17 = vcvt.f32.s32 %v955_v6  ;;  %vm965_vm15 = vcmp.eq.s32.totalorder %v4616_v57, %v945_v25 }
0x1116   :  { %v959_v3 = vadd.s32 %v958_v15, %v956_v17 }
0x1118   :  { %v4820_v52 = vsel %vm960_vm14, %v959_v3, %v510_v18  ;;  %vm966_vm2 = vcmp.eq.s32.totalorder %v4616_v57, %v959_v3 }
0x1119   :  { %vm3446_vm3 = vmpackc.low %vm966_vm2, %vm965_vm15 }
0x111a   :  { %3798 = vmatmul.mubr.msk.bf16.vlgmr.msra.gmra.mrb[28].mxu0 %vm3446_vm3, %v4404_v47 }
0x111b   :  { %3834 = vmatpush3.bf16.msra.mxu0 %v4573_v29  ;;  %3837 = vmatprep.mubr.msk.bf16.mxu0 %vm4400_vm0, %v4399_v0 }
0x111c   :  { %3835 = vmatprep.subr.bf16.mxu0 %v4399_v0 }
0x111f   :  { %3836 = vmatpush3.bf16.msra.mxu0 %v4579_v30 }
0x1120   :  { %3861 = vmatprep.subr.bf16.mxu0 %v4399_v0 }
0x11ed   :  { %v1006_v36 = vpop.f32.mrb[28].mxu0 }
0x11ee   :  { %v3799_v46 = vpop.f32.mrb[29].mxu0 }
0x11ef   :  { %v1009_v5 = vpop.f32.mrb[30].mxu0 }
0x11f0   :  { %v1013_v19 = vpack.c.bf16 %v1009_v5, %v1006_v36  ;;  %v3800_v54 = vpop.f32.mrb[31].mxu0 }
0x11f2   :  { %3814 = vmatmul.mubr.msk.bf16.vlgmr.msra.gmra.mrb[20].mxu1 %vm106_vm1, %v1013_v19 }
0x11f3   :  { %3818 = vmatpush3.bf16.msra.mxu1 %v4516_v42  ;;  %3821 = vmatprep.mubr.msk.bf16.mxu1 %vm4400_vm0, %v4399_v0 }
0x11f4   :  { %3819 = vmatprep.subr.bf16.mxu1 %v4399_v0 }
0x11f7   :  { %3820 = vmatpush3.bf16.msra.mxu1 %v4528_v44 }
0x11f8   :  { %3825 = vmatprep.subr.bf16.mxu1 %v4399_v0 }
0x11fa   :  { %3822 = vmatmul.mubr.msk.bf16.vlgmr.msra.gmra.mrb[24].mxu1 %vm106_vm1, %v4773_v28 }
0x11fb   :  { %3826 = vmatpush3.bf16.msra.mxu1 %v4521_v43  ;;  %3829 = vmatprep.mubr.msk.bf16.mxu1 %vm4400_vm0, %v4399_v0 }
0x11fc   :  { %3827 = vmatprep.subr.bf16.mxu1 %v4399_v0 }
0x11ff   :  { %3828 = vmatpush3.bf16.msra.mxu1 %v4533_v45 }
0x1200   :  { %3841 = vmatprep.subr.bf16.mxu1 %v4399_v0 }
0x12c5   :  { %v1092_v42 = vpop.f32.mrb[20].mxu1 }
0x12c6   :  { %v1093_v29 = vadd.f32 %v1092_v42, %v4793_v2  ;;  %v3815_v44 = vpop.f32.mrb[21].mxu1 }
0x12c7   :  { %v1095_v30 = vpop.f32.mrb[22].mxu1 }
0x12c8   :  { %v1099_v22 = vadd.f32 %v4499_v10, %v1093_v29  ;;  %v1096_v28 = vadd.f32 %v1095_v30, %v4795_v20  ;;  %v3816_v26 = vpop.f32.mrb[23].mxu1 }
0x12ca   :  { %4213 = vtanh.f32 %v1099_v22  ;;  %v1100_v43 = vadd.f32 %v4499_v10, %v1096_v28  ;;  %v1101_v16 = vmul.f32 0.5, %v1099_v22 }
0x12cc   :  { %4215 = vtanh.f32 %v1100_v43  ;;  %v1102_v33 = vmul.f32 0.5, %v1100_v43 }
0x12cd   :  { %v1180_v7 = vpop.f32.mrb[24].mxu1  ;;  %4217 = vtanh.f32 %v1101_v16 }
0x12ce   :  { %v3823_v27 = vpop.f32.mrb[25].mxu1  ;;  %4219 = vtanh.f32 %v1102_v33 }
0x12cf   :  { %v4849_v31 = vpop.f32.mrb[26].mxu1 }
0x12d0   :  { %v3824_v45 = vpop.f32.mrb[27].mxu1 }
0x12d4   :  { %v4214_v32 = vpop.eup %4213 }
0x12d5   :  { %1115 = vrot.lane.b32.xlu1 %v4214_v32, %s4402_s18 }
0x12d6   :  { %v4216_v2 = vpop.eup %4215 }
0x12d7   :  { %1117 = vrot.lane.b32.xlu0 %v4216_v2, %s4402_s18  ;;  %v4218_v20 = vpop.eup %4217 }
0x12d8   :  { %v1105_v34 = vadd.f32 1.0, %v4218_v20  ;;  %v4220_v35 = vpop.eup %4219 }
0x12d9   :  { %v1106_v37 = vadd.f32 1.0, %v4220_v35 }
0x12da   :  { %v1107_v10 = vmul.f32 0.5, %v1105_v34 }
0x12db   :  { %v1108_v56 = vmul.f32 0.5, %v1106_v37 }
0x12dc   :  { %v1111_v62 = vmul.f32 %v1107_v10, %v4723_v49 }
0x12dd   :  { %v1112_v25 = vmul.f32 %v1108_v56, %v4727_v53 }
0x1347   :  { %v1116_v48 = vpop.permute.xlu1 %1115 }
0x1348   :  { %v1121_v50 = vmul.f32 %v1116_v48, %v1107_v10 }
0x1349   :  { %v1118_v51 = vpop.permute.xlu0 %1117 }
0x134a   :  { %1125 = vrot.lane.b32.xlu1 %v1121_v50, %s4403_s19  ;;  %v1122_v61 = vmul.f32 %v1118_v51, %v1108_v56  ;;  %v4913_v50 = vld [vmem:[%s5774_s3] sm:$0xff]   ;;  %v4922_v51 = vld [vmem:[%s5774_s3 + $0x8] sm:$0xff]  }
0x134e   :  { %1127 = vrot.lane.b32.xlu1 %v1122_v61, %s4403_s19  ;;  %v4940_v61 = vld [vmem:[%s5775_s2 + $0x8] sm:$0xff]  }
0x13bc   :  { %v1126_v63 = vpop.permute.xlu1 %1125 }
0x13bd   :  { %v4856_v39 = vadd.f32 %v1126_v63, %v1111_v62 }
0x13bf   :  { %4221 = vtanh.f32 %v4856_v39 }
0x13c0   :  { %v1128_v41 = vpop.permute.xlu1 %1127 }
0x13c1   :  { %v4860_v6 = vadd.f32 %v1128_v41, %v1112_v25 }
0x13c3   :  { %4223 = vtanh.f32 %v4860_v6 }
0x13c9   :  { %v4222_v15 = vpop.eup %4221 }
0x13ca   :  { %1137 = vrot.lane.b32.xlu0 %v4222_v15, %s4402_s18 }
0x13cd   :  { %v4224_v17 = vpop.eup %4223 }
0x13ce   :  { %1139 = vrot.lane.b32.xlu1 %v4224_v17, %s4402_s18 }
0x143c   :  { %v1138_v3 = vpop.permute.xlu0 %1137 }
0x143d   :  { %v1143_v18 = vmul.f32 %v1138_v3, %v1107_v10 }
0x1440   :  { %v1140_v49 = vpop.permute.xlu1 %1139 }
0x1441   :  { %v1144_v36 = vmul.f32 %v1140_v49, %v1108_v56  ;;  %v4931_v56 = vld [vmem:[%s5775_s2] sm:$0xff]  }
0x1443   :  { %v1145_v46 = vpack.c.bf16 %v1144_v36, %v1143_v18 }
0x1445   :  { %1188 = vrot.lane.b32.xlu0 %v1145_v46, %s4403_s19 }
0x14b7   :  { %v4866_v5 = vpop.permute.xlu0 %1188 }
0x14b8   :  { %3830 = vmatmul.mubr.msk.bf16.vlgmr.msra.gmra.mrb[28].mxu1 %vm106_vm1, %v4866_v5 }
0x14b9   :  { %3842 = vmatpush3.bf16.msra.mxu1 %v4629_v8  ;;  %3857 = vmatprep.mubr.msk.bf16.mxu1 %vm4400_vm0, %v4399_v0 }
0x14ba   :  { %3843 = vmatprep.subr.bf16.mxu1 %v4399_v0 }
0x14bd   :  { %3844 = vmatpush3.bf16.msra.mxu1 %v4635_v9 }
0x14be   :  { %3845 = vmatprep.subr.bf16.mxu1 %v4399_v0 }
0x14c1   :  { %3846 = vmatpush3.bf16.msra.mxu1 %v4641_v11 }
0x14c2   :  { %3847 = vmatprep.subr.bf16.mxu1 %v4399_v0 }
0x14c5   :  { %3848 = vmatpush3.bf16.msra.mxu1 %v4649_v12 }
0x14c6   :  { %3849 = vmatprep.subr.bf16.mxu1 %v4399_v0 }
0x14c9   :  { %3850 = vmatpush3.bf16.msra.mxu1 %v4656_v13 }
0x14ca   :  { %3851 = vmatprep.subr.bf16.mxu1 %v4399_v0 }
0x14cd   :  { %3852 = vmatpush3.bf16.msra.mxu1 %v4663_v14 }
0x14ce   :  { %3853 = vmatprep.subr.bf16.mxu1 %v4399_v0 }
0x14d1   :  { %3854 = vmatpush3.bf16.msra.mxu1 %v4671_v23 }
0x14d2   :  { %3855 = vmatprep.subr.bf16.mxu1 %v4399_v0 }
0x14d5   :  { %3856 = vmatpush3.bf16.msra.mxu1 %v4678_v24 }
0x14d6   :  { %3893 = vmatprep.subr.bf16.mxu1 %v4399_v0 }
0x158b   :  { %v1227_v8 = vpop.f32.mrb[28].mxu1 }
0x158c   :  { %v1228_v9 = vadd.f32 %v1227_v8, %v1180_v7  ;;  %v3831_v11 = vpop.f32.mrb[29].mxu1 }
0x158d   :  { %v1230_v12 = vpop.f32.mrb[30].mxu1 }
0x158e   :  { %v1234_v13 = vadd.f32 %v4556_v58, %v1228_v9  ;;  %v1231_v53 = vadd.f32 %v1230_v12, %v4849_v31  ;;  %v3832_v19 = vpop.f32.mrb[31].mxu1 }
0x1590   :  { %4225 = vtanh.f32 %v1234_v13  ;;  %v1235_v14 = vadd.f32 %v4556_v58, %v1231_v53  ;;  %v1236_v24 = vmul.f32 0.5, %v1234_v13 }
0x1592   :  { %4227 = vtanh.f32 %v1235_v14  ;;  %v1237_v42 = vmul.f32 0.5, %v1235_v14 }
0x1593   :  { %4229 = vtanh.f32 %v1236_v24 }
0x1594   :  { %4231 = vtanh.f32 %v1237_v42 }
0x159a   :  { %v4226_v23 = vpop.eup %4225 }
0x159b   :  { %1250 = vrot.lane.b32.xlu1 %v4226_v23, %s4402_s18 }
0x159c   :  { %v4228_v54 = vpop.eup %4227 }
0x159d   :  { %1252 = vrot.lane.b32.xlu0 %v4228_v54, %s4402_s18  ;;  %v4230_v29 = vpop.eup %4229 }
0x159e   :  { %v4232_v44 = vpop.eup %4231  ;;  %v1240_v30 = vadd.f32 1.0, %v4230_v29 }
0x159f   :  { %v1241_v22 = vadd.f32 1.0, %v4232_v44 }
0x15a0   :  { %v1242_v28 = vmul.f32 0.5, %v1240_v30 }
0x15a1   :  { %v1243_v7 = vmul.f32 0.5, %v1241_v22 }
0x15a2   :  { %v1246_v31 = vmul.f32 %v1242_v28, %v4763_v55 }
0x15a3   :  { %v1247_v2 = vmul.f32 %v1243_v7, %v4767_v38 }
0x160d   :  { %v1251_v26 = vpop.permute.xlu1 %1250 }
0x160e   :  { %v1256_v43 = vmul.f32 %v1251_v26, %v1242_v28 }
0x160f   :  { %v1253_v58 = vpop.permute.xlu0 %1252 }
0x1610   :  { %1260 = vrot.lane.b32.xlu1 %v1256_v43, %s4403_s19  ;;  %v1257_v27 = vmul.f32 %v1253_v58, %v1243_v7 }
0x1612   :  { %1262 = vrot.lane.b32.xlu0 %v1257_v27, %s4403_s19 }
0x1682   :  { %v1261_v45 = vpop.permute.xlu1 %1260 }
0x1683   :  { %v4896_v32 = vadd.f32 %v1261_v45, %v1246_v31 }
0x1684   :  { %v1263_v16 = vpop.permute.xlu0 %1262 }
0x1685   :  { %4233 = vtanh.f32 %v4896_v32  ;;  %v4900_v33 = vadd.f32 %v1263_v16, %v1247_v2  ;;  %v4975_v16 = vld [vmem:[%s5778_s5] sm:$0xff]  }
0x1687   :  { %4235 = vtanh.f32 %v4900_v33 }
0x168f   :  { %v4234_v20 = vpop.eup %4233 }
0x1690   :  { %1272 = vrot.lane.b32.xlu1 %v4234_v20, %s4402_s18 }
0x1691   :  { %v4236_v34 = vpop.eup %4235 }
0x1692   :  { %1274 = vrot.lane.b32.xlu0 %v4236_v34, %s4402_s18 }
0x1702   :  { %v1273_v35 = vpop.permute.xlu1 %1272 }
0x1703   :  { %v1278_v10 = vmul.f32 %v1273_v35, %v1242_v28 }
0x1704   :  { %v1275_v55 = vpop.permute.xlu0 %1274 }
0x1705   :  { %v1279_v37 = vmul.f32 %v1275_v55, %v1243_v7 }
0x1707   :  { %v1280_v48 = vpack.c.bf16 %v1279_v37, %v1278_v10  ;;  %v4992_v10 = vld [vmem:[%s5774_s3 + $0x10] sm:$0xff]   ;;  %v5001_v37 = vld [vmem:[%s5774_s3 + $0x18] sm:$0xff]  }
0x1709   :  { %1282 = vrot.lane.b32.xlu1 %v1280_v48, %s4403_s19  ;;  %v5010_v48 = vld [vmem:[%s5775_s2 + $0x10] sm:$0xff]  }
0x177b   :  { %v4906_v38 = vpop.permute.xlu1 %1282 }
0x177c   :  { %3838 = vmatmul.mubr.msk.bf16.vlgmr.msra.gmra.mrb[32].mxu0 %vm106_vm1, %v4906_v38 }
0x177d   :  { %3862 = vmatpush3.bf16.msra.mxu0 %v4913_v50  ;;  %3865 = vmatprep.mubr.msk.bf16.mxu0 %vm4400_vm0, %v4399_v0 }
0x177e   :  { %3863 = vmatprep.subr.bf16.mxu0 %v4399_v0 }
0x1781   :  { %3864 = vmatpush3.bf16.msra.mxu0 %v4922_v51 }
0x1782   :  { %3869 = vmatprep.subr.bf16.mxu0 %v4399_v0 }
0x1784   :  { %3866 = vmatmul.mubr.msk.bf16.vlgmr.msra.gmra.mrb[36].mxu0 %vm106_vm1, %v4866_v5 }
0x1785   :  { %3870 = vmatpush3.bf16.msra.mxu0 %v4931_v56  ;;  %3873 = vmatprep.mubr.msk.bf16.mxu0 %vm4400_vm0, %v4399_v0 }
0x1786   :  { %3871 = vmatprep.subr.bf16.mxu0 %v4399_v0 }
0x1789   :  { %3872 = vmatpush3.bf16.msra.mxu0 %v4940_v61 }
0x178a   :  { %3877 = vmatprep.subr.bf16.mxu0 %v4399_v0 }
0x184f   :  { %v1321_v62 = vpop.f32.mrb[32].mxu0 }
0x1850   :  { %v1322_v63 = vadd.f32 %v4608_v40, %v1321_v62  ;;  %v3839_v25 = vpop.f32.mrb[33].mxu0  ;;  %v5019_v62 = vld [vmem:[%s5775_s2 + $0x18] sm:$0xff]  }
0x1851   :  { %v1324_v41 = vpop.f32.mrb[34].mxu0 }
0x1852   :  { %v1325_v15 = vadd.f32 %v4608_v40, %v1324_v41  ;;  %1328 = vmax.xlane.f32.xlu0 %v1322_v63  ;;  %v3840_v17 = vpop.f32.mrb[35].mxu0 }
0x1854   :  { %1330 = vmax.xlane.f32.xlu1 %v1325_v15 }
0x1857   :  { %v4946_v3 = vpop.f32.mrb[36].mxu0 }
0x1858   :  { %v3867_v49 = vpop.f32.mrb[37].mxu0 }
0x1859   :  { %v4948_v18 = vpop.f32.mrb[38].mxu0 }
0x185a   :  { %v3868_v36 = vpop.f32.mrb[39].mxu0 }
0x18df   :  { %v4950_v46 = vpop.xlane.xlu0 %1328 }
0x18e0   :  { %vm1332_vm4 = vcmp.eq.f32.partialorder %v1322_v63, %v4950_v46 }
0x18e1   :  { %v4953_v5 = vpop.xlane.xlu1 %1330  ;;  %v1334_v8 = vsel %vm1332_vm4, %v4616_v57, 128  ;;  %vm1768_vm4 = vcmp.eq.s32.totalorder %v4616_v57, 3 }
0x18e2   :  { %vm1333_vm5 = vcmp.eq.f32.partialorder %v1325_v15, %v4953_v5  ;;  %v1337_v40 = vshra.s32 %v1334_v8, 16  ;;  %v1336_v53 = vand.u32 65535, %v1334_v8  ;;  %v5027_v15 = vld [vmem:[%s5777_s4] ss:$0 sm:$0xff] }
0x18e3   :  { %v1335_v9 = vsel %vm1333_vm5, %v4616_v57, 128 }
0x18e4   :  { %v1339_v11 = vcvt.s32.f32 %v1337_v40  ;;  %v1351_v12 = vshra.s32 %v1335_v9, 16  ;;  %v1338_v14 = vcvt.s32.f32 %v1336_v53  ;;  %v1350_v23 = vand.u32 65535, %v1335_v9 }
0x18e6   :  { %1340 = vmin.xlane.f32.xlu0 %v1339_v11  ;;  %v1353_v13 = vcvt.s32.f32 %v1351_v12  ;;  %v1352_v42 = vcvt.s32.f32 %v1350_v23 }
0x18ea   :  { %1354 = vmin.xlane.f32.xlu0 %v1353_v13 }
0x1973   :  { %v1341_v19 = vpop.xlane.xlu0 %1340 }
0x1974   :  { %vm1342_vm6 = vcmp.eq.f32.partialorder %v1339_v11, %v1341_v19  ;;  %v1347_v44 = vcvt.f32.s32 %v1341_v19 }
0x1975   :  { %v1343_v54 = vsel %vm1342_vm6, %v1338_v14, inf }
0x1976   :  { %1344 = vmin.xlane.f32.xlu1 %v1343_v54  ;;  %v1348_v22 = vshll.u32 %v1347_v44, 16 }
0x1977   :  { %v1355_v24 = vpop.xlane.xlu0 %1354 }
0x1978   :  { %vm1356_vm7 = vcmp.eq.f32.partialorder %v1353_v13, %v1355_v24  ;;  %v1361_v28 = vcvt.f32.s32 %v1355_v24 }
0x1979   :  { %v1357_v29 = vsel %vm1356_vm7, %v1352_v42, inf }
0x197a   :  { %1358 = vmin.xlane.f32.xlu0 %v1357_v29  ;;  %v1362_v58 = vshll.u32 %v1361_v28, 16 }
0x1a03   :  { %v1345_v30 = vpop.xlane.xlu1 %1344 }
0x1a04   :  { %v1346_v26 = vcvt.f32.s32 %v1345_v30 }
0x1a06   :  { %v1349_v43 = vadd.s32 %v1348_v22, %v1346_v26 }
0x1a07   :  { %v1359_v7 = vpop.xlane.xlu0 %1358 }
0x1a08   :  { %v4962_v27 = vsel %vm1364_vm8, %v1349_v43, %v4812_v1  ;;  %v1360_v31 = vcvt.f32.s32 %v1359_v7  ;;  %vm1369_vm9 = vcmp.eq.s32.totalorder %v4616_v57, %v1349_v43  ;;  %v4984_v1 = vld [vmem:[%s5778_s5 + $0x8] sm:$0xff]  }
0x1a0a   :  { %v1363_v45 = vadd.s32 %v1362_v58, %v1360_v31 }
0x1a0c   :  { %v4968_v2 = vsel %vm1364_vm8, %v1363_v45, %v4820_v52  ;;  %vm1370_vm10 = vcmp.eq.s32.totalorder %v4616_v57, %v1363_v45 }
0x1a0d   :  { %vm3455_vm11 = vmpackc.low %vm1370_vm10, %vm1369_vm9 }
0x1a0e   :  { %3858 = vmatmul.mubr.msk.bf16.vlgmr.msra.gmra.mrb[32].mxu1 %vm3455_vm11, %v4404_v47 }
0x1a0f   :  { %3894 = vmatpush3.bf16.msra.mxu1 %v4975_v16  ;;  %3897 = vmatprep.mubr.msk.bf16.mxu1 %vm4400_vm0, %v4399_v0 }
0x1a10   :  { %3895 = vmatprep.subr.bf16.mxu1 %v4399_v0 }
0x1a13   :  { %3896 = vmatpush3.bf16.msra.mxu1 %v4984_v1 }
0x1a14   :  { %3921 = vmatprep.subr.bf16.mxu1 %v4399_v0 }
0x1ae1   :  { %v1410_v52 = vpop.f32.mrb[32].mxu1 }
0x1ae2   :  { %v3859_v20 = vpop.f32.mrb[33].mxu1 }
0x1ae3   :  { %v1413_v34 = vpop.f32.mrb[34].mxu1 }
0x1ae4   :  { %v1417_v35 = vpack.c.bf16 %v1413_v34, %v1410_v52  ;;  %v3860_v55 = vpop.f32.mrb[35].mxu1 }
0x1ae6   :  { %3874 = vmatmul.mubr.msk.bf16.vlgmr.msra.gmra.mrb[40].mxu0 %vm106_vm1, %v1417_v35 }
0x1ae7   :  { %3878 = vmatpush3.bf16.msra.mxu0 %v4992_v10  ;;  %3881 = vmatprep.mubr.msk.bf16.mxu0 %vm4400_vm0, %v4399_v0 }
0x1ae8   :  { %3879 = vmatprep.subr.bf16.mxu0 %v4399_v0 }
0x1aeb   :  { %3880 = vmatpush3.bf16.msra.mxu0 %v5001_v37 }
0x1aec   :  { %3885 = vmatprep.subr.bf16.mxu0 %v4399_v0 }
0x1aee   :  { %3882 = vmatmul.mubr.msk.bf16.vlgmr.msra.gmra.mrb[44].mxu0 %vm106_vm1, %v4906_v38 }
0x1aef   :  { %3886 = vmatpush3.bf16.msra.mxu0 %v5010_v48  ;;  %3889 = vmatprep.mubr.msk.bf16.mxu0 %vm4400_vm0, %v4399_v0 }
0x1af0   :  { %3887 = vmatprep.subr.bf16.mxu0 %v4399_v0 }
0x1af3   :  { %3888 = vmatpush3.bf16.msra.mxu0 %v5019_v62 }
0x1af4   :  { %3901 = vmatprep.subr.bf16.mxu0 %v4399_v0 }
0x1bb9   :  { %v1496_v38 = vpop.f32.mrb[40].mxu0 }
0x1bba   :  { %v1497_v63 = vadd.f32 %v1496_v38, %v4946_v3  ;;  %v3875_v25 = vpop.f32.mrb[41].mxu0 }
0x1bbb   :  { %v1499_v41 = vpop.f32.mrb[42].mxu0  ;;  %v5074_v25 = vld [vmem:[%s5780_s1 + $0x10] sm:$0xff]  }
0x1bbc   :  { %v1503_v17 = vadd.f32 %v5027_v15, %v1497_v63  ;;  %v1500_v49 = vadd.f32 %v1499_v41, %v4948_v18  ;;  %v3876_v36 = vpop.f32.mrb[43].mxu0  ;;  %v5067_v63 = vld [vmem:[%s5780_s1 + $0x8] sm:$0xff]   ;;  %v5081_v41 = vld [vmem:[%s5780_s1 + $0x18] sm:$0xff]  }
0x1bbd   :  { %v5102_v36 = vld [vmem:[%s5780_s1 + $0x30] sm:$0xff]  }
0x1bbe   :  { %4237 = vtanh.f32 %v1503_v17  ;;  %v1504_v8 = vadd.f32 %v5027_v15, %v1500_v49  ;;  %v1505_v53 = vmul.f32 0.5, %v1503_v17  ;;  %v5088_v17 = vld [vmem:[%s5780_s1 + $0x20] sm:$0xff]   ;;  %v5095_v49 = vld [vmem:[%s5780_s1 + $0x28] sm:$0xff]  }
0x1bc0   :  { %4239 = vtanh.f32 %v1504_v8  ;;  %v1506_v18 = vmul.f32 0.5, %v1504_v8  ;;  %v5109_v8 = vld [vmem:[%s5780_s1 + $0x38] sm:$0xff]  }
0x1bc1   :  { %v5032_v40 = vpop.f32.mrb[44].mxu0  ;;  %4241 = vtanh.f32 %v1505_v53  ;;  %v5117_v53 = vld [vmem:[%s5777_s4 + $0x1] ss:$0 sm:$0xff] }
0x1bc2   :  { %v3883_v9 = vpop.f32.mrb[45].mxu0  ;;  %4243 = vtanh.f32 %v1506_v18 }
0x1bc3   :  { %v5034_v3 = vpop.f32.mrb[46].mxu0 }
0x1bc4   :  { %v3884_v11 = vpop.f32.mrb[47].mxu0 }
0x1bc8   :  { %v4238_v12 = vpop.eup %4237 }
0x1bc9   :  { %1519 = vrot.lane.b32.xlu1 %v4238_v12, %s4402_s18 }
0x1bca   :  { %v4240_v13 = vpop.eup %4239 }
0x1bcb   :  { %1521 = vrot.lane.b32.xlu0 %v4240_v13, %s4402_s18  ;;  %v4242_v19 = vpop.eup %4241 }
0x1bcc   :  { %v1509_v14 = vadd.f32 1.0, %v4242_v19  ;;  %v4244_v23 = vpop.eup %4243 }
0x1bcd   :  { %v1510_v24 = vadd.f32 1.0, %v4244_v23 }
0x1bce   :  { %v1511_v54 = vmul.f32 0.5, %v1509_v14 }
0x1bcf   :  { %v1512_v30 = vmul.f32 0.5, %v1510_v24 }
0x1bd0   :  { %v1515_v28 = vmul.f32 %v1511_v54, %v4856_v39 }
0x1bd1   :  { %v1516_v7 = vmul.f32 %v1512_v30, %v4860_v6  ;;  %v5058_v6 = vld [vmem:[%s5780_s1] sm:$0xff]  }
0x1c3b   :  { %v1520_v42 = vpop.permute.xlu1 %1519 }
0x1c3c   :  { %v1525_v29 = vmul.f32 %v1520_v42, %v1511_v54 }
0x1c3d   :  { %v1522_v44 = vpop.permute.xlu0 %1521 }
0x1c3e   :  { %1529 = vrot.lane.b32.xlu1 %v1525_v29, %s4403_s19  ;;  %v1526_v22 = vmul.f32 %v1522_v44, %v1512_v30 }
0x1c42   :  { %1531 = vrot.lane.b32.xlu1 %v1526_v22, %s4403_s19 }
0x1cb0   :  { %v1530_v26 = vpop.permute.xlu1 %1529 }
0x1cb1   :  { %v5041_v43 = vadd.f32 %v1530_v26, %v1515_v28 }
0x1cb3   :  { %4245 = vtanh.f32 %v5041_v43 }
0x1cb4   :  { %v1532_v58 = vpop.permute.xlu1 %1531 }
0x1cb5   :  { %v5045_v31 = vadd.f32 %v1532_v58, %v1516_v7 }
0x1cb7   :  { %4247 = vtanh.f32 %v5045_v31 }
0x1cbd   :  { %v4246_v45 = vpop.eup %4245 }
0x1cbe   :  { %1541 = vrot.lane.b32.xlu0 %v4246_v45, %s4402_s18 }
0x1cc1   :  { %v4248_v52 = vpop.eup %4247 }
0x1cc2   :  { %1543 = vrot.lane.b32.xlu1 %v4248_v52, %s4402_s18 }
0x1d30   :  { %v1542_v20 = vpop.permute.xlu0 %1541 }
0x1d31   :  { %v1547_v34 = vmul.f32 %v1542_v20, %v1511_v54 }
0x1d34   :  { %v1544_v39 = vpop.permute.xlu1 %1543 }
0x1d35   :  { %v1548_v35 = vmul.f32 %v1544_v39, %v1512_v30 }
0x1d37   :  { %v1549_v55 = vpack.c.bf16 %v1548_v35, %v1547_v34 }
0x1d39   :  { %1592 = vrot.lane.b32.xlu0 %v1549_v55, %s4403_s19 }
0x1dab   :  { %v5051_v38 = vpop.permute.xlu0 %1592 }
0x1dac   :  { %3890 = vmatmul.mubr.msk.bf16.vlgmr.msra.gmra.mrb[48].mxu0 %vm106_vm1, %v5051_v38 }
0x1dad   :  { %3902 = vmatpush3.bf16.msra.mxu0 %v5058_v6  ;;  %3917 = vmatprep.mubr.msk.bf16.mxu0 %vm4400_vm0, %v4399_v0 }
0x1dae   :  { %3903 = vmatprep.subr.bf16.mxu0 %v4399_v0 }
0x1db1   :  { %3904 = vmatpush3.bf16.msra.mxu0 %v5067_v63 }
0x1db2   :  { %3905 = vmatprep.subr.bf16.mxu0 %v4399_v0 }
0x1db5   :  { %3906 = vmatpush3.bf16.msra.mxu0 %v5074_v25 }
0x1db6   :  { %3907 = vmatprep.subr.bf16.mxu0 %v4399_v0 }
0x1db9   :  { %3908 = vmatpush3.bf16.msra.mxu0 %v5081_v41 }
0x1dba   :  { %3909 = vmatprep.subr.bf16.mxu0 %v4399_v0 }
0x1dbd   :  { %3910 = vmatpush3.bf16.msra.mxu0 %v5088_v17 }
0x1dbe   :  { %3911 = vmatprep.subr.bf16.mxu0 %v4399_v0 }
0x1dc1   :  { %3912 = vmatpush3.bf16.msra.mxu0 %v5095_v49 }
0x1dc2   :  { %3913 = vmatprep.subr.bf16.mxu0 %v4399_v0 }
0x1dc5   :  { %3914 = vmatpush3.bf16.msra.mxu0 %v5102_v36 }
0x1dc6   :  { %3915 = vmatprep.subr.bf16.mxu0 %v4399_v0 }
0x1dc9   :  { %3916 = vmatpush3.bf16.msra.mxu0 %v5109_v8 }
0x1dca   :  { %3953 = vmatprep.subr.bf16.mxu0 %v4399_v0 }
0x1e7f   :  { %v1631_v9 = vpop.f32.mrb[48].mxu0 }
0x1e80   :  { %v1632_v11 = vadd.f32 %v1631_v9, %v5032_v40  ;;  %v3891_v12 = vpop.f32.mrb[49].mxu0 }
0x1e81   :  { %v1634_v13 = vpop.f32.mrb[50].mxu0 }
0x1e82   :  { %v1638_v18 = vadd.f32 %v5117_v53, %v1632_v11  ;;  %v1635_v19 = vadd.f32 %v1634_v13, %v5034_v3  ;;  %v3892_v14 = vpop.f32.mrb[51].mxu0 }
0x1e84   :  { %4249 = vtanh.f32 %v1638_v18  ;;  %v1639_v23 = vadd.f32 %v5117_v53, %v1635_v19  ;;  %v1640_v24 = vmul.f32 0.5, %v1638_v18 }
0x1e86   :  { %4251 = vtanh.f32 %v1639_v23  ;;  %v1641_v42 = vmul.f32 0.5, %v1639_v23  ;;  %v5158_v23 = vld [vmem:[%s5779_s6] ss:$0 sm:$0xff] }
0x1e87   :  { %4253 = vtanh.f32 %v1640_v24 }
0x1e88   :  { %4255 = vtanh.f32 %v1641_v42 }
0x1e8e   :  { %v4250_v54 = vpop.eup %4249 }
0x1e8f   :  { %1654 = vrot.lane.b32.xlu1 %v4250_v54, %s4402_s18 }
0x1e90   :  { %v4252_v40 = vpop.eup %4251 }
0x1e91   :  { %1656 = vrot.lane.b32.xlu0 %v4252_v40, %s4402_s18  ;;  %v4254_v29 = vpop.eup %4253 }
0x1e92   :  { %v4256_v44 = vpop.eup %4255  ;;  %v1644_v30 = vadd.f32 1.0, %v4254_v29 }
0x1e93   :  { %v1645_v22 = vadd.f32 1.0, %v4256_v44 }
0x1e94   :  { %v1646_v3 = vmul.f32 0.5, %v1644_v30 }
0x1e95   :  { %v1647_v7 = vmul.f32 0.5, %v1645_v22 }
0x1e96   :  { %v1650_v52 = vmul.f32 %v1646_v3, %v4896_v32 }
0x1e97   :  { %v1651_v34 = vmul.f32 %v1647_v7, %v4900_v33 }
0x1f01   :  { %v1655_v28 = vpop.permute.xlu1 %1654 }
0x1f02   :  { %v1660_v26 = vmul.f32 %v1655_v28, %v1646_v3 }
0x1f03   :  { %v1657_v58 = vpop.permute.xlu0 %1656 }
0x1f04   :  { %1664 = vrot.lane.b32.xlu1 %v1660_v26, %s4403_s19  ;;  %v1661_v45 = vmul.f32 %v1657_v58, %v1647_v7 }
0x1f06   :  { %1666 = vrot.lane.b32.xlu0 %v1661_v45, %s4403_s19 }
0x1f76   :  { %v1665_v20 = vpop.permute.xlu1 %1664 }
0x1f77   :  { %v5127_v39 = vadd.f32 %v1665_v20, %v1650_v52 }
0x1f78   :  { %v1667_v35 = vpop.permute.xlu0 %1666 }
0x1f79   :  { %4257 = vtanh.f32 %v5127_v39  ;;  %v5131_v55 = vadd.f32 %v1667_v35, %v1651_v34 }
0x1f7b   :  { %4259 = vtanh.f32 %v5131_v55 }
0x1f83   :  { %v4258_v9 = vpop.eup %4257 }
0x1f84   :  { %1676 = vrot.lane.b32.xlu1 %v4258_v9, %s4402_s18 }
0x1f85   :  { %v4260_v11 = vpop.eup %4259 }
0x1f86   :  { %1678 = vrot.lane.b32.xlu0 %v4260_v11, %s4402_s18 }
0x1ff6   :  { %v1677_v12 = vpop.permute.xlu1 %1676 }
0x1ff7   :  { %v1682_v13 = vmul.f32 %v1677_v12, %v1646_v3 }
0x1ff8   :  { %v1679_v32 = vpop.permute.xlu0 %1678 }
0x1ff9   :  { %v1683_v18 = vmul.f32 %v1679_v32, %v1647_v7 }
0x1ffb   :  { %v1684_v19 = vpack.c.bf16 %v1683_v18, %v1682_v13 }
0x1ffd   :  { %1686 = vrot.lane.b32.xlu1 %v1684_v19, %s4403_s19 }
0x206f   :  { %v5137_v33 = vpop.permute.xlu1 %1686 }
0x2070   :  { %3898 = vmatmul.mubr.msk.bf16.vlgmr.msra.gmra.mrb[36].mxu1 %vm106_vm1, %v5137_v33 }
0x2071   :  { %3922 = vmatpush3.bf16.msra.mxu1 %v4913_v50  ;;  %3925 = vmatprep.mubr.msk.bf16.mxu1 %vm4400_vm0, %v4399_v0 }
0x2072   :  { %3923 = vmatprep.subr.bf16.mxu1 %v4399_v0 }
0x2075   :  { %3924 = vmatpush3.bf16.msra.mxu1 %v4922_v51 }
0x2076   :  { %3929 = vmatprep.subr.bf16.mxu1 %v4399_v0 }
0x2078   :  { %3926 = vmatmul.mubr.msk.bf16.vlgmr.msra.gmra.mrb[40].mxu1 %vm106_vm1, %v5051_v38 }
0x2079   :  { %3930 = vmatpush3.bf16.msra.mxu1 %v4931_v56  ;;  %3933 = vmatprep.mubr.msk.bf16.mxu1 %vm4400_vm0, %v4399_v0 }
0x207a   :  { %3931 = vmatprep.subr.bf16.mxu1 %v4399_v0 }
0x207d   :  { %3932 = vmatpush3.bf16.msra.mxu1 %v4940_v61 }
0x207e   :  { %3937 = vmatprep.subr.bf16.mxu1 %v4399_v0 }
0x2143   :  { %v1725_v14 = vpop.f32.mrb[36].mxu1 }
0x2144   :  { %v1726_v54 = vadd.f32 %v5158_v23, %v1725_v14  ;;  %v3899_v38 = vpop.f32.mrb[37].mxu1 }
0x2145   :  { %v1728_v40 = vpop.f32.mrb[38].mxu1 }
0x2146   :  { %v1729_v24 = vadd.f32 %v5158_v23, %v1728_v40  ;;  %1732 = vmax.xlane.f32.xlu0 %v1726_v54  ;;  %v3900_v42 = vpop.f32.mrb[39].mxu1 }
0x2148   :  { %1734 = vmax.xlane.f32.xlu1 %v1729_v24 }
0x214b   :  { %v5162_v29 = vpop.f32.mrb[40].mxu1 }
0x214c   :  { %v3927_v44 = vpop.f32.mrb[41].mxu1 }
0x214d   :  { %v5164_v30 = vpop.f32.mrb[42].mxu1 }
0x214e   :  { %v3928_v22 = vpop.f32.mrb[43].mxu1 }
0x21d3   :  { %v5166_v3 = vpop.xlane.xlu0 %1732 }
0x21d4   :  { %vm1736_vm12 = vcmp.eq.f32.partialorder %v1726_v54, %v5166_v3 }
0x21d5   :  { %v1738_v28 = vsel %vm1736_vm12, %v4616_v57, 128  ;;  %v5170_v26 = vpop.xlane.xlu1 %1734 }
0x21d6   :  { %vm1737_vm15 = vcmp.eq.f32.partialorder %v1729_v24, %v5170_v26  ;;  %v1741_v7 = vshra.s32 %v1738_v28, 16  ;;  %v1740_v34 = vand.u32 65535, %v1738_v28 }
0x21d7   :  { %v1739_v58 = vsel %vm1737_vm15, %v4616_v57, 128  ;;  %vm2172_vm15 = vcmp.eq.s32.totalorder %v4616_v57, 4 }
0x21d8   :  { %v1743_v45 = vcvt.s32.f32 %v1741_v7  ;;  %v1755_v52 = vshra.s32 %v1739_v58, 16  ;;  %v1742_v9 = vcvt.s32.f32 %v1740_v34  ;;  %v1754_v11 = vand.u32 65535, %v1739_v58 }
0x21da   :  { %1744 = vmin.xlane.f32.xlu0 %v1743_v45  ;;  %v1757_v20 = vcvt.s32.f32 %v1755_v52  ;;  %v1756_v13 = vcvt.s32.f32 %v1754_v11 }
0x21de   :  { %1758 = vmin.xlane.f32.xlu0 %v1757_v20 }
0x2267   :  { %v1745_v35 = vpop.xlane.xlu0 %1744 }
0x2268   :  { %vm1746_vm2 = vcmp.eq.f32.partialorder %v1743_v45, %v1745_v35  ;;  %v1751_v19 = vcvt.f32.s32 %v1745_v35 }
0x2269   :  { %v1747_v12 = vsel %vm1746_vm2, %v1742_v9, inf }
0x226a   :  { %1748 = vmin.xlane.f32.xlu1 %v1747_v12  ;;  %v1752_v54 = vshll.u32 %v1751_v19, 16 }
0x226b   :  { %v1759_v32 = vpop.xlane.xlu0 %1758 }
0x226c   :  { %vm1760_vm3 = vcmp.eq.f32.partialorder %v1757_v20, %v1759_v32  ;;  %v1765_v38 = vcvt.f32.s32 %v1759_v32 }
0x226d   :  { %v1761_v18 = vsel %vm1760_vm3, %v1756_v13, inf }
0x226e   :  { %1762 = vmin.xlane.f32.xlu0 %v1761_v18  ;;  %v1766_v44 = vshll.u32 %v1765_v38, 16 }
0x22f7   :  { %v1749_v14 = vpop.xlane.xlu1 %1748 }
0x22f8   :  { %v1750_v40 = vcvt.f32.s32 %v1749_v14 }
0x22fa   :  { %v1753_v24 = vadd.s32 %v1752_v54, %v1750_v40 }
0x22fb   :  { %v1763_v42 = vpop.xlane.xlu0 %1762 }
0x22fc   :  { %v5178_v22 = vsel %vm1768_vm4, %v1753_v24, %v4962_v27  ;;  %v1764_v28 = vcvt.f32.s32 %v1763_v42  ;;  %vm1773_vm5 = vcmp.eq.s32.totalorder %v4616_v57, %v1753_v24 }
0x22fe   :  { %v1767_v7 = vadd.s32 %v1766_v44, %v1764_v28 }
0x2300   :  { %v5184_v58 = vsel %vm1768_vm4, %v1767_v7, %v4968_v2  ;;  %vm1774_vm6 = vcmp.eq.s32.totalorder %v4616_v57, %v1767_v7 }
0x2301   :  { %vm3464_vm7 = vmpackc.low %vm1774_vm6, %vm1773_vm5 }
0x2302   :  { %3918 = vmatmul.mubr.msk.bf16.vlgmr.msra.gmra.mrb[52].mxu0 %vm3464_vm7, %v4404_v47 }
0x2303   :  { %3954 = vmatpush3.bf16.msra.mxu0 %v4975_v16  ;;  %3957 = vmatprep.mubr.msk.bf16.mxu0 %vm4400_vm0, %v4399_v0 }
0x2304   :  { %3955 = vmatprep.subr.bf16.mxu0 %v4399_v0 }
0x2307   :  { %3956 = vmatpush3.bf16.msra.mxu0 %v4984_v1 }
0x2308   :  { %3981 = vmatprep.subr.bf16.mxu0 %v4399_v0 }
0x23d5   :  { %v1814_v27 = vpop.f32.mrb[52].mxu0 }
0x23d6   :  { %v3919_v45 = vpop.f32.mrb[53].mxu0 }
0x23d7   :  { %v1817_v2 = vpop.f32.mrb[54].mxu0 }
0x23d8   :  { %v1821_v52 = vpack.c.bf16 %v1817_v2, %v1814_v27  ;;  %v3920_v20 = vpop.f32.mrb[55].mxu0 }
0x23da   :  { %3934 = vmatmul.mubr.msk.bf16.vlgmr.msra.gmra.mrb[44].mxu1 %vm106_vm1, %v1821_v52 }
0x23db   :  { %3938 = vmatpush3.bf16.msra.mxu1 %v4992_v10  ;;  %3941 = vmatprep.mubr.msk.bf16.mxu1 %vm4400_vm0, %v4399_v0 }
0x23dc   :  { %3939 = vmatprep.subr.bf16.mxu1 %v4399_v0 }
0x23df   :  { %3940 = vmatpush3.bf16.msra.mxu1 %v5001_v37 }
0x23e0   :  { %3945 = vmatprep.subr.bf16.mxu1 %v4399_v0 }
0x23e2   :  { %3942 = vmatmul.mubr.msk.bf16.vlgmr.msra.gmra.mrb[48].mxu1 %vm106_vm1, %v5137_v33 }
0x23e3   :  { %3946 = vmatpush3.bf16.msra.mxu1 %v5010_v48  ;;  %3949 = vmatprep.mubr.msk.bf16.mxu1 %vm4400_vm0, %v4399_v0 }
0x23e4   :  { %3947 = vmatprep.subr.bf16.mxu1 %v4399_v0 }
0x23e7   :  { %3948 = vmatpush3.bf16.msra.mxu1 %v5019_v62 }
0x23e8   :  { %3961 = vmatprep.subr.bf16.mxu1 %v4399_v0 }
0x24ad   :  { %v1900_v34 = vpop.f32.mrb[44].mxu1 }
0x24ae   :  { %v1901_v35 = vadd.f32 %v1900_v34, %v5162_v29  ;;  %v3935_v9 = vpop.f32.mrb[45].mxu1 }
0x24af   :  { %v1903_v11 = vpop.f32.mrb[46].mxu1 }
0x24b0   :  { %v1907_v12 = vadd.f32 %v5027_v15, %v1901_v35  ;;  %v1904_v33 = vadd.f32 %v1903_v11, %v5164_v30  ;;  %v3936_v32 = vpop.f32.mrb[47].mxu1 }
0x24b2   :  { %4261 = vtanh.f32 %v1907_v12  ;;  %v1908_v13 = vadd.f32 %v5027_v15, %v1904_v33  ;;  %v1909_v40 = vmul.f32 0.5, %v1907_v12 }
0x24b4   :  { %4263 = vtanh.f32 %v1908_v13  ;;  %v1910_v24 = vmul.f32 0.5, %v1908_v13 }
0x24b5   :  { %v1988_v18 = vpop.f32.mrb[48].mxu1  ;;  %4265 = vtanh.f32 %v1909_v40 }
0x24b6   :  { %v3943_v19 = vpop.f32.mrb[49].mxu1  ;;  %4267 = vtanh.f32 %v1910_v24 }
0x24b7   :  { %v5213_v14 = vpop.f32.mrb[50].mxu1 }
0x24b8   :  { %v3944_v54 = vpop.f32.mrb[51].mxu1 }
0x24bc   :  { %v4262_v38 = vpop.eup %4261 }
0x24bd   :  { %1923 = vrot.lane.b32.xlu1 %v4262_v38, %s4402_s18 }
0x24be   :  { %v4264_v29 = vpop.eup %4263 }
0x24bf   :  { %1925 = vrot.lane.b32.xlu0 %v4264_v29, %s4402_s18  ;;  %v4266_v30 = vpop.eup %4265 }
0x24c0   :  { %v1913_v42 = vadd.f32 1.0, %v4266_v30  ;;  %v4268_v44 = vpop.eup %4267 }
0x24c1   :  { %v1914_v7 = vadd.f32 1.0, %v4268_v44 }
0x24c2   :  { %v1915_v28 = vmul.f32 0.5, %v1913_v42 }
0x24c3   :  { %v1916_v52 = vmul.f32 0.5, %v1914_v7 }
0x24c4   :  { %v1919_v34 = vmul.f32 %v1915_v28, %v5041_v43 }
0x24c5   :  { %v1920_v11 = vmul.f32 %v1916_v52, %v5045_v31 }
0x252f   :  { %v1924_v27 = vpop.permute.xlu1 %1923 }
0x2530   :  { %v1929_v45 = vmul.f32 %v1924_v27, %v1915_v28 }
0x2531   :  { %v1926_v2 = vpop.permute.xlu0 %1925 }
0x2532   :  { %1933 = vrot.lane.b32.xlu1 %v1929_v45, %s4403_s19  ;;  %v1930_v20 = vmul.f32 %v1926_v2, %v1916_v52 }
0x2536   :  { %1935 = vrot.lane.b32.xlu1 %v1930_v20, %s4403_s19 }
0x25a4   :  { %v1934_v35 = vpop.permute.xlu1 %1933 }
0x25a5   :  { %v5220_v9 = vadd.f32 %v1934_v35, %v1919_v34 }
0x25a7   :  { %4269 = vtanh.f32 %v5220_v9 }
0x25a8   :  { %v1936_v12 = vpop.permute.xlu1 %1935 }
0x25a9   :  { %v5224_v33 = vadd.f32 %v1936_v12, %v1920_v11 }
0x25ab   :  { %4271 = vtanh.f32 %v5224_v33 }
0x25b1   :  { %v4270_v32 = vpop.eup %4269 }
0x25b2   :  { %1945 = vrot.lane.b32.xlu0 %v4270_v32, %s4402_s18 }
0x25b5   :  { %v4272_v13 = vpop.eup %4271 }
0x25b6   :  { %1947 = vrot.lane.b32.xlu1 %v4272_v13, %s4402_s18 }
0x2624   :  { %v1946_v19 = vpop.permute.xlu0 %1945 }
0x2625   :  { %v1951_v54 = vmul.f32 %v1946_v19, %v1915_v28 }
0x2628   :  { %v1948_v43 = vpop.permute.xlu1 %1947 }
0x2629   :  { %v1952_v38 = vmul.f32 %v1948_v43, %v1916_v52 }
0x262b   :  { %v1953_v29 = vpack.c.bf16 %v1952_v38, %v1951_v54 }
0x262d   :  { %1996 = vrot.lane.b32.xlu0 %v1953_v29, %s4403_s19 }
0x269f   :  { %v5230_v40 = vpop.permute.xlu0 %1996 }
0x26a0   :  { %3950 = vmatmul.mubr.msk.bf16.vlgmr.msra.gmra.mrb[52].mxu1 %vm106_vm1, %v5230_v40 }
0x26a1   :  { %3962 = vmatpush3.bf16.msra.mxu1 %v5058_v6  ;;  %3977 = vmatprep.mubr.msk.bf16.mxu1 %vm4400_vm0, %v4399_v0 }
0x26a2   :  { %3963 = vmatprep.subr.bf16.mxu1 %v4399_v0 }
0x26a5   :  { %3964 = vmatpush3.bf16.msra.mxu1 %v5067_v63 }
0x26a6   :  { %3965 = vmatprep.subr.bf16.mxu1 %v4399_v0 }
0x26a9   :  { %3966 = vmatpush3.bf16.msra.mxu1 %v5074_v25 }
0x26aa   :  { %3967 = vmatprep.subr.bf16.mxu1 %v4399_v0 }
0x26ad   :  { %3968 = vmatpush3.bf16.msra.mxu1 %v5081_v41 }
0x26ae   :  { %3969 = vmatprep.subr.bf16.mxu1 %v4399_v0 }
0x26b1   :  { %3970 = vmatpush3.bf16.msra.mxu1 %v5088_v17 }
0x26b2   :  { %3971 = vmatprep.subr.bf16.mxu1 %v4399_v0 }
0x26b5   :  { %3972 = vmatpush3.bf16.msra.mxu1 %v5095_v49 }
0x26b6   :  { %3973 = vmatprep.subr.bf16.mxu1 %v4399_v0 }
0x26b9   :  { %3974 = vmatpush3.bf16.msra.mxu1 %v5102_v36 }
0x26ba   :  { %3975 = vmatprep.subr.bf16.mxu1 %v4399_v0 }
0x26bd   :  { %3976 = vmatpush3.bf16.msra.mxu1 %v5109_v8 }
0x26be   :  { %4013 = vmatprep.subr.bf16.mxu1 %v4399_v0 }
0x2773   :  { %v2035_v31 = vpop.f32.mrb[52].mxu1 }
0x2774   :  { %v2036_v24 = vadd.f32 %v2035_v31, %v1988_v18  ;;  %v3951_v30 = vpop.f32.mrb[53].mxu1 }
0x2775   :  { %v2038_v42 = vpop.f32.mrb[54].mxu1 }
0x2776   :  { %v2042_v44 = vadd.f32 %v5117_v53, %v2036_v24  ;;  %v2039_v28 = vadd.f32 %v2038_v42, %v5213_v14  ;;  %v3952_v7 = vpop.f32.mrb[55].mxu1 }
0x2778   :  { %4273 = vtanh.f32 %v2042_v44  ;;  %v2043_v27 = vadd.f32 %v5117_v53, %v2039_v28  ;;  %v2044_v52 = vmul.f32 0.5, %v2042_v44 }
0x277a   :  { %4275 = vtanh.f32 %v2043_v27  ;;  %v2045_v20 = vmul.f32 0.5, %v2043_v27 }
0x277b   :  { %4277 = vtanh.f32 %v2044_v52 }
0x277c   :  { %4279 = vtanh.f32 %v2045_v20 }
0x2782   :  { %v4274_v45 = vpop.eup %4273 }
0x2783   :  { %2058 = vrot.lane.b32.xlu1 %v4274_v45, %s4402_s18 }
0x2784   :  { %v4276_v2 = vpop.eup %4275 }
0x2785   :  { %2060 = vrot.lane.b32.xlu0 %v4276_v2, %s4402_s18  ;;  %v4278_v18 = vpop.eup %4277 }
0x2786   :  { %v4280_v34 = vpop.eup %4279  ;;  %v2048_v35 = vadd.f32 1.0, %v4278_v18 }
0x2787   :  { %v2049_v11 = vadd.f32 1.0, %v4280_v34 }
0x2788   :  { %v2050_v14 = vmul.f32 0.5, %v2048_v35 }
0x2789   :  { %v2051_v13 = vmul.f32 0.5, %v2049_v11 }
0x278a   :  { %v2054_v54 = vmul.f32 %v2050_v14, %v5127_v39 }
0x278b   :  { %v2055_v31 = vmul.f32 %v2051_v13, %v5131_v55 }
0x27f5   :  { %v2059_v12 = vpop.permute.xlu1 %2058 }
0x27f6   :  { %v2064_v32 = vmul.f32 %v2059_v12, %v2050_v14 }
0x27f7   :  { %v2061_v19 = vpop.permute.xlu0 %2060 }
0x27f8   :  { %2068 = vrot.lane.b32.xlu1 %v2064_v32, %s4403_s19  ;;  %v2065_v43 = vmul.f32 %v2061_v19, %v2051_v13 }
0x27fa   :  { %2070 = vrot.lane.b32.xlu0 %v2065_v43, %s4403_s19 }
0x286a   :  { %v2069_v38 = vpop.permute.xlu1 %2068 }
0x286b   :  { %v5260_v29 = vadd.f32 %v2069_v38, %v2054_v54 }
0x286c   :  { %v2071_v24 = vpop.permute.xlu0 %2070 }
0x286d   :  { %4281 = vtanh.f32 %v5260_v29  ;;  %v5264_v30 = vadd.f32 %v2071_v24, %v2055_v31 }
0x286f   :  { %4283 = vtanh.f32 %v5264_v30 }
0x2877   :  { %v4282_v42 = vpop.eup %4281 }
0x2878   :  { %2080 = vrot.lane.b32.xlu1 %v4282_v42, %s4402_s18 }
0x2879   :  { %v4284_v44 = vpop.eup %4283 }
0x287a   :  { %2082 = vrot.lane.b32.xlu0 %v4284_v44, %s4402_s18 }
0x28ea   :  { %v2081_v28 = vpop.permute.xlu1 %2080 }
0x28eb   :  { %v2086_v7 = vmul.f32 %v2081_v28, %v2050_v14 }
0x28ec   :  { %v2083_v39 = vpop.permute.xlu0 %2082 }
0x28ed   :  { %v2087_v27 = vmul.f32 %v2083_v39, %v2051_v13 }
0x28ef   :  { %v2088_v45 = vpack.c.bf16 %v2087_v27, %v2086_v7 }
0x28f1   :  { %2090 = vrot.lane.b32.xlu1 %v2088_v45, %s4403_s19 }
0x2963   :  { %v5270_v55 = vpop.permute.xlu1 %2090 }
0x2964   :  { %3958 = vmatmul.mubr.msk.bf16.vlgmr.msra.gmra.mrb[56].mxu0 %vm106_vm1, %v5270_v55 }
0x2965   :  { %3982 = vmatpush3.bf16.msra.mxu0 %v4913_v50  ;;  %3985 = vmatprep.mubr.msk.bf16.mxu0 %vm4400_vm0, %v4399_v0 }
0x2966   :  { %3983 = vmatprep.subr.bf16.mxu0 %v4399_v0 }
0x2969   :  { %3984 = vmatpush3.bf16.msra.mxu0 %v4922_v51 }
0x296a   :  { %3989 = vmatprep.subr.bf16.mxu0 %v4399_v0 }
0x296c   :  { %3986 = vmatmul.mubr.msk.bf16.vlgmr.msra.gmra.mrb[60].mxu0 %vm106_vm1, %v5230_v40 }
0x296d   :  { %3990 = vmatpush3.bf16.msra.mxu0 %v4931_v56  ;;  %3993 = vmatprep.mubr.msk.bf16.mxu0 %vm4400_vm0, %v4399_v0 }
0x296e   :  { %3991 = vmatprep.subr.bf16.mxu0 %v4399_v0 }
0x2971   :  { %3992 = vmatpush3.bf16.msra.mxu0 %v4940_v61 }
0x2972   :  { %3997 = vmatprep.subr.bf16.mxu0 %v4399_v0 }
0x2a37   :  { %v2129_v50 = vpop.f32.mrb[56].mxu0 }
0x2a38   :  { %v2130_v2 = vadd.f32 %v5158_v23, %v2129_v50  ;;  %v3959_v51 = vpop.f32.mrb[57].mxu0 }
0x2a39   :  { %v2132_v52 = vpop.f32.mrb[58].mxu0 }
0x2a3a   :  { %v2133_v20 = vadd.f32 %v5158_v23, %v2132_v52  ;;  %2136 = vmax.xlane.f32.xlu0 %v2130_v2  ;;  %v3960_v40 = vpop.f32.mrb[59].mxu0 }
0x2a3c   :  { %2138 = vmax.xlane.f32.xlu1 %v2133_v20 }
0x2a3f   :  { %v5290_v56 = vpop.f32.mrb[60].mxu0 }
0x2a40   :  { %v3987_v18 = vpop.f32.mrb[61].mxu0 }
0x2a41   :  { %v5292_v34 = vpop.f32.mrb[62].mxu0 }
0x2a42   :  { %v3988_v35 = vpop.f32.mrb[63].mxu0 }
0x2ac7   :  { %v5294_v11 = vpop.xlane.xlu0 %2136 }
0x2ac8   :  { %vm2140_vm9 = vcmp.eq.f32.partialorder %v2130_v2, %v5294_v11 }
0x2ac9   :  { %v2142_v61 = vsel %vm2140_vm9, %v4616_v57, 128  ;;  %v5298_v14 = vpop.xlane.xlu1 %2138 }
0x2aca   :  { %vm2141_vm10 = vcmp.eq.f32.partialorder %v2133_v20, %v5298_v14  ;;  %v2145_v12 = vshra.s32 %v2142_v61, 16  ;;  %v2144_v54 = vand.u32 65535, %v2142_v61 }
0x2acb   :  { %v2143_v32 = vsel %vm2141_vm10, %v4616_v57, 128 }
0x2acc   :  { %v2159_v13 = vshra.s32 %v2143_v32, 16  ;;  %v2147_v19 = vcvt.s32.f32 %v2145_v12  ;;  %v2158_v38 = vand.u32 65535, %v2143_v32  ;;  %v2146_v24 = vcvt.s32.f32 %v2144_v54 }
0x2ace   :  { %2148 = vmin.xlane.f32.xlu0 %v2147_v19  ;;  %v2161_v43 = vcvt.s32.f32 %v2159_v13  ;;  %v2160_v28 = vcvt.s32.f32 %v2158_v38 }
0x2ad2   :  { %2162 = vmin.xlane.f32.xlu0 %v2161_v43 }
0x2b5b   :  { %v2149_v31 = vpop.xlane.xlu0 %2148 }
0x2b5c   :  { %vm2150_vm11 = vcmp.eq.f32.partialorder %v2147_v19, %v2149_v31  ;;  %v2155_v7 = vcvt.f32.s32 %v2149_v31 }
0x2b5d   :  { %v2151_v42 = vsel %vm2150_vm11, %v2146_v24, inf  ;;  %vm2576_vm11 = vcmp.eq.s32.totalorder %v4616_v57, 5 }
0x2b5e   :  { %2152 = vmin.xlane.f32.xlu1 %v2151_v42  ;;  %v2156_v45 = vshll.u32 %v2155_v7, 16 }
0x2b5f   :  { %v2163_v44 = vpop.xlane.xlu0 %2162 }
0x2b60   :  { %vm2164_vm12 = vcmp.eq.f32.partialorder %v2161_v43, %v2163_v44  ;;  %v2169_v50 = vcvt.f32.s32 %v2163_v44 }
0x2b61   :  { %v2165_v39 = vsel %vm2164_vm12, %v2160_v28, inf }
0x2b62   :  { %2166 = vmin.xlane.f32.xlu0 %v2165_v39  ;;  %v2170_v20 = vshll.u32 %v2169_v50, 16 }
0x2beb   :  { %v2153_v27 = vpop.xlane.xlu1 %2152 }
0x2bec   :  { %v2154_v2 = vcvt.f32.s32 %v2153_v27 }
0x2bee   :  { %v2157_v51 = vadd.s32 %v2156_v45, %v2154_v2 }
0x2bef   :  { %v2167_v52 = vpop.xlane.xlu0 %2166 }
0x2bf0   :  { %v5306_v40 = vsel %vm2172_vm15, %v2157_v51, %v5178_v22  ;;  %v2168_v18 = vcvt.f32.s32 %v2167_v52  ;;  %vm2177_vm2 = vcmp.eq.s32.totalorder %v4616_v57, %v2157_v51 }
0x2bf2   :  { %v2171_v35 = vadd.s32 %v2170_v20, %v2168_v18 }
0x2bf4   :  { %v5312_v61 = vsel %vm2172_vm15, %v2171_v35, %v5184_v58  ;;  %vm2178_vm3 = vcmp.eq.s32.totalorder %v4616_v57, %v2171_v35 }
0x2bf5   :  { %vm3473_vm5 = vmpackc.low %vm2178_vm3, %vm2177_vm2 }
0x2bf6   :  { %3978 = vmatmul.mubr.msk.bf16.vlgmr.msra.gmra.mrb[56].mxu1 %vm3473_vm5, %v4404_v47 }
0x2bf7   :  { %4014 = vmatpush3.bf16.msra.mxu1 %v4975_v16  ;;  %4017 = vmatprep.mubr.msk.bf16.mxu1 %vm4400_vm0, %v4399_v0 }
0x2bf8   :  { %4015 = vmatprep.subr.bf16.mxu1 %v4399_v0 }
0x2bfb   :  { %4016 = vmatpush3.bf16.msra.mxu1 %v4984_v1 }
0x2bfc   :  { %4041 = vmatprep.subr.bf16.mxu1 %v4399_v0 }
0x2cc9   :  { %v2218_v22 = vpop.f32.mrb[56].mxu1 }
0x2cca   :  { %v3979_v12 = vpop.f32.mrb[57].mxu1 }
0x2ccb   :  { %v2221_v58 = vpop.f32.mrb[58].mxu1 }
0x2ccc   :  { %v2225_v32 = vpack.c.bf16 %v2221_v58, %v2218_v22  ;;  %v3980_v13 = vpop.f32.mrb[59].mxu1 }
0x2cce   :  { %3994 = vmatmul.mubr.msk.bf16.vlgmr.msra.gmra.mrb[64].mxu0 %vm106_vm1, %v2225_v32 }
0x2ccf   :  { %3998 = vmatpush3.bf16.msra.mxu0 %v4992_v10  ;;  %4001 = vmatprep.mubr.msk.bf16.mxu0 %vm4400_vm0, %v4399_v0 }
0x2cd0   :  { %3999 = vmatprep.subr.bf16.mxu0 %v4399_v0 }
0x2cd3   :  { %4000 = vmatpush3.bf16.msra.mxu0 %v5001_v37 }
0x2cd4   :  { %4005 = vmatprep.subr.bf16.mxu0 %v4399_v0 }
0x2cd6   :  { %4002 = vmatmul.mubr.msk.bf16.vlgmr.msra.gmra.mrb[68].mxu0 %vm106_vm1, %v5270_v55 }
0x2cd7   :  { %4006 = vmatpush3.bf16.msra.mxu0 %v5010_v48  ;;  %4009 = vmatprep.mubr.msk.bf16.mxu0 %vm4400_vm0, %v4399_v0 }
0x2cd8   :  { %4007 = vmatprep.subr.bf16.mxu0 %v4399_v0 }
0x2cdb   :  { %4008 = vmatpush3.bf16.msra.mxu0 %v5019_v62 }
0x2cdc   :  { %4021 = vmatprep.subr.bf16.mxu0 %v4399_v0 }
0x2da1   :  { %v2304_v16 = vpop.f32.mrb[64].mxu0 }
0x2da2   :  { %v2305_v1 = vadd.f32 %v2304_v16, %v5290_v56  ;;  %v3995_v10 = vpop.f32.mrb[65].mxu0 }
0x2da3   :  { %v2307_v37 = vpop.f32.mrb[66].mxu0 }
0x2da4   :  { %v2311_v19 = vadd.f32 %v5027_v15, %v2305_v1  ;;  %v2308_v55 = vadd.f32 %v2307_v37, %v5292_v34  ;;  %v3996_v43 = vpop.f32.mrb[67].mxu0 }
0x2da6   :  { %4285 = vtanh.f32 %v2311_v19  ;;  %v2312_v48 = vadd.f32 %v5027_v15, %v2308_v55  ;;  %v2313_v42 = vmul.f32 0.5, %v2311_v19 }
0x2da8   :  { %4287 = vtanh.f32 %v2312_v48  ;;  %v2314_v44 = vmul.f32 0.5, %v2312_v48 }
0x2da9   :  { %v2392_v54 = vpop.f32.mrb[68].mxu0  ;;  %4289 = vtanh.f32 %v2313_v42 }
0x2daa   :  { %v4003_v38 = vpop.f32.mrb[69].mxu0  ;;  %4291 = vtanh.f32 %v2314_v44 }
0x2dab   :  { %v5341_v31 = vpop.f32.mrb[70].mxu0 }
0x2dac   :  { %v4004_v62 = vpop.f32.mrb[71].mxu0 }
0x2db0   :  { %v4286_v24 = vpop.eup %4285 }
0x2db1   :  { %2327 = vrot.lane.b32.xlu1 %v4286_v24, %s4402_s18 }
0x2db2   :  { %v4288_v56 = vpop.eup %4287 }
0x2db3   :  { %2329 = vrot.lane.b32.xlu0 %v4288_v56, %s4402_s18  ;;  %v4290_v34 = vpop.eup %4289 }
0x2db4   :  { %v2317_v28 = vadd.f32 1.0, %v4290_v34  ;;  %v4292_v39 = vpop.eup %4291 }
0x2db5   :  { %v2318_v7 = vadd.f32 1.0, %v4292_v39 }
0x2db6   :  { %v2319_v15 = vmul.f32 0.5, %v2317_v28 }
0x2db7   :  { %v2320_v2 = vmul.f32 0.5, %v2318_v7 }
0x2db8   :  { %v2323_v52 = vmul.f32 %v2319_v15, %v5220_v9 }
0x2db9   :  { %v2324_v35 = vmul.f32 %v2320_v2, %v5224_v33 }
0x2e23   :  { %v2328_v27 = vpop.permute.xlu1 %2327 }
0x2e24   :  { %v2333_v45 = vmul.f32 %v2328_v27, %v2319_v15 }
0x2e25   :  { %v2330_v50 = vpop.permute.xlu0 %2329 }
0x2e26   :  { %2337 = vrot.lane.b32.xlu1 %v2333_v45, %s4403_s19  ;;  %v2334_v51 = vmul.f32 %v2330_v50, %v2320_v2 }
0x2e2a   :  { %2339 = vrot.lane.b32.xlu1 %v2334_v51, %s4403_s19 }
0x2e98   :  { %v2338_v20 = vpop.permute.xlu1 %2337 }
0x2e99   :  { %v5348_v18 = vadd.f32 %v2338_v20, %v2323_v52 }
0x2e9b   :  { %4293 = vtanh.f32 %v5348_v18 }
0x2e9c   :  { %v2340_v22 = vpop.permute.xlu1 %2339 }
0x2e9d   :  { %v5352_v12 = vadd.f32 %v2340_v22, %v2324_v35  ;;  %v5405_v35 = vld [vmem:[%s5774_s3] sm:$0xff]   ;;  %v5414_v22 = vld [vmem:[%s5774_s3 + $0x8] sm:$0xff]  }
0x2e9f   :  { %4295 = vtanh.f32 %v5352_v12 }
0x2ea5   :  { %v4294_v58 = vpop.eup %4293 }
0x2ea6   :  { %2349 = vrot.lane.b32.xlu0 %v4294_v58, %s4402_s18  ;;  %v5423_v58 = vld [vmem:[%s5775_s2] sm:$0xff]  }
0x2ea9   :  { %v4296_v32 = vpop.eup %4295 }
0x2eaa   :  { %2351 = vrot.lane.b32.xlu1 %v4296_v32, %s4402_s18  ;;  %v5432_v32 = vld [vmem:[%s5775_s2 + $0x8] sm:$0xff]  }
0x2f18   :  { %v2350_v13 = vpop.permute.xlu0 %2349 }
0x2f19   :  { %v2355_v16 = vmul.f32 %v2350_v13, %v2319_v15 }
0x2f1c   :  { %v2352_v9 = vpop.permute.xlu1 %2351 }
0x2f1d   :  { %v2356_v1 = vmul.f32 %v2352_v9, %v2320_v2 }
0x2f1f   :  { %v2357_v10 = vpack.c.bf16 %v2356_v1, %v2355_v16 }
0x2f21   :  { %2400 = vrot.lane.b32.xlu0 %v2357_v10, %s4403_s19 }
0x2f93   :  { %v5358_v37 = vpop.permute.xlu0 %2400 }
0x2f94   :  { %4010 = vmatmul.mubr.msk.bf16.vlgmr.msra.gmra.mrb[72].mxu0 %vm106_vm1, %v5358_v37 }
0x2f95   :  { %4022 = vmatpush3.bf16.msra.mxu0 %v5058_v6  ;;  %4037 = vmatprep.mubr.msk.bf16.mxu0 %vm4400_vm0, %v4399_v0 }
0x2f96   :  { %4023 = vmatprep.subr.bf16.mxu0 %v4399_v0 }
0x2f99   :  { %4024 = vmatpush3.bf16.msra.mxu0 %v5067_v63 }
0x2f9a   :  { %4025 = vmatprep.subr.bf16.mxu0 %v4399_v0 }
0x2f9d   :  { %4026 = vmatpush3.bf16.msra.mxu0 %v5074_v25 }
0x2f9e   :  { %4027 = vmatprep.subr.bf16.mxu0 %v4399_v0 }
0x2fa1   :  { %4028 = vmatpush3.bf16.msra.mxu0 %v5081_v41 }
0x2fa2   :  { %4029 = vmatprep.subr.bf16.mxu0 %v4399_v0 }
0x2fa5   :  { %4030 = vmatpush3.bf16.msra.mxu0 %v5088_v17 }
0x2fa6   :  { %4031 = vmatprep.subr.bf16.mxu0 %v4399_v0 }
0x2fa9   :  { %4032 = vmatpush3.bf16.msra.mxu0 %v5095_v49 }
0x2faa   :  { %4033 = vmatprep.subr.bf16.mxu0 %v4399_v0 }
0x2fad   :  { %4034 = vmatpush3.bf16.msra.mxu0 %v5102_v36 }
0x2fae   :  { %4035 = vmatprep.subr.bf16.mxu0 %v4399_v0 }
0x2fb1   :  { %4036 = vmatpush3.bf16.msra.mxu0 %v5109_v8 }
0x2fb2   :  { %4073 = vmatprep.subr.bf16.mxu0 %v4399_v0 }
0x3067   :  { %v2439_v6 = vpop.f32.mrb[72].mxu0 }
0x3068   :  { %v2440_v63 = vadd.f32 %v2439_v6, %v2392_v54  ;;  %v4011_v25 = vpop.f32.mrb[73].mxu0 }
0x3069   :  { %v2442_v41 = vpop.f32.mrb[74].mxu0 }
0x306a   :  { %v2446_v17 = vadd.f32 %v5117_v53, %v2440_v63  ;;  %v2443_v33 = vadd.f32 %v2442_v41, %v5341_v31  ;;  %v4012_v19 = vpop.f32.mrb[75].mxu0 }
0x306c   :  { %4297 = vtanh.f32 %v2446_v17  ;;  %v2447_v49 = vadd.f32 %v5117_v53, %v2443_v33  ;;  %v2448_v8 = vmul.f32 0.5, %v2446_v17 }
0x306e   :  { %4299 = vtanh.f32 %v2447_v49  ;;  %v2449_v43 = vmul.f32 0.5, %v2447_v49 }
0x306f   :  { %4301 = vtanh.f32 %v2448_v8 }
0x3070   :  { %4303 = vtanh.f32 %v2449_v43 }
0x3076   :  { %v4298_v36 = vpop.eup %4297 }
0x3077   :  { %2462 = vrot.lane.b32.xlu1 %v4298_v36, %s4402_s18 }
0x3078   :  { %v4300_v55 = vpop.eup %4299 }
0x3079   :  { %2464 = vrot.lane.b32.xlu0 %v4300_v55, %s4402_s18  ;;  %v4302_v48 = vpop.eup %4301 }
0x307a   :  { %v4304_v54 = vpop.eup %4303  ;;  %v2452_v38 = vadd.f32 1.0, %v4302_v48 }
0x307b   :  { %v2453_v62 = vadd.f32 1.0, %v4304_v54 }
0x307c   :  { %v2454_v31 = vmul.f32 0.5, %v2452_v38 }
0x307d   :  { %v2455_v42 = vmul.f32 0.5, %v2453_v62 }
0x307e   :  { %v2458_v34 = vmul.f32 %v2454_v31, %v5260_v29 }
0x307f   :  { %v2459_v15 = vmul.f32 %v2455_v42, %v5264_v30 }
0x30e9   :  { %v2463_v24 = vpop.permute.xlu1 %2462 }
0x30ea   :  { %v2468_v56 = vmul.f32 %v2463_v24, %v2454_v31 }
0x30eb   :  { %v2465_v53 = vpop.permute.xlu0 %2464 }
0x30ec   :  { %2472 = vrot.lane.b32.xlu1 %v2468_v56, %s4403_s19  ;;  %v2469_v44 = vmul.f32 %v2465_v53, %v2455_v42 }
0x30ee   :  { %2474 = vrot.lane.b32.xlu0 %v2469_v44, %s4403_s19 }
0x315e   :  { %v2473_v28 = vpop.permute.xlu1 %2472 }
0x315f   :  { %v5388_v39 = vadd.f32 %v2473_v28, %v2458_v34 }
0x3160   :  { %v2475_v7 = vpop.permute.xlu0 %2474 }
0x3161   :  { %4305 = vtanh.f32 %v5388_v39  ;;  %v5392_v27 = vadd.f32 %v2475_v7, %v2459_v15 }
0x3163   :  { %4307 = vtanh.f32 %v5392_v27 }
0x316b   :  { %v4306_v45 = vpop.eup %4305 }
0x316c   :  { %2484 = vrot.lane.b32.xlu1 %v4306_v45, %s4402_s18 }
0x316d   :  { %v4308_v50 = vpop.eup %4307 }
0x316e   :  { %2486 = vrot.lane.b32.xlu0 %v4308_v50, %s4402_s18 }
0x31de   :  { %v2485_v2 = vpop.permute.xlu1 %2484 }
0x31df   :  { %v2490_v51 = vmul.f32 %v2485_v2, %v2454_v31 }
0x31e0   :  { %v2487_v29 = vpop.permute.xlu0 %2486 }
0x31e1   :  { %v2491_v52 = vmul.f32 %v2487_v29, %v2455_v42 }
0x31e3   :  { %v2492_v20 = vpack.c.bf16 %v2491_v52, %v2490_v51  ;;  %v5467_v52 = vld [vmem:[%s5778_s5] sm:$0xff]  }
0x31e5   :  { %2494 = vrot.lane.b32.xlu1 %v2492_v20, %s4403_s19 }
0x3257   :  { %v5398_v30 = vpop.permute.xlu1 %2494 }
0x3258   :  { %4018 = vmatmul.mubr.msk.bf16.vlgmr.msra.gmra.mrb[60].mxu1 %vm106_vm1, %v5398_v30 }
0x3259   :  { %4042 = vmatpush3.bf16.msra.mxu1 %v5405_v35  ;;  %4045 = vmatprep.mubr.msk.bf16.mxu1 %vm4400_vm0, %v4399_v0 }
0x325a   :  { %4043 = vmatprep.subr.bf16.mxu1 %v4399_v0 }
0x325d   :  { %4044 = vmatpush3.bf16.msra.mxu1 %v5414_v22 }
0x325e   :  { %4049 = vmatprep.subr.bf16.mxu1 %v4399_v0 }
0x3260   :  { %4046 = vmatmul.mubr.msk.bf16.vlgmr.msra.gmra.mrb[64].mxu1 %vm106_vm1, %v5358_v37 }
0x3261   :  { %4050 = vmatpush3.bf16.msra.mxu1 %v5423_v58  ;;  %4053 = vmatprep.mubr.msk.bf16.mxu1 %vm4400_vm0, %v4399_v0 }
0x3262   :  { %4051 = vmatprep.subr.bf16.mxu1 %v4399_v0 }
0x3265   :  { %4052 = vmatpush3.bf16.msra.mxu1 %v5432_v32 }
0x3266   :  { %4057 = vmatprep.subr.bf16.mxu1 %v4399_v0 }
0x332b   :  { %v2533_v13 = vpop.f32.mrb[60].mxu1 }
0x332c   :  { %v2534_v9 = vadd.f32 %v5158_v23, %v2533_v13  ;;  %v4019_v16 = vpop.f32.mrb[61].mxu1 }
0x332d   :  { %v2536_v1 = vpop.f32.mrb[62].mxu1 }
0x332e   :  { %v2537_v10 = vadd.f32 %v5158_v23, %v2536_v1  ;;  %2540 = vmax.xlane.f32.xlu0 %v2534_v9  ;;  %v4020_v37 = vpop.f32.mrb[63].mxu1  ;;  %v5484_v1 = vld [vmem:[%s5774_s3 + $0x10] sm:$0xff]  }
0x332f   :  { %v5502_v37 = vld [vmem:[%s5775_s2 + $0x10] sm:$0xff]  }
0x3330   :  { %2542 = vmax.xlane.f32.xlu1 %v2537_v10 }
0x3333   :  { %v5438_v6 = vpop.f32.mrb[64].mxu1 }
0x3334   :  { %v4047_v63 = vpop.f32.mrb[65].mxu1 }
0x3335   :  { %v5440_v25 = vpop.f32.mrb[66].mxu1  ;;  %v5511_v63 = vld [vmem:[%s5775_s2 + $0x18] sm:$0xff]  }
0x3336   :  { %v4048_v41 = vpop.f32.mrb[67].mxu1 }
0x33bb   :  { %v5442_v17 = vpop.xlane.xlu0 %2540 }
0x33bc   :  { %vm2544_vm6 = vcmp.eq.f32.partialorder %v2534_v9, %v5442_v17 }
0x33bd   :  { %v2546_v33 = vsel %vm2544_vm6, %v4616_v57, 128  ;;  %v5446_v19 = vpop.xlane.xlu1 %2542 }
0x33be   :  { %v2549_v49 = vshra.s32 %v2546_v33, 16  ;;  %vm2545_vm7 = vcmp.eq.f32.partialorder %v2537_v10, %v5446_v19  ;;  %v2548_v43 = vand.u32 65535, %v2546_v33  ;;  %v5493_v10 = vld [vmem:[%s5774_s3 + $0x18] sm:$0xff]  }
0x33bf   :  { %v2547_v23 = vsel %vm2545_vm7, %v4616_v57, 128 }
0x33c0   :  { %v2563_v36 = vshra.s32 %v2547_v23, 16  ;;  %v2551_v55 = vcvt.s32.f32 %v2549_v49  ;;  %v2562_v48 = vand.u32 65535, %v2547_v23  ;;  %v2550_v38 = vcvt.s32.f32 %v2548_v43  ;;  %v5519_v23 = vld [vmem:[%s5777_s4] ss:$0 sm:$0xff] }
0x33c2   :  { %2552 = vmin.xlane.f32.xlu0 %v2551_v55  ;;  %v2565_v8 = vcvt.s32.f32 %v2563_v36  ;;  %v2564_v24 = vcvt.s32.f32 %v2562_v48 }
0x33c6   :  { %2566 = vmin.xlane.f32.xlu0 %v2565_v8 }
0x344f   :  { %v2553_v54 = vpop.xlane.xlu0 %2552 }
0x3450   :  { %vm2554_vm9 = vcmp.eq.f32.partialorder %v2551_v55, %v2553_v54  ;;  %v2559_v42 = vcvt.f32.s32 %v2553_v54 }
0x3451   :  { %v2555_v62 = vsel %vm2554_vm9, %v2550_v38, inf }
0x3452   :  { %2556 = vmin.xlane.f32.xlu1 %v2555_v62  ;;  %v2560_v44 = vshll.u32 %v2559_v42, 16 }
0x3453   :  { %v2567_v31 = vpop.xlane.xlu0 %2566 }
0x3454   :  { %vm2568_vm10 = vcmp.eq.f32.partialorder %v2565_v8, %v2567_v31  ;;  %v2573_v34 = vcvt.f32.s32 %v2567_v31 }
0x3455   :  { %v2569_v56 = vsel %vm2568_vm10, %v2564_v24, inf  ;;  %vm2980_vm10 = vcmp.eq.s32.totalorder %v4616_v57, 6 }
0x3456   :  { %2570 = vmin.xlane.f32.xlu0 %v2569_v56  ;;  %v2574_v45 = vshll.u32 %v2573_v34, 16 }
0x34df   :  { %v2557_v53 = vpop.xlane.xlu1 %2556 }
0x34e0   :  { %v2558_v28 = vcvt.f32.s32 %v2557_v53 }
0x34e2   :  { %v2561_v15 = vadd.s32 %v2560_v44, %v2558_v28 }
0x34e3   :  { %v2571_v7 = vpop.xlane.xlu0 %2570 }
0x34e4   :  { %v5454_v50 = vsel %vm2576_vm11, %v2561_v15, %v5306_v40  ;;  %v2572_v2 = vcvt.f32.s32 %v2571_v7  ;;  %vm2581_vm12 = vcmp.eq.s32.totalorder %v4616_v57, %v2561_v15  ;;  %v5476_v40 = vld [vmem:[%s5778_s5 + $0x8] sm:$0xff]  }
0x34e6   :  { %v2575_v29 = vadd.s32 %v2574_v45, %v2572_v2 }
0x34e8   :  { %v5460_v51 = vsel %vm2576_vm11, %v2575_v29, %v5312_v61  ;;  %vm2582_vm2 = vcmp.eq.s32.totalorder %v4616_v57, %v2575_v29 }
0x34e9   :  { %vm3482_vm3 = vmpackc.low %vm2582_vm2, %vm2581_vm12 }
0x34ea   :  { %4038 = vmatmul.mubr.msk.bf16.vlgmr.msra.gmra.mrb[76].mxu0 %vm3482_vm3, %v4404_v47 }
0x34eb   :  { %4074 = vmatpush3.bf16.msra.mxu0 %v5467_v52  ;;  %4077 = vmatprep.mubr.msk.bf16.mxu0 %vm4400_vm0, %v4399_v0 }
0x34ec   :  { %4075 = vmatprep.subr.bf16.mxu0 %v4399_v0 }
0x34ef   :  { %4076 = vmatpush3.bf16.msra.mxu0 %v5476_v40 }
0x34f0   :  { %4101 = vmatprep.subr.bf16.mxu0 %v4399_v0 }
0x35bd   :  { %v2622_v61 = vpop.f32.mrb[76].mxu0 }
0x35be   :  { %v4039_v20 = vpop.f32.mrb[77].mxu0 }
0x35bf   :  { %v2625_v13 = vpop.f32.mrb[78].mxu0 }
0x35c0   :  { %v2629_v9 = vpack.c.bf16 %v2625_v13, %v2622_v61  ;;  %v4040_v16 = vpop.f32.mrb[79].mxu0 }
0x35c2   :  { %4054 = vmatmul.mubr.msk.bf16.vlgmr.msra.gmra.mrb[68].mxu1 %vm106_vm1, %v2629_v9 }
0x35c3   :  { %4058 = vmatpush3.bf16.msra.mxu1 %v5484_v1  ;;  %4061 = vmatprep.mubr.msk.bf16.mxu1 %vm4400_vm0, %v4399_v0 }
0x35c4   :  { %4059 = vmatprep.subr.bf16.mxu1 %v4399_v0 }
0x35c7   :  { %4060 = vmatpush3.bf16.msra.mxu1 %v5493_v10 }
0x35c8   :  { %4065 = vmatprep.subr.bf16.mxu1 %v4399_v0 }
0x35ca   :  { %4062 = vmatmul.mubr.msk.bf16.vlgmr.msra.gmra.mrb[72].mxu1 %vm106_vm1, %v5398_v30 }
0x35cb   :  { %4066 = vmatpush3.bf16.msra.mxu1 %v5502_v37  ;;  %4069 = vmatprep.mubr.msk.bf16.mxu1 %vm4400_vm0, %v4399_v0 }
0x35cc   :  { %4067 = vmatprep.subr.bf16.mxu1 %v4399_v0 }
0x35cf   :  { %4068 = vmatpush3.bf16.msra.mxu1 %v5511_v63 }
0x35d0   :  { %4081 = vmatprep.subr.bf16.mxu1 %v4399_v0 }
0x3695   :  { %v2708_v30 = vpop.f32.mrb[68].mxu1 }
0x3696   :  { %v2709_v41 = vadd.f32 %v2708_v30, %v5438_v6  ;;  %v4055_v33 = vpop.f32.mrb[69].mxu1 }
0x3697   :  { %v2711_v49 = vpop.f32.mrb[70].mxu1 }
0x3698   :  { %v2715_v36 = vadd.f32 %v5519_v23, %v2709_v41  ;;  %v2712_v55 = vadd.f32 %v2711_v49, %v5440_v25  ;;  %v4056_v8 = vpop.f32.mrb[71].mxu1 }
0x369a   :  { %4309 = vtanh.f32 %v2715_v36  ;;  %v2716_v43 = vadd.f32 %v5519_v23, %v2712_v55  ;;  %v2717_v24 = vmul.f32 0.5, %v2715_v36 }
0x369c   :  { %4311 = vtanh.f32 %v2716_v43  ;;  %v2718_v25 = vmul.f32 0.5, %v2716_v43  ;;  %v4390_v43 = vld [vmem:[%s5780_s1 + $0x8] sm:$0xff]  }
0x369d   :  { %v5524_v48 = vpop.f32.mrb[72].mxu1  ;;  %4313 = vtanh.f32 %v2717_v24  ;;  %v4395_v24 = vld [vmem:[%s5780_s1 + $0x30] sm:$0xff]  }
0x369e   :  { %v4063_v54 = vpop.f32.mrb[73].mxu1  ;;  %4315 = vtanh.f32 %v2718_v25  ;;  %v4396_v25 = vld [vmem:[%s5780_s1 + $0x38] sm:$0xff]  }
0x369f   :  { %v5526_v6 = vpop.f32.mrb[74].mxu1  ;;  %v4391_v54 = vld [vmem:[%s5780_s1 + $0x10] sm:$0xff]  }
0x36a0   :  { %v4064_v38 = vpop.f32.mrb[75].mxu1 }
0x36a1   :  { %v4392_v38 = vld [vmem:[%s5780_s1 + $0x18] sm:$0xff]  }
0x36a4   :  { %v4310_v62 = vpop.eup %4309 }
0x36a5   :  { %2731 = vrot.lane.b32.xlu1 %v4310_v62, %s4402_s18  ;;  %v4393_v62 = vld [vmem:[%s5780_s1 + $0x20] sm:$0xff]  }
0x36a6   :  { %v4312_v31 = vpop.eup %4311 }
0x36a7   :  { %2733 = vrot.lane.b32.xlu0 %v4312_v31, %s4402_s18  ;;  %v4314_v56 = vpop.eup %4313  ;;  %v4394_v31 = vld [vmem:[%s5780_s1 + $0x28] sm:$0xff]  }
0x36a8   :  { %v2721_v42 = vadd.f32 1.0, %v4314_v56  ;;  %v4316_v53 = vpop.eup %4315 }
0x36a9   :  { %v2722_v34 = vadd.f32 1.0, %v4316_v53 }
0x36aa   :  { %v2723_v44 = vmul.f32 0.5, %v2721_v42 }
0x36ab   :  { %v2724_v45 = vmul.f32 0.5, %v2722_v34  ;;  %v5585_v34 = vld [vmem:[%s5777_s4 + $0x1] ss:$0 sm:$0xff] }
0x36ac   :  { %v2727_v29 = vmul.f32 %v2723_v44, %v5348_v18 }
0x36ad   :  { %v2728_v13 = vmul.f32 %v2724_v45, %v5352_v12  ;;  %v4389_v12 = vld [vmem:[%s5780_s1] sm:$0xff]  }
0x3717   :  { %v2732_v28 = vpop.permute.xlu1 %2731 }
0x3718   :  { %v2737_v15 = vmul.f32 %v2732_v28, %v2723_v44 }
0x3719   :  { %v2734_v7 = vpop.permute.xlu0 %2733 }
0x371a   :  { %2741 = vrot.lane.b32.xlu1 %v2737_v15, %s4403_s19  ;;  %v2738_v2 = vmul.f32 %v2734_v7, %v2724_v45 }
0x371e   :  { %2743 = vrot.lane.b32.xlu1 %v2738_v2, %s4403_s19 }
0x378c   :  { %v2742_v61 = vpop.permute.xlu1 %2741 }
0x378d   :  { %v5533_v20 = vadd.f32 %v2742_v61, %v2727_v29 }
0x378f   :  { %4317 = vtanh.f32 %v5533_v20 }
0x3790   :  { %v2744_v9 = vpop.permute.xlu1 %2743 }
0x3791   :  { %v5537_v16 = vadd.f32 %v2744_v9, %v2728_v13 }
0x3793   :  { %4319 = vtanh.f32 %v5537_v16 }
0x3799   :  { %v4318_v30 = vpop.eup %4317 }
0x379a   :  { %2753 = vrot.lane.b32.xlu0 %v4318_v30, %s4402_s18 }
0x379d   :  { %v4320_v41 = vpop.eup %4319 }
0x379e   :  { %2755 = vrot.lane.b32.xlu1 %v4320_v41, %s4402_s18 }
0x380c   :  { %v2754_v33 = vpop.permute.xlu0 %2753 }
0x380d   :  { %v2759_v49 = vmul.f32 %v2754_v33, %v2723_v44 }
0x3810   :  { %v2756_v18 = vpop.permute.xlu1 %2755 }
0x3811   :  { %v2760_v36 = vmul.f32 %v2756_v18, %v2724_v45 }
0x3813   :  { %v2761_v55 = vpack.c.bf16 %v2760_v36, %v2759_v49 }
0x3815   :  { %2804 = vrot.lane.b32.xlu0 %v2761_v55, %s4403_s19 }
0x3887   :  { %v5543_v8 = vpop.permute.xlu0 %2804 }
0x3888   :  { %4070 = vmatmul.mubr.msk.bf16.vlgmr.msra.gmra.mrb[76].mxu1 %vm106_vm1, %v5543_v8 }
0x3889   :  { %4082 = vmatpush3.bf16.msra.mxu1 %v4389_v12  ;;  %4097 = vmatprep.mubr.msk.bf16.mxu1 %vm4400_vm0, %v4399_v0 }
0x388a   :  { %4083 = vmatprep.subr.bf16.mxu1 %v4399_v0 }
0x388d   :  { %4084 = vmatpush3.bf16.msra.mxu1 %v4390_v43 }
0x388e   :  { %4085 = vmatprep.subr.bf16.mxu1 %v4399_v0 }
0x3891   :  { %4086 = vmatpush3.bf16.msra.mxu1 %v4391_v54 }
0x3892   :  { %4087 = vmatprep.subr.bf16.mxu1 %v4399_v0 }
0x3895   :  { %4088 = vmatpush3.bf16.msra.mxu1 %v4392_v38 }
0x3896   :  { %4089 = vmatprep.subr.bf16.mxu1 %v4399_v0 }
0x3899   :  { %4090 = vmatpush3.bf16.msra.mxu1 %v4393_v62 }
0x389a   :  { %4091 = vmatprep.subr.bf16.mxu1 %v4399_v0 }
0x389d   :  { %4092 = vmatpush3.bf16.msra.mxu1 %v4394_v31 }
0x389e   :  { %4093 = vmatprep.subr.bf16.mxu1 %v4399_v0 }
0x38a1   :  { %4094 = vmatpush3.bf16.msra.mxu1 %v4395_v24 }
0x38a2   :  { %4095 = vmatprep.subr.bf16.mxu1 %v4399_v0 }
0x38a5   :  { %4096 = vmatpush3.bf16.msra.mxu1 %v4396_v25 }
0x38a6   :  { %4133 = vmatprep.subr.bf16.mxu1 %v4399_v0 }
0x395b   :  { %v2843_v56 = vpop.f32.mrb[76].mxu1 }
0x395c   :  { %v2844_v42 = vadd.f32 %v2843_v56, %v5524_v48  ;;  %v4071_v53 = vpop.f32.mrb[77].mxu1 }
0x395d   :  { %v2846_v44 = vpop.f32.mrb[78].mxu1 }
0x395e   :  { %v2850_v28 = vadd.f32 %v5585_v34, %v2844_v42  ;;  %v2847_v15 = vadd.f32 %v2846_v44, %v5526_v6  ;;  %v4072_v7 = vpop.f32.mrb[79].mxu1 }
0x3960   :  { %4321 = vtanh.f32 %v2850_v28  ;;  %v2851_v45 = vadd.f32 %v5585_v34, %v2847_v15  ;;  %v2852_v29 = vmul.f32 0.5, %v2850_v28 }
0x3962   :  { %4323 = vtanh.f32 %v2851_v45  ;;  %v2853_v61 = vmul.f32 0.5, %v2851_v45 }
0x3963   :  { %4325 = vtanh.f32 %v2852_v29 }
0x3964   :  { %4327 = vtanh.f32 %v2853_v61 }
0x396a   :  { %v4322_v2 = vpop.eup %4321 }
0x396b   :  { %2866 = vrot.lane.b32.xlu1 %v4322_v2, %s4402_s18 }
0x396c   :  { %v4324_v48 = vpop.eup %4323 }
0x396d   :  { %2868 = vrot.lane.b32.xlu0 %v4324_v48, %s4402_s18  ;;  %v4326_v13 = vpop.eup %4325 }
0x396e   :  { %v4328_v9 = vpop.eup %4327  ;;  %v2856_v30 = vadd.f32 1.0, %v4326_v13 }
0x396f   :  { %v2857_v41 = vadd.f32 1.0, %v4328_v9 }
0x3970   :  { %v2858_v6 = vmul.f32 0.5, %v2856_v30 }
0x3971   :  { %v2859_v49 = vmul.f32 0.5, %v2857_v41 }
0x3972   :  { %v2862_v12 = vmul.f32 %v2858_v6, %v5388_v39 }
0x3973   :  { %v2863_v38 = vmul.f32 %v2859_v49, %v5392_v27 }
0x39dd   :  { %v2867_v33 = vpop.permute.xlu1 %2866 }
0x39de   :  { %v2872_v18 = vmul.f32 %v2867_v33, %v2858_v6 }
0x39df   :  { %v2869_v36 = vpop.permute.xlu0 %2868 }
0x39e0   :  { %2876 = vrot.lane.b32.xlu1 %v2872_v18, %s4403_s19  ;;  %v2873_v55 = vmul.f32 %v2869_v36, %v2859_v49 }
0x39e2   :  { %2878 = vrot.lane.b32.xlu0 %v2873_v55, %s4403_s19 }
0x3a52   :  { %v2877_v43 = vpop.permute.xlu1 %2876 }
0x3a53   :  { %v5595_v54 = vadd.f32 %v2877_v43, %v2862_v12 }
0x3a54   :  { %v2879_v62 = vpop.permute.xlu0 %2878 }
0x3a55   :  { %4329 = vtanh.f32 %v5595_v54  ;;  %v5599_v31 = vadd.f32 %v2879_v62, %v2863_v38 }
0x3a57   :  { %4331 = vtanh.f32 %v5599_v31 }
0x3a5f   :  { %v4330_v24 = vpop.eup %4329 }
0x3a60   :  { %2888 = vrot.lane.b32.xlu1 %v4330_v24, %s4402_s18 }
0x3a61   :  { %v4332_v25 = vpop.eup %4331 }
0x3a62   :  { %2890 = vrot.lane.b32.xlu0 %v4332_v25, %s4402_s18 }
0x3ad2   :  { %v2889_v56 = vpop.permute.xlu1 %2888 }
0x3ad3   :  { %v2894_v42 = vmul.f32 %v2889_v56, %v2858_v6 }
0x3ad4   :  { %v2891_v39 = vpop.permute.xlu0 %2890 }
0x3ad5   :  { %v2895_v53 = vmul.f32 %v2891_v39, %v2859_v49 }
0x3ad7   :  { %v2896_v44 = vpack.c.bf16 %v2895_v53, %v2894_v42 }
0x3ad9   :  { %2898 = vrot.lane.b32.xlu1 %v2896_v44, %s4403_s19 }
0x3b4b   :  { %v5605_v27 = vpop.permute.xlu1 %2898 }
0x3b4c   :  { %4078 = vmatmul.mubr.msk.bf16.vlgmr.msra.gmra.mrb[80].mxu0 %vm106_vm1, %v5605_v27 }
0x3b4d   :  { %4102 = vmatpush3.bf16.msra.mxu0 %v5405_v35  ;;  %4105 = vmatprep.mubr.msk.bf16.mxu0 %vm4400_vm0, %v4399_v0 }
0x3b4e   :  { %4103 = vmatprep.subr.bf16.mxu0 %v4399_v0 }
0x3b51   :  { %4104 = vmatpush3.bf16.msra.mxu0 %v5414_v22  ;;  %v5626_v22 = vld [vmem:[%s5779_s6] ss:$0 sm:$0xff] }
0x3b52   :  { %4109 = vmatprep.subr.bf16.mxu0 %v4399_v0 }
0x3b54   :  { %4106 = vmatmul.mubr.msk.bf16.vlgmr.msra.gmra.mrb[84].mxu0 %vm106_vm1, %v5543_v8 }
0x3b55   :  { %4110 = vmatpush3.bf16.msra.mxu0 %v5423_v58  ;;  %4113 = vmatprep.mubr.msk.bf16.mxu0 %vm4400_vm0, %v4399_v0 }
0x3b56   :  { %4111 = vmatprep.subr.bf16.mxu0 %v4399_v0 }
0x3b59   :  { %4112 = vmatpush3.bf16.msra.mxu0 %v5432_v32 }
0x3b5a   :  { %4117 = vmatprep.subr.bf16.mxu0 %v4399_v0 }
0x3c1f   :  { %v2937_v35 = vpop.f32.mrb[80].mxu0 }
0x3c20   :  { %v2938_v28 = vadd.f32 %v5626_v22, %v2937_v35  ;;  %v4079_v8 = vpop.f32.mrb[81].mxu0 }
0x3c21   :  { %v2940_v15 = vpop.f32.mrb[82].mxu0 }
0x3c22   :  { %v2941_v58 = vadd.f32 %v5626_v22, %v2940_v15  ;;  %2944 = vmax.xlane.f32.xlu0 %v2938_v28  ;;  %v4080_v7 = vpop.f32.mrb[83].mxu0 }
0x3c24   :  { %2946 = vmax.xlane.f32.xlu1 %v2941_v58 }
0x3c27   :  { %v5630_v45 = vpop.f32.mrb[84].mxu0 }
0x3c28   :  { %v4107_v32 = vpop.f32.mrb[85].mxu0 }
0x3c29   :  { %v5632_v2 = vpop.f32.mrb[86].mxu0 }
0x3c2a   :  { %v4108_v48 = vpop.f32.mrb[87].mxu0 }
0x3caf   :  { %v5634_v29 = vpop.xlane.xlu0 %2944 }
0x3cb0   :  { %vm2948_vm5 = vcmp.eq.f32.partialorder %v2938_v28, %v5634_v29 }
0x3cb1   :  { %v2950_v61 = vsel %vm2948_vm5, %v4616_v57, 128  ;;  %v5638_v13 = vpop.xlane.xlu1 %2946 }
0x3cb2   :  { %v2953_v9 = vshra.s32 %v2950_v61, 16  ;;  %vm2949_vm6 = vcmp.eq.f32.partialorder %v2941_v58, %v5638_v13  ;;  %v2952_v18 = vand.u32 65535, %v2950_v61 }
0x3cb3   :  { %v2951_v30 = vsel %vm2949_vm6, %v4616_v57, 128 }
0x3cb4   :  { %v2967_v41 = vshra.s32 %v2951_v30, 16  ;;  %v2955_v6 = vcvt.s32.f32 %v2953_v9  ;;  %v2966_v49 = vand.u32 65535, %v2951_v30  ;;  %v2954_v55 = vcvt.s32.f32 %v2952_v18 }
0x3cb6   :  { %2956 = vmin.xlane.f32.xlu0 %v2955_v6  ;;  %v2969_v33 = vcvt.s32.f32 %v2967_v41  ;;  %v2968_v38 = vcvt.s32.f32 %v2966_v49 }
0x3cba   :  { %2970 = vmin.xlane.f32.xlu0 %v2969_v33 }
0x3d43   :  { %v2957_v36 = vpop.xlane.xlu0 %2956 }
0x3d44   :  { %vm2958_vm7 = vcmp.eq.f32.partialorder %v2955_v6, %v2957_v36  ;;  %v2963_v24 = vcvt.f32.s32 %v2957_v36 }
0x3d45   :  { %v2959_v12 = vsel %vm2958_vm7, %v2954_v55, inf }
0x3d46   :  { %2960 = vmin.xlane.f32.xlu1 %v2959_v12  ;;  %v2964_v56 = vshll.u32 %v2963_v24, 16 }
0x3d47   :  { %v2971_v43 = vpop.xlane.xlu0 %2970 }
0x3d48   :  { %vm2972_vm9 = vcmp.eq.f32.partialorder %v2969_v33, %v2971_v43  ;;  %v2977_v39 = vcvt.f32.s32 %v2971_v43 }
0x3d49   :  { %v2973_v62 = vsel %vm2972_vm9, %v2968_v38, inf }
0x3d4a   :  { %2974 = vmin.xlane.f32.xlu0 %v2973_v62  ;;  %v2978_v35 = vshll.u32 %v2977_v39, 16 }
0x3dd3   :  { %v2961_v25 = vpop.xlane.xlu1 %2960 }
0x3dd4   :  { %v2962_v42 = vcvt.f32.s32 %v2961_v25 }
0x3dd6   :  { %v2965_v53 = vadd.s32 %v2964_v56, %v2962_v42 }
0x3dd7   :  { %v2975_v44 = vpop.xlane.xlu0 %2974 }
0x3dd8   :  { %v5646_v28 = vsel %vm2980_vm10, %v2965_v53, %v5454_v50  ;;  %v2976_v8 = vcvt.f32.s32 %v2975_v44  ;;  %vm2985_vm12 = vcmp.eq.s32.totalorder %v4616_v57, %v2965_v53 }
0x3dda   :  { %v2979_v15 = vadd.s32 %v2978_v35, %v2976_v8 }
0x3ddc   :  { %v5652_v58 = vsel %vm2980_vm10, %v2979_v15, %v5460_v51  ;;  %vm2986_vm2 = vcmp.eq.s32.totalorder %v4616_v57, %v2979_v15 }
0x3ddd   :  { %vm3491_vm3 = vmpackc.low %vm2986_vm2, %vm2985_vm12 }
0x3dde   :  { %4098 = vmatmul.mubr.msk.bf16.vlgmr.msra.gmra.mrb[80].mxu1 %vm3491_vm3, %v4404_v47 }
0x3ddf   :  { %4134 = vmatpush3.bf16.msra.mxu1 %v5467_v52  ;;  %4137 = vmatprep.mubr.msk.bf16.mxu1 %vm4400_vm0, %v4399_v0 }
0x3de0   :  { %4135 = vmatprep.subr.bf16.mxu1 %v4399_v0 }
0x3de3   :  { %4136 = vmatpush3.bf16.msra.mxu1 %v5476_v40 }
0x3eb1   :  { %v3026_v50 = vpop.f32.mrb[80].mxu1 }
0x3eb2   :  { %v4099_v7 = vpop.f32.mrb[81].mxu1 }
0x3eb3   :  { %v3029_v32 = vpop.f32.mrb[82].mxu1 }
0x3eb4   :  { %v3033_v48 = vpack.c.bf16 %v3029_v32, %v3026_v50  ;;  %v4100_v51 = vpop.f32.mrb[83].mxu1 }
0x3eb6   :  { %4114 = vmatmul.mubr.msk.bf16.vlgmr.msra.gmra.mrb[88].mxu0 %vm106_vm1, %v3033_v48 }
0x3eb7   :  { %4118 = vmatpush3.bf16.msra.mxu0 %v5484_v1  ;;  %4121 = vmatprep.mubr.msk.bf16.mxu0 %vm4400_vm0, %v4399_v0 }
0x3eb8   :  { %4119 = vmatprep.subr.bf16.mxu0 %v4399_v0 }
0x3ebb   :  { %4120 = vmatpush3.bf16.msra.mxu0 %v5493_v10 }
0x3ebc   :  { %4125 = vmatprep.subr.bf16.mxu0 %v4399_v0 }
0x3ebe   :  { %4122 = vmatmul.mubr.msk.bf16.vlgmr.msra.gmra.mrb[92].mxu0 %vm106_vm1, %v5605_v27 }
0x3ebf   :  { %4126 = vmatpush3.bf16.msra.mxu0 %v5502_v37  ;;  %4129 = vmatprep.mubr.msk.bf16.mxu0 %vm4400_vm0, %v4399_v0  ;;  %vm3384_vm0 = vcmp.eq.s32.totalorder %v4616_v57, 7 }
0x3ec0   :  { %4127 = vmatprep.subr.bf16.mxu0 %v4399_v0 }
0x3ec3   :  { %4128 = vmatpush3.bf16.msra.mxu0 %v5511_v63 }
0x3f89   :  { %v3112_v47 = vpop.f32.mrb[88].mxu0 }
0x3f8a   :  { %v3113_v52 = vadd.f32 %v3112_v47, %v5630_v45  ;;  %v4115_v40 = vpop.f32.mrb[89].mxu0 }
0x3f8b   :  { %v3115_v1 = vpop.f32.mrb[90].mxu0 }
0x3f8c   :  { %v3119_v10 = vadd.f32 %v5519_v23, %v3113_v52  ;;  %v3116_v61 = vadd.f32 %v3115_v1, %v5632_v2  ;;  %v4116_v9 = vpop.f32.mrb[91].mxu0 }
0x3f8e   :  { %4333 = vtanh.f32 %v3119_v10  ;;  %v3120_v37 = vadd.f32 %v5519_v23, %v3116_v61  ;;  %v3121_v45 = vmul.f32 0.5, %v3119_v10 }
0x3f90   :  { %4335 = vtanh.f32 %v3120_v37  ;;  %v3122_v33 = vmul.f32 0.5, %v3120_v37 }
0x3f91   :  { %v3200_v27 = vpop.f32.mrb[92].mxu0  ;;  %4337 = vtanh.f32 %v3121_v45 }
0x3f92   :  { %v4123_v30 = vpop.f32.mrb[93].mxu0  ;;  %4339 = vtanh.f32 %v3122_v33 }
0x3f93   :  { %v3203_v41 = vpop.f32.mrb[94].mxu0 }
0x3f94   :  { %v4124_v0 = vpop.f32.mrb[95].mxu0 }
0x3f98   :  { %v4334_v6 = vpop.eup %4333 }
0x3f99   :  { %3135 = vrot.lane.b32.xlu1 %v4334_v6, %s4402_s18 }
0x3f9a   :  { %v4336_v63 = vpop.eup %4335 }
0x3f9b   :  { %3137 = vrot.lane.b32.xlu0 %v4336_v63, %s4402_s18  ;;  %v4338_v2 = vpop.eup %4337 }
0x3f9c   :  { %v3125_v18 = vadd.f32 1.0, %v4338_v2  ;;  %v4340_v49 = vpop.eup %4339 }
0x3f9d   :  { %v3126_v23 = vadd.f32 1.0, %v4340_v49 }
0x3f9e   :  { %v3127_v36 = vmul.f32 0.5, %v3125_v18 }
0x3f9f   :  { %v3128_v38 = vmul.f32 0.5, %v3126_v23 }
0x3fa0   :  { %v3131_v24 = vmul.f32 %v3127_v36, %v5533_v20 }
0x3fa1   :  { %v3132_v39 = vmul.f32 %v3128_v38, %v5537_v16 }
0x400b   :  { %v3136_v55 = vpop.permute.xlu1 %3135 }
0x400c   :  { %v3141_v12 = vmul.f32 %v3136_v55, %v3127_v36 }
0x400d   :  { %v3138_v43 = vpop.permute.xlu0 %3137 }
0x400e   :  { %3145 = vrot.lane.b32.xlu1 %v3141_v12, %s4403_s19  ;;  %v3142_v62 = vmul.f32 %v3138_v43, %v3128_v38 }
0x4012   :  { %3147 = vrot.lane.b32.xlu1 %v3142_v62, %s4403_s19 }
0x4080   :  { %v3146_v25 = vpop.permute.xlu1 %3145 }
0x4081   :  { %v3151_v56 = vadd.f32 %v3146_v25, %v3131_v24 }
0x4083   :  { %4341 = vtanh.f32 %v3151_v56 }
0x4084   :  { %v3148_v42 = vpop.permute.xlu1 %3147 }
0x4085   :  { %v3152_v53 = vadd.f32 %v3148_v42, %v3132_v39 }
0x4087   :  { %4343 = vtanh.f32 %v3152_v53 }
0x408d   :  { %v4342_v44 = vpop.eup %4341 }
0x408e   :  { %3157 = vrot.lane.b32.xlu0 %v4342_v44, %s4402_s18 }
0x4091   :  { %v4344_v35 = vpop.eup %4343 }
0x4092   :  { %3159 = vrot.lane.b32.xlu1 %v4344_v35, %s4402_s18 }
0x4100   :  { %v3158_v8 = vpop.permute.xlu0 %3157 }
0x4101   :  { %v3163_v50 = vmul.f32 %v3158_v8, %v3127_v36 }
0x4104   :  { %v3160_v15 = vpop.permute.xlu1 %3159 }
0x4105   :  { %v3164_v7 = vmul.f32 %v3160_v15, %v3128_v38 }
0x4107   :  { %v3165_v32 = vpack.c.bf16 %v3164_v7, %v3163_v50  ;;  %v511_v50 = vsel %vm508_vm13, %v4618_v59, 0.0 }
0x4108   :  { %v963_v7 = vsel %vm960_vm14, %v4797_v21, %v511_v50 }
0x4109   :  { %3208 = vrot.lane.b32.xlu0 %v3165_v32, %s4403_s19  ;;  %v512_v32 = vsel %vm508_vm13, %v4621_v60, 0.0 }
0x417b   :  { %v3209_v20 = vpop.permute.xlu0 %3208 }
0x417c   :  { %4130 = vmatmul.mubr.msk.bf16.vlgmr.msra.gmra.mrb[96].mxu0 %vm106_vm1, %v3209_v20  ;;  %v1367_v20 = vsel %vm1364_vm8, %v4950_v46, %v963_v7 }
0x417d   :  { %v1771_v59 = vsel %vm1768_vm4, %v5166_v3, %v1367_v20 }
0x417e   :  { %v2175_v60 = vsel %vm2172_vm15, %v5294_v11, %v1771_v59 }
0x424f   :  { %v3247_v16 = vpop.f32.mrb[96].mxu0 }
0x4250   :  { %v3248_v48 = vadd.f32 %v3247_v16, %v3200_v27  ;;  %v4131_v51 = vpop.f32.mrb[97].mxu0 }
0x4251   :  { %v3250_v47 = vpop.f32.mrb[98].mxu0 }
0x4252   :  { %v3254_v52 = vadd.f32 %v5585_v34, %v3248_v48  ;;  %v3251_v40 = vadd.f32 %v3250_v47, %v3203_v41  ;;  %v4132_v1 = vpop.f32.mrb[99].mxu0 }
0x4254   :  { %4345 = vtanh.f32 %v3254_v52  ;;  %v3255_v10 = vadd.f32 %v5585_v34, %v3251_v40  ;;  %v3256_v37 = vmul.f32 0.5, %v3254_v52 }
0x4256   :  { %4347 = vtanh.f32 %v3255_v10  ;;  %v3257_v30 = vmul.f32 0.5, %v3255_v10 }
0x4257   :  { %4349 = vtanh.f32 %v3256_v37 }
0x4258   :  { %4351 = vtanh.f32 %v3257_v30 }
0x425e   :  { %v4346_v61 = vpop.eup %4345 }
0x425f   :  { %3270 = vrot.lane.b32.xlu1 %v4346_v61, %s4402_s18 }
0x4260   :  { %v4348_v9 = vpop.eup %4347 }
0x4261   :  { %3272 = vrot.lane.b32.xlu0 %v4348_v9, %s4402_s18  ;;  %v4350_v27 = vpop.eup %4349 }
0x4262   :  { %v4352_v0 = vpop.eup %4351  ;;  %v3260_v6 = vadd.f32 1.0, %v4350_v27 }
0x4263   :  { %v3261_v63 = vadd.f32 1.0, %v4352_v0 }
0x4264   :  { %v3262_v41 = vmul.f32 0.5, %v3260_v6 }
0x4265   :  { %v3263_v2 = vmul.f32 0.5, %v3261_v63 }
0x4266   :  { %v3266_v49 = vmul.f32 %v3262_v41, %v5595_v54 }
0x4267   :  { %v3267_v55 = vmul.f32 %v3263_v2, %v5599_v31 }
0x42d1   :  { %v3271_v45 = vpop.permute.xlu1 %3270 }
0x42d2   :  { %v3276_v33 = vmul.f32 %v3271_v45, %v3262_v41 }
0x42d3   :  { %v3273_v34 = vpop.permute.xlu0 %3272 }
0x42d4   :  { %3280 = vrot.lane.b32.xlu1 %v3276_v33, %s4403_s19  ;;  %v3277_v18 = vmul.f32 %v3273_v34, %v3263_v2 }
0x42d6   :  { %3282 = vrot.lane.b32.xlu0 %v3277_v18, %s4403_s19 }
0x4346   :  { %v3281_v36 = vpop.permute.xlu1 %3280 }
0x4347   :  { %v3286_v23 = vadd.f32 %v3281_v36, %v3266_v49 }
0x4348   :  { %v3283_v12 = vpop.permute.xlu0 %3282 }
0x4349   :  { %4353 = vtanh.f32 %v3286_v23  ;;  %v3287_v43 = vadd.f32 %v3283_v12, %v3267_v55 }
0x434b   :  { %4355 = vtanh.f32 %v3287_v43 }
0x4353   :  { %v4354_v38 = vpop.eup %4353 }
0x4354   :  { %3292 = vrot.lane.b32.xlu1 %v4354_v38, %s4402_s18 }
0x4355   :  { %v4356_v62 = vpop.eup %4355 }
0x4356   :  { %3294 = vrot.lane.b32.xlu0 %v4356_v62, %s4402_s18 }
0x43c6   :  { %v3293_v24 = vpop.permute.xlu1 %3292 }
0x43c7   :  { %v3298_v56 = vmul.f32 %v3293_v24, %v3262_v41 }
0x43c8   :  { %v3295_v25 = vpop.permute.xlu0 %3294 }
0x43c9   :  { %v3299_v39 = vmul.f32 %v3295_v25, %v3263_v2 }
0x43cb   :  { %v3300_v42 = vpack.c.bf16 %v3299_v39, %v3298_v56 }
0x43cd   :  { %3302 = vrot.lane.b32.xlu1 %v3300_v42, %s4403_s19 }
0x443f   :  { %v3303_v54 = vpop.permute.xlu1 %3302 }
0x4440   :  { %4138 = vmatmul.mubr.msk.bf16.vlgmr.msra.gmra.mrb[84].mxu1 %vm106_vm1, %v3303_v54  ;;  %vm3389_vm1 = vcmask 64512  }
0x4513   :  { %v3341_v31 = vpop.f32.mrb[84].mxu1 }
0x4514   :  { %v3342_v53 = vadd.f32 %v5626_v22, %v3341_v31  ;;  %v4139_v44 = vpop.f32.mrb[85].mxu1 }
0x4515   :  { %v3344_v35 = vpop.f32.mrb[86].mxu1 }
0x4516   :  { %v3345_v8 = vadd.f32 %v5626_v22, %v3344_v35  ;;  %3348 = vmax.xlane.f32.xlu0 %v3342_v53  ;;  %v4140_v15 = vpop.f32.mrb[87].mxu1  ;;  %v964_v22 = vsel %vm960_vm14, %v4800_v4, %v512_v32  ;;  %v2579_v4 = vsel %vm2576_vm11, %v5442_v17, %v2175_v60 }
0x4517   :  { %v1368_v21 = vsel %vm1364_vm8, %v4953_v5, %v964_v22  ;;  %v2983_v5 = vsel %vm2980_vm10, %v5634_v29, %v2579_v4 }
0x4518   :  { %3350 = vmax.xlane.f32.xlu1 %v3345_v8  ;;  %v1772_v46 = vsel %vm1768_vm4, %v5170_v26, %v1368_v21 }
0x4519   :  { %v2176_v3 = vsel %vm2172_vm15, %v5298_v14, %v1772_v46 }
0x451a   :  { %v2580_v16 = vsel %vm2576_vm11, %v5446_v19, %v2176_v3 }
0x451b   :  { %v2984_v17 = vsel %vm2980_vm10, %v5638_v13, %v2580_v16 }
0x45a3   :  { %v3349_v11 = vpop.xlane.xlu0 %3348 }
0x45a4   :  { %vm3352_vm13 = vcmp.eq.f32.partialorder %v3342_v53, %v3349_v11  ;;  %v3387_v26 = vsel %vm3384_vm0, %v3349_v11, %v2983_v5 }
0x45a5   :  { %v3354_v48 = vsel %vm3352_vm13, %v4616_v57, 128  ;;  %3392 = vst.msk [vmem:[%s5781_s8] sm:$0xff] %vm3389_vm1, %v3387_v26  ;;  %v3351_v14 = vpop.xlane.xlu1 %3350 }
0x45a6   :  { %v3357_v29 = vshra.s32 %v3354_v48, 16  ;;  %vm3353_vm14 = vcmp.eq.f32.partialorder %v3345_v8, %v3351_v14  ;;  %v3388_v19 = vsel %vm3384_vm0, %v3351_v14, %v2984_v17  ;;  %v3356_v40 = vand.u32 65535, %v3354_v48 }
0x45a7   :  { %v3355_v51 = vsel %vm3353_vm14, %v4616_v57, 128  ;;  %3393 = vst.msk [vmem:[%s5781_s8 + $0x8] sm:$0xff] %vm3389_vm1, %v3388_v19 }
0x45a8   :  { %v3371_v13 = vshra.s32 %v3355_v51, 16  ;;  %v3359_v47 = vcvt.s32.f32 %v3357_v29  ;;  %v3370_v1 = vand.u32 65535, %v3355_v51  ;;  %v3358_v61 = vcvt.s32.f32 %v3356_v40 }
0x45aa   :  { %3360 = vmin.xlane.f32.xlu0 %v3359_v47  ;;  %v3373_v52 = vcvt.s32.f32 %v3371_v13  ;;  %v3372_v30 = vcvt.s32.f32 %v3370_v1 }
0x45ae   :  { %3374 = vmin.xlane.f32.xlu0 %v3373_v52 }
0x4637   :  { %v3361_v10 = vpop.xlane.xlu0 %3360 }
0x4638   :  { %vm3362_vm8 = vcmp.eq.f32.partialorder %v3359_v47, %v3361_v10  ;;  %v3367_v0 = vcvt.f32.s32 %v3361_v10 }
0x4639   :  { %v3363_v9 = vsel %vm3362_vm8, %v3358_v61, inf }
0x463a   :  { %3364 = vmin.xlane.f32.xlu1 %v3363_v9  ;;  %v3368_v63 = vshll.u32 %v3367_v0, 16 }
0x463b   :  { %v3375_v37 = vpop.xlane.xlu0 %3374 }
0x463c   :  { %vm3376_vm4 = vcmp.eq.f32.partialorder %v3373_v52, %v3375_v37  ;;  %v3381_v41 = vcvt.f32.s32 %v3375_v37 }
0x463d   :  { %v3377_v27 = vsel %vm3376_vm4, %v3372_v30, inf }
0x463e   :  { %3378 = vmin.xlane.f32.xlu0 %v3377_v27  ;;  %v3382_v34 = vshll.u32 %v3381_v41, 16 }
0x46c7   :  { %v3365_v6 = vpop.xlane.xlu1 %3364 }
0x46c8   :  { %v3366_v45 = vcvt.f32.s32 %v3365_v6 }
0x46ca   :  { %v3369_v33 = vadd.s32 %v3368_v63, %v3366_v45 }
0x46cb   :  { %v3379_v2 = vpop.xlane.xlu0 %3378 }
0x46cc   :  { %v3385_v18 = vsel %vm3384_vm0, %v3369_v33, %v5646_v28  ;;  %v3380_v49 = vcvt.f32.s32 %v3379_v2 }
0x46cd   :  { %3390 = vst.msk [vmem:[%s5782_s7] sm:$0xff] %vm3389_vm1, %v3385_v18 }
0x46ce   :  { %v3383_v36 = vadd.s32 %v3382_v34, %v3380_v49 }
0x46d0   :  { %v3386_v23 = vsel %vm3384_vm0, %v3383_v36, %v5652_v58 }
0x46d1   :  { %3391 = vst.msk [vmem:[%s5782_s7 + $0x8] sm:$0xff] %vm3389_vm1, %v3386_v23 }

</bundles_post_ra>
